<compile_context>
chip_gen: v7x
topology: tpu7x:2x2x1
jax: 0.10.0
libtpu: 0.0.40
codegen_flags: <defaults>
</compile_context>

<pallas_src>
import jax
import jax.numpy as jnp
import numpy as np
from jax import lax
from jax.experimental import pallas as pl
from jax.experimental.pallas import tpu as pltpu


# ---------------------------------------------------------------------------
# The fused LeNet-5 kernel: five lane-dense matmuls, activations as values.
# ---------------------------------------------------------------------------
def lenet5_kernel(x_ref, w1_ref, b1_ref, w2_ref, b2_ref, wd1_ref, bd1_ref,
                  wd2_ref, bd2_ref, wo_ref, bo_ref, out_ref):
    f32 = jnp.float32

    # conv1(+pad) + avgpool1 + relu  ->  (TB, 1176), torch (c, h, w) order
    h = jnp.dot(x_ref[...], w1_ref[...], preferred_element_type=f32) + b1_ref[...]
    h = jnp.maximum(h, 0.0)

    # conv2 + avgpool2 + relu  ->  (TB, 400), exactly torch.flatten order
    h = jnp.dot(h, w2_ref[...], preferred_element_type=f32) + b2_ref[...]
    h = jnp.maximum(h, 0.0)

    # dense1 + relu  ->  (TB, 120)
    h = jnp.dot(h, wd1_ref[...], preferred_element_type=f32) + bd1_ref[...]
    h = jnp.maximum(h, 0.0)

    # dense2 + relu  ->  (TB, 84)
    h = jnp.dot(h, wd2_ref[...], preferred_element_type=f32) + bd2_ref[...]
    h = jnp.maximum(h, 0.0)

    # output  ->  (TB, 10)
    out_ref[...] = jnp.dot(h, wo_ref[...], preferred_element_type=f32) + bo_ref[...]


# ---------------------------------------------------------------------------
# One-time weight preparation (outside the per-step forward).
# Conv+pool stages are folded into dense matrices by probing the (linear,
# bias-free) conv+pool map with a one-hot identity batch.  Pooling-before-bias
# is exact because avgpool(conv(x) + b_c) = avgpool(conv(x)) + b_c.
# ---------------------------------------------------------------------------
def _avgpool(y):
    B, C, H, W = y.shape
    return y.reshape(B, C, H // 2, 2, W // 2, 2).mean(axis=(3, 5))


def prepare_params(params):
    w1, b1, w2, b2, wd1, bd1, wd2, bd2, wo, bo = params

    # conv1 (pad 2) + pool1 as a (784, 1176) matrix.
    eye1 = jnp.eye(28 * 28, dtype=jnp.float32).reshape(784, 1, 28, 28)
    dn1 = lax.conv_dimension_numbers(eye1.shape, w1.shape, ("NCHW", "OIHW", "NCHW"))
    y1 = lax.conv_general_dilated(eye1, w1, (1, 1), ((2, 2), (2, 2)),
                                  dimension_numbers=dn1)
    w1d = _avgpool(y1).reshape(784, 6 * 14 * 14)          # (784, 1176)
    b1e = jnp.repeat(b1, 14 * 14).reshape(1, -1)          # (1, 1176)

    # conv2 (valid) + pool2 as a (1176, 400) matrix; columns are torch flatten order.
    eye2 = jnp.eye(6 * 14 * 14, dtype=jnp.float32).reshape(1176, 6, 14, 14)
    dn2 = lax.conv_dimension_numbers(eye2.shape, w2.shape, ("NCHW", "OIHW", "NCHW"))
    y2 = lax.conv_general_dilated(eye2, w2, (1, 1), "VALID",
                                  dimension_numbers=dn2)
    w2d = _avgpool(y2).reshape(1176, 16 * 5 * 5)          # (1176, 400)
    b2e = jnp.repeat(b2, 5 * 5).reshape(1, -1)            # (1, 400)

    return (w1d, b1e, w2d, b2e,
            wd1.T, bd1.reshape(1, -1),
            wd2.T, bd2.reshape(1, -1),
            wo.T, bo.reshape(1, -1))


# ---------------------------------------------------------------------------
# Host-side wrapper: batch tiled across a parallel grid.
# ---------------------------------------------------------------------------
def _round_up(n, m):
    return ((n + m - 1) // m) * m


def lenet5_forward(x, prepared, *, batch_tile=128):
    B = x.shape[0]
    xf = x.reshape(B, 28 * 28).astype(jnp.float32)

    TB = min(batch_tile, _round_up(B, 8))       # batch tile, multiple of 8
    B_pad = _round_up(B, TB)
    if B_pad != B:
        xf = jnp.pad(xf, ((0, B_pad - B), (0, 0)))
    grid = (B_pad // TB,)

    # Weights: full-array blocks, same block every step (DMA'd once per core).
    weight_specs = [pl.BlockSpec(p.shape, lambda i: (0, 0)) for p in prepared]
    in_specs = [pl.BlockSpec((TB, 784), lambda i: (i, 0))] + weight_specs

    out = pl.pallas_call(
        lenet5_kernel,
        out_shape=jax.ShapeDtypeStruct((B_pad, 10), jnp.float32),
        grid=grid,
        in_specs=in_specs,
        out_specs=pl.BlockSpec((TB, 10), lambda i: (i, 0)),
        compiler_params=pltpu.CompilerParams(
            dimension_semantics=("parallel",),
            vmem_limit_bytes=32 * 1024 * 1024,   # weights (~5.8 MB) x2 buffers + tiles
        ),
    )(xf, *prepared)
    return out[:B]


# ---------------------------------------------------------------------------
# Pure-JAX reference (for correctness check)
# ---------------------------------------------------------------------------
def reference_forward(x, params):
    w1, b1, w2, b2, wd1, bd1, wd2, bd2, wo, bo = params
    dn1 = lax.conv_dimension_numbers(x.shape, w1.shape, ("NCHW", "OIHW", "NCHW"))
    y = lax.conv_general_dilated(x, w1, (1, 1), ((2, 2), (2, 2)),
                                 dimension_numbers=dn1) + b1.reshape(1, -1, 1, 1)
    y = jnp.maximum(_avgpool(y), 0.0)
    dn2 = lax.conv_dimension_numbers(y.shape, w2.shape, ("NCHW", "OIHW", "NCHW"))
    y = lax.conv_general_dilated(y, w2, (1, 1), "VALID",
                                 dimension_numbers=dn2) + b2.reshape(1, -1, 1, 1)
    y = jnp.maximum(_avgpool(y), 0.0)
    y = y.reshape(y.shape[0], -1)
    y = jnp.maximum(y @ wd1.T + bd1, 0.0)
    y = jnp.maximum(y @ wd2.T + bd2, 0.0)
    return y @ wo.T + bo


# ---------------------------------------------------------------------------
# Deterministic parameter init (PyTorch-style uniform(-1/sqrt(fan_in), ...))
# ---------------------------------------------------------------------------
def init_params(key):
    def u(k, shape, fan_in):
        bound = 1.0 / np.sqrt(fan_in)
        return jax.random.uniform(k, shape, jnp.float32, -bound, bound)

    ks = jax.random.split(key, 10)
    w1 = u(ks[0], (6, 1, 5, 5), 1 * 5 * 5)
    b1 = u(ks[1], (6,), 1 * 5 * 5)
    w2 = u(ks[2], (16, 6, 5, 5), 6 * 5 * 5)
    b2 = u(ks[3], (16,), 6 * 5 * 5)
    wd1 = u(ks[4], (120, 400), 400)
    bd1 = u(ks[5], (120,), 400)
    wd2 = u(ks[6], (84, 120), 120)
    bd2 = u(ks[7], (84,), 120)
    wo = u(ks[8], (10, 84), 84)
    bo = u(ks[9], (10,), 84)
    return (w1, b1, w2, b2, wd1, bd1, wd2, bd2, wo, bo)


if __name__ == "__main__":
    key = jax.random.PRNGKey(0)
    k_x, k_p = jax.random.split(key)

    # LeNet-5 geometry is fixed by the 400-feature dense layer -> 28x28 input.
    B = 2
    x = jax.random.normal(k_x, (B, 1, 28, 28), jnp.float32)
    params = init_params(k_p)

    prepared = jax.block_until_ready(prepare_params(params))   # one-time weight prep
    fwd = jax.jit(lenet5_forward)

    out = jax.block_until_ready(fwd(x, prepared))
    assert out.shape == (B, 10), out.shape

    ref = jax.block_until_ready(reference_forward(x, params))
    np.testing.assert_allclose(np.asarray(out), np.asarray(ref), rtol=1e-2, atol=1e-2)

    print("KERNEL_OK")
</pallas_src>

<mosaic_0001>
module attributes {stable_mosaic.version = 11 : i64} {
  func.func @lenet5_kernel(%arg0: i32, %arg1: memref<8x784xf32, #tpu.memory_space<vmem>>, %arg2: memref<784x1176xf32, #tpu.memory_space<vmem>>, %arg3: memref<1x1176xf32, #tpu.memory_space<vmem>>, %arg4: memref<1176x400xf32, #tpu.memory_space<vmem>>, %arg5: memref<1x400xf32, #tpu.memory_space<vmem>>, %arg6: memref<400x120xf32, #tpu.memory_space<vmem>>, %arg7: memref<1x120xf32, #tpu.memory_space<vmem>>, %arg8: memref<120x84xf32, #tpu.memory_space<vmem>>, %arg9: memref<1x84xf32, #tpu.memory_space<vmem>>, %arg10: memref<84x10xf32, #tpu.memory_space<vmem>>, %arg11: memref<1x10xf32, #tpu.memory_space<vmem>>, %arg12: memref<8x10xf32, #tpu.memory_space<vmem>>) attributes {dimension_semantics = [#tpu.dimension_semantics<parallel>], iteration_bounds = array<i64: 1>, scalar_prefetch = 0 : i64, scratch_operands = 0 : i64, tpu.core_type = #tpu.core_type<tc>, window_params = [{transform_indices = @transform_0, window_bounds = array<i64: 8, 784>}, {pipeline_mode = #tpu.pipeline_mode<synchronous>, transform_indices = @transform_1, window_bounds = array<i64: 784, 1176>}, {pipeline_mode = #tpu.pipeline_mode<synchronous>, transform_indices = @transform_2, window_bounds = array<i64: 1, 1176>}, {pipeline_mode = #tpu.pipeline_mode<synchronous>, transform_indices = @transform_3, window_bounds = array<i64: 1176, 400>}, {pipeline_mode = #tpu.pipeline_mode<synchronous>, transform_indices = @transform_4, window_bounds = array<i64: 1, 400>}, {pipeline_mode = #tpu.pipeline_mode<synchronous>, transform_indices = @transform_5, window_bounds = array<i64: 400, 120>}, {pipeline_mode = #tpu.pipeline_mode<synchronous>, transform_indices = @transform_6, window_bounds = array<i64: 1, 120>}, {pipeline_mode = #tpu.pipeline_mode<synchronous>, transform_indices = @transform_7, window_bounds = array<i64: 120, 84>}, {pipeline_mode = #tpu.pipeline_mode<synchronous>, transform_indices = @transform_8, window_bounds = array<i64: 1, 84>}, {pipeline_mode = #tpu.pipeline_mode<synchronous>, transform_indices = @transform_9, window_bounds = array<i64: 84, 10>}, {pipeline_mode = #tpu.pipeline_mode<synchronous>, transform_indices = @transform_10, window_bounds = array<i64: 1, 10>}, {transform_indices = @transform_11, window_bounds = array<i64: 8, 10>}]} {
    %c0 = arith.constant 0 : index
    %c0_0 = arith.constant 0 : index
    %0 = vector.load %arg1[%c0, %c0_0] : memref<8x784xf32, #tpu.memory_space<vmem>>, vector<8x784xf32>
    %c0_1 = arith.constant 0 : index
    %c0_2 = arith.constant 0 : index
    %1 = vector.load %arg2[%c0_1, %c0_2] : memref<784x1176xf32, #tpu.memory_space<vmem>>, vector<784x1176xf32>
    %cst = arith.constant dense<0.000000e+00> : vector<8x1176xf32>
    %2 = tpu.matmul %0, %1, %cst {dimension_numbers = #tpu.dot_dimension_numbers<[1], [0], [0], [1], [0, 0, 1, 1], [], []>} : vector<8x784xf32>, vector<784x1176xf32>, vector<8x1176xf32> -> vector<8x1176xf32>
    %c0_3 = arith.constant 0 : index
    %c0_4 = arith.constant 0 : index
    %3 = vector.load %arg3[%c0_3, %c0_4] : memref<1x1176xf32, #tpu.memory_space<vmem>>, vector<1x1176xf32>
    %4 = vector.broadcast %3 : vector<1x1176xf32> to vector<8x1176xf32>
    %5 = arith.addf %2, %4 : vector<8x1176xf32>
    %cst_5 = arith.constant 0.000000e+00 : f32
    %6 = vector.broadcast %cst_5 : f32 to vector<8x1176xf32>
    %7 = arith.maximumf %5, %6 : vector<8x1176xf32>
    %c0_6 = arith.constant 0 : index
    %c0_7 = arith.constant 0 : index
    %8 = vector.load %arg4[%c0_6, %c0_7] : memref<1176x400xf32, #tpu.memory_space<vmem>>, vector<1176x400xf32>
    %cst_8 = arith.constant dense<0.000000e+00> : vector<8x400xf32>
    %9 = tpu.matmul %7, %8, %cst_8 {dimension_numbers = #tpu.dot_dimension_numbers<[1], [0], [0], [1], [0, 0, 1, 1], [], []>} : vector<8x1176xf32>, vector<1176x400xf32>, vector<8x400xf32> -> vector<8x400xf32>
    %c0_9 = arith.constant 0 : index
    %c0_10 = arith.constant 0 : index
    %10 = vector.load %arg5[%c0_9, %c0_10] : memref<1x400xf32, #tpu.memory_space<vmem>>, vector<1x400xf32>
    %11 = vector.broadcast %10 : vector<1x400xf32> to vector<8x400xf32>
    %12 = arith.addf %9, %11 : vector<8x400xf32>
    %cst_11 = arith.constant 0.000000e+00 : f32
    %13 = vector.broadcast %cst_11 : f32 to vector<8x400xf32>
    %14 = arith.maximumf %12, %13 : vector<8x400xf32>
    %c0_12 = arith.constant 0 : index
    %c0_13 = arith.constant 0 : index
    %15 = vector.load %arg6[%c0_12, %c0_13] : memref<400x120xf32, #tpu.memory_space<vmem>>, vector<400x120xf32>
    %cst_14 = arith.constant dense<0.000000e+00> : vector<8x120xf32>
    %16 = tpu.matmul %14, %15, %cst_14 {dimension_numbers = #tpu.dot_dimension_numbers<[1], [0], [0], [1], [0, 0, 1, 1], [], []>} : vector<8x400xf32>, vector<400x120xf32>, vector<8x120xf32> -> vector<8x120xf32>
    %c0_15 = arith.constant 0 : index
    %c0_16 = arith.constant 0 : index
    %17 = vector.load %arg7[%c0_15, %c0_16] : memref<1x120xf32, #tpu.memory_space<vmem>>, vector<1x120xf32>
    %18 = vector.broadcast %17 : vector<1x120xf32> to vector<8x120xf32>
    %19 = arith.addf %16, %18 : vector<8x120xf32>
    %cst_17 = arith.constant 0.000000e+00 : f32
    %20 = vector.broadcast %cst_17 : f32 to vector<8x120xf32>
    %21 = arith.maximumf %19, %20 : vector<8x120xf32>
    %c0_18 = arith.constant 0 : index
    %c0_19 = arith.constant 0 : index
    %22 = vector.load %arg8[%c0_18, %c0_19] : memref<120x84xf32, #tpu.memory_space<vmem>>, vector<120x84xf32>
    %cst_20 = arith.constant dense<0.000000e+00> : vector<8x84xf32>
    %23 = tpu.matmul %21, %22, %cst_20 {dimension_numbers = #tpu.dot_dimension_numbers<[1], [0], [0], [1], [0, 0, 1, 1], [], []>} : vector<8x120xf32>, vector<120x84xf32>, vector<8x84xf32> -> vector<8x84xf32>
    %c0_21 = arith.constant 0 : index
    %c0_22 = arith.constant 0 : index
    %24 = vector.load %arg9[%c0_21, %c0_22] : memref<1x84xf32, #tpu.memory_space<vmem>>, vector<1x84xf32>
    %25 = vector.broadcast %24 : vector<1x84xf32> to vector<8x84xf32>
    %26 = arith.addf %23, %25 : vector<8x84xf32>
    %cst_23 = arith.constant 0.000000e+00 : f32
    %27 = vector.broadcast %cst_23 : f32 to vector<8x84xf32>
    %28 = arith.maximumf %26, %27 : vector<8x84xf32>
    %c0_24 = arith.constant 0 : index
    %c0_25 = arith.constant 0 : index
    %29 = vector.load %arg10[%c0_24, %c0_25] : memref<84x10xf32, #tpu.memory_space<vmem>>, vector<84x10xf32>
    %cst_26 = arith.constant dense<0.000000e+00> : vector<8x10xf32>
    %30 = tpu.matmul %28, %29, %cst_26 {dimension_numbers = #tpu.dot_dimension_numbers<[1], [0], [0], [1], [0, 0, 1, 1], [], []>} : vector<8x84xf32>, vector<84x10xf32>, vector<8x10xf32> -> vector<8x10xf32>
    %c0_27 = arith.constant 0 : index
    %c0_28 = arith.constant 0 : index
    %31 = vector.load %arg11[%c0_27, %c0_28] : memref<1x10xf32, #tpu.memory_space<vmem>>, vector<1x10xf32>
    %32 = vector.broadcast %31 : vector<1x10xf32> to vector<8x10xf32>
    %33 = arith.addf %30, %32 : vector<8x10xf32>
    %c0_29 = arith.constant 0 : index
    %c0_30 = arith.constant 0 : index
    %34 = vector.load %arg12[%c0_29, %c0_30] : memref<8x10xf32, #tpu.memory_space<vmem>>, vector<8x10xf32>
    tpu.vector_store %arg12[%c0_29, %c0_30], %33 {strides = array<i32>} : memref<8x10xf32, #tpu.memory_space<vmem>>, vector<8x10xf32>,
    return
  }
  func.func @transform_0(%arg0: i32) -> (i32, i32) {
    %c0_i32 = arith.constant 0 : i32
    %c0_i32_0 = arith.constant 0 : i32
    return %arg0, %c0_i32 : i32, i32
  }
  func.func @transform_1(%arg0: i32) -> (i32, i32) {
    %c0_i32 = arith.constant 0 : i32
    %c0_i32_0 = arith.constant 0 : i32
    %c0_i32_1 = arith.constant 0 : i32
    return %c0_i32, %c0_i32_0 : i32, i32
  }
  func.func @transform_2(%arg0: i32) -> (i32, i32) {
    %c0_i32 = arith.constant 0 : i32
    %c0_i32_0 = arith.constant 0 : i32
    %c0_i32_1 = arith.constant 0 : i32
    return %c0_i32, %c0_i32_0 : i32, i32
  }
  func.func @transform_3(%arg0: i32) -> (i32, i32) {
    %c0_i32 = arith.constant 0 : i32
    %c0_i32_0 = arith.constant 0 : i32
    %c0_i32_1 = arith.constant 0 : i32
    return %c0_i32, %c0_i32_0 : i32, i32
  }
  func.func @transform_4(%arg0: i32) -> (i32, i32) {
    %c0_i32 = arith.constant 0 : i32
    %c0_i32_0 = arith.constant 0 : i32
    %c0_i32_1 = arith.constant 0 : i32
    return %c0_i32, %c0_i32_0 : i32, i32
  }
  func.func @transform_5(%arg0: i32) -> (i32, i32) {
    %c0_i32 = arith.constant 0 : i32
    %c0_i32_0 = arith.constant 0 : i32
    %c0_i32_1 = arith.constant 0 : i32
    return %c0_i32, %c0_i32_0 : i32, i32
  }
  func.func @transform_6(%arg0: i32) -> (i32, i32) {
    %c0_i32 = arith.constant 0 : i32
    %c0_i32_0 = arith.constant 0 : i32
    %c0_i32_1 = arith.constant 0 : i32
    return %c0_i32, %c0_i32_0 : i32, i32
  }
  func.func @transform_7(%arg0: i32) -> (i32, i32) {
    %c0_i32 = arith.constant 0 : i32
    %c0_i32_0 = arith.constant 0 : i32
    %c0_i32_1 = arith.constant 0 : i32
    return %c0_i32, %c0_i32_0 : i32, i32
  }
  func.func @transform_8(%arg0: i32) -> (i32, i32) {
    %c0_i32 = arith.constant 0 : i32
    %c0_i32_0 = arith.constant 0 : i32
    %c0_i32_1 = arith.constant 0 : i32
    return %c0_i32, %c0_i32_0 : i32, i32
  }
  func.func @transform_9(%arg0: i32) -> (i32, i32) {
    %c0_i32 = arith.constant 0 : i32
    %c0_i32_0 = arith.constant 0 : i32
    %c0_i32_1 = arith.constant 0 : i32
    return %c0_i32, %c0_i32_0 : i32, i32
  }
  func.func @transform_10(%arg0: i32) -> (i32, i32) {
    %c0_i32 = arith.constant 0 : i32
    %c0_i32_0 = arith.constant 0 : i32
    %c0_i32_1 = arith.constant 0 : i32
    return %c0_i32, %c0_i32_0 : i32, i32
  }
  func.func @transform_11(%arg0: i32) -> (i32, i32) {
    %c0_i32 = arith.constant 0 : i32
    %c0_i32_0 = arith.constant 0 : i32
    return %arg0, %c0_i32 : i32, i32
  }
}

</mosaic_0001>

<bundles_post_ra>
// kernel: lenet5_forward.1
= control target key start
LH: loop header
LB: loop body
LE: loop exit
PB: predicated region body
PF: predicated region fallthrough
CT: control target
= control target key end

     0   :  { %vm1079_vm0 = vcmask 130048   ;;  %vm3123_vm1 = vcmask 195584   ;;  %vm6115_vm2 = vmmov 0   ;;  %vm4064_vm3 = vcmask 982016   ;;  %s11350_s1 = inlined_call_operand.vmem [shape: f32[784,1176], index: 1, kind: input, shape index: {}]   ;;  %s11351_s0 = inlined_call_operand.vmem [shape: f32[8,784], index: 0, kind: input, shape index: {}]   ;;  %s11352_s3 = inlined_call_operand.vmem [shape: f32[1176,400], index: 3, kind: input, shape index: {}]   ;;  %s11353_s2 = inlined_call_operand.vmem [shape: f32[1,1176], index: 2, kind: input, shape index: {}]   ;;  %s11354_s5 = inlined_call_operand.vmem [shape: f32[400,120], index: 5, kind: input, shape index: {}]   ;;  %s11355_s4 = inlined_call_operand.vmem [shape: f32[1,400], index: 4, kind: input, shape index: {}]   ;;  %s11356_s7 = inlined_call_operand.vmem [shape: f32[120,84], index: 7, kind: input, shape index: {}]   ;;  %s11357_s6 = inlined_call_operand.vmem [shape: f32[1,120], index: 6, kind: input, shape index: {}]   ;;  %s11358_s9 = inlined_call_operand.vmem [shape: f32[84,10], index: 9, kind: input, shape index: {}]   ;;  %s11359_s8 = inlined_call_operand.vmem [shape: f32[1,84], index: 8, kind: input, shape index: {}]   ;;  %s11360_s10 = inlined_call_operand.vmem [shape: f32[1,10], index: 10, kind: input, shape index: {}]   ;;  %s11361_s11 = inlined_call_operand.vmem [shape: f32[8,10], index: 11, kind: output, shape index: {}]  }
   0x1   :  { %v46_v0 = vld [vmem:[%s11350_s1 + $0x8] sm:$0xff]  ;;  %v56_v1 = vld [vmem:[%s11350_s1 + $0x58] sm:$0xff]  ;;  %v45_v5 = vld [vmem:[%s11350_s1] sm:$0xff]  ;;  %vm4161_vm4 = vcmask 1043456   ;;  %vm4157_vm5 = vcmask 687104   ;;  %vm4235_vm6 = vcmask 80896  }
   0x2   :  { %v48_v2 = vld [vmem:[%s11350_s1 + $0x18] sm:$0xff]  ;;  %v4376_v3 = vpack.c.bf16 %v56_v1, %v46_v0  ;;  %v58_v4 = vld [vmem:[%s11350_s1 + $0x68] sm:$0xff]  ;;  %v55_v6 = vld [vmem:[%s11350_s1 + $0x50] sm:$0xff] }
   0x3   :  { %v4572_v7 = vpack.c.bf16 %v58_v4, %v48_v2  ;;  %v4378_v8 = vpack.c.bf16 %v55_v6, %v45_v5  ;;  %v47_v9 = vld [vmem:[%s11350_s1 + $0x10] sm:$0xff]  ;;  %v57_v10 = vld [vmem:[%s11350_s1 + $0x60] sm:$0xff]  ;;  %v66_v11 = vld [vmem:[%s11350_s1 + $0xa8] sm:$0xff] }
   0x4   :  { %4377 = vmatprep.subr.bf16.mxu0 %v4376_v3  ;;  %v4574_v12 = vpack.c.bf16 %v57_v10, %v47_v9  ;;  %v76_v13 = vld [vmem:[%s11350_s1 + $0xf8] sm:$0xff]  ;;  %v78_v15 = vld [vmem:[%s11350_s1 + $0x108] sm:$0xff]  ;;  %v65_v18 = vld [vmem:[%s11350_s1 + $0xa0] sm:$0xff] }
   0x5   :  { %v68_v14 = vld [vmem:[%s11350_s1 + $0xb8] sm:$0xff]  ;;  %4573 = vmatprep.subr.bf16.mxu1 %v4572_v7  ;;  %4379 = vmatpush1.bf16.msra.mxu0 %v4378_v8  ;;  %v4380_v16 = vpack.c.bf16 %v76_v13, %v66_v11  ;;  %v75_v19 = vld [vmem:[%s11350_s1 + $0xf0] sm:$0xff]  ;;  %v77_v22 = vld [vmem:[%s11350_s1 + $0x100] sm:$0xff] }
   0x6   :  { %v4576_v17 = vpack.c.bf16 %v78_v15, %v68_v14  ;;  %v67_v20 = vld [vmem:[%s11350_s1 + $0xb0] sm:$0xff]  ;;  %4575 = vmatpush1.bf16.msra.mxu1 %v4574_v12  ;;  %v4382_v21 = vpack.c.bf16 %v75_v19, %v65_v18  ;;  %v86_v23 = vld [vmem:[%s11350_s1 + $0x148] sm:$0xff]  ;;  %v96_v24 = vld [vmem:[%s11350_s1 + $0x198] sm:$0xff] }
   0x7   :  { %4381 = vmatprep.subr.bf16.mxu0 %v4380_v16  ;;  %v4578_v25 = vpack.c.bf16 %v77_v22, %v67_v20  ;;  %v4384_v26 = vpack.c.bf16 %v96_v24, %v86_v23  ;;  %v88_v27 = vld [vmem:[%s11350_s1 + $0x158] sm:$0xff]  ;;  %v98_v28 = vld [vmem:[%s11350_s1 + $0x1a8] sm:$0xff]  ;;  %v85_v29 = vld [vmem:[%s11350_s1 + $0x140] sm:$0xff] }
   0x8   :  { %4577 = vmatprep.subr.bf16.mxu1 %v4576_v17  ;;  %v4580_v30 = vpack.c.bf16 %v98_v28, %v88_v27  ;;  %v95_v31 = vld [vmem:[%s11350_s1 + $0x190] sm:$0xff]  ;;  %v97_v33 = vld [vmem:[%s11350_s1 + $0x1a0] sm:$0xff]  ;;  %v106_v35 = vld [vmem:[%s11350_s1 + $0x1e8] sm:$0xff] }
   0x9   :  { %v87_v32 = vld [vmem:[%s11350_s1 + $0x150] sm:$0xff]  ;;  %4383 = vmatpush1.bf16.msra.mxu0 %v4382_v21  ;;  %v4386_v34 = vpack.c.bf16 %v95_v31, %v85_v29  ;;  %v116_v36 = vld [vmem:[%s11350_s1 + $0x238] sm:$0xff]  ;;  %v118_v40 = vld [vmem:[%s11350_s1 + $0x248] sm:$0xff] }
   0xa   :  { %v108_v37 = vld [vmem:[%s11350_s1 + $0x1f8] sm:$0xff]  ;;  %4579 = vmatpush1.bf16.msra.mxu1 %v4578_v25  ;;  %4385 = vmatprep.subr.bf16.mxu0 %v4384_v26  ;;  %v4582_v38 = vpack.c.bf16 %v97_v33, %v87_v32  ;;  %v4388_v39 = vpack.c.bf16 %v116_v36, %v106_v35  ;;  %v105_v41 = vld [vmem:[%s11350_s1 + $0x1e0] sm:$0xff]  ;;  %v115_v42 = vld [vmem:[%s11350_s1 + $0x230] sm:$0xff] }
   0xb   :  { %4581 = vmatprep.subr.bf16.mxu1 %v4580_v30  ;;  %v4584_v43 = vpack.c.bf16 %v118_v40, %v108_v37  ;;  %v107_v44 = vld [vmem:[%s11350_s1 + $0x1f0] sm:$0xff]  ;;  %v117_v45 = vld [vmem:[%s11350_s1 + $0x240] sm:$0xff]  ;;  %v126_v46 = vld [vmem:[%s11350_s1 + $0x288] sm:$0xff]  ;;  %v4390_v50 = vpack.c.bf16 %v115_v42, %v105_v41 }
   0xc   :  { %v136_v47 = vld [vmem:[%s11350_s1 + $0x2d8] sm:$0xff]  ;;  %v138_v49 = vld [vmem:[%s11350_s1 + $0x2e8] sm:$0xff]  ;;  %v4586_v51 = vpack.c.bf16 %v117_v45, %v107_v44  ;;  %v125_v53 = vld [vmem:[%s11350_s1 + $0x280] sm:$0xff] }
   0xd   :  { %v128_v48 = vld [vmem:[%s11350_s1 + $0x298] sm:$0xff]  ;;  %4387 = vmatpush1.bf16.msra.mxu0 %v4386_v34  ;;  %v4392_v52 = vpack.c.bf16 %v136_v47, %v126_v46  ;;  %v135_v54 = vld [vmem:[%s11350_s1 + $0x2d0] sm:$0xff]  ;;  %v137_v57 = vld [vmem:[%s11350_s1 + $0x2e0] sm:$0xff] }
   0xe   :  { %4583 = vmatpush1.bf16.msra.mxu1 %v4582_v38  ;;  %4389 = vmatprep.subr.bf16.mxu0 %v4388_v39  ;;  %v127_v55 = vld [vmem:[%s11350_s1 + $0x290] sm:$0xff]  ;;  %v4588_v56 = vpack.c.bf16 %v138_v49, %v128_v48  ;;  %v146_v58 = vld [vmem:[%s11350_s1 + $0x328] sm:$0xff]  ;;  %v156_v59 = vld [vmem:[%s11350_s1 + $0x378] sm:$0xff]  ;;  %v4394_v62 = vpack.c.bf16 %v135_v54, %v125_v53 }
   0xf   :  { %4585 = vmatprep.subr.bf16.mxu1 %v4584_v43  ;;  %v148_v60 = vld [vmem:[%s11350_s1 + $0x338] sm:$0xff]  ;;  %v158_v61 = vld [vmem:[%s11350_s1 + $0x388] sm:$0xff]  ;;  %v4590_v63 = vpack.c.bf16 %v137_v57, %v127_v55  ;;  %v4396_v0 = vpack.c.bf16 %v156_v59, %v146_v58  ;;  %v145_v1 = vld [vmem:[%s11350_s1 + $0x320] sm:$0xff] }
  0x10   :  { %v155_v2 = vld [vmem:[%s11350_s1 + $0x370] sm:$0xff]  ;;  %v4592_v4 = vpack.c.bf16 %v158_v61, %v148_v60  ;;  %v157_v5 = vld [vmem:[%s11350_s1 + $0x380] sm:$0xff]  ;;  %v166_v6 = vld [vmem:[%s11350_s1 + $0x3c8] sm:$0xff] }
  0x11   :  { %4391 = vmatpush1.bf16.msra.mxu0 %v4390_v50  ;;  %v147_v3 = vld [vmem:[%s11350_s1 + $0x330] sm:$0xff]  ;;  %v176_v7 = vld [vmem:[%s11350_s1 + $0x418] sm:$0xff]  ;;  %v178_v9 = vld [vmem:[%s11350_s1 + $0x428] sm:$0xff]  ;;  %v4398_v10 = vpack.c.bf16 %v155_v2, %v145_v1 }
  0x12   :  { %4587 = vmatpush1.bf16.msra.mxu1 %v4586_v51  ;;  %4393 = vmatprep.subr.bf16.mxu0 %v4392_v52  ;;  %v168_v8 = vld [vmem:[%s11350_s1 + $0x3d8] sm:$0xff]  ;;  %v4594_v11 = vpack.c.bf16 %v157_v5, %v147_v3  ;;  %v4400_v12 = vpack.c.bf16 %v176_v7, %v166_v6  ;;  %v165_v13 = vld [vmem:[%s11350_s1 + $0x3c0] sm:$0xff]  ;;  %v175_v14 = vld [vmem:[%s11350_s1 + $0x410] sm:$0xff] }
  0x13   :  { %4589 = vmatprep.subr.bf16.mxu1 %v4588_v56  ;;  %v167_v15 = vld [vmem:[%s11350_s1 + $0x3d0] sm:$0xff]  ;;  %v4596_v16 = vpack.c.bf16 %v178_v9, %v168_v8  ;;  %v177_v17 = vld [vmem:[%s11350_s1 + $0x420] sm:$0xff]  ;;  %v186_v18 = vld [vmem:[%s11350_s1 + $0x468] sm:$0xff]  ;;  %v4402_v22 = vpack.c.bf16 %v175_v14, %v165_v13 }
  0x14   :  { %v196_v19 = vld [vmem:[%s11350_s1 + $0x4b8] sm:$0xff]  ;;  %v198_v21 = vld [vmem:[%s11350_s1 + $0x4c8] sm:$0xff]  ;;  %v4598_v23 = vpack.c.bf16 %v177_v17, %v167_v15  ;;  %v185_v25 = vld [vmem:[%s11350_s1 + $0x460] sm:$0xff] }
  0x15   :  { %4395 = vmatpush1.bf16.msra.mxu0 %v4394_v62  ;;  %v188_v20 = vld [vmem:[%s11350_s1 + $0x478] sm:$0xff]  ;;  %v4404_v24 = vpack.c.bf16 %v196_v19, %v186_v18  ;;  %v195_v26 = vld [vmem:[%s11350_s1 + $0x4b0] sm:$0xff]  ;;  %v197_v29 = vld [vmem:[%s11350_s1 + $0x4c0] sm:$0xff] }
  0x16   :  { %4591 = vmatpush1.bf16.msra.mxu1 %v4590_v63  ;;  %4397 = vmatprep.subr.bf16.mxu0 %v4396_v0  ;;  %v187_v27 = vld [vmem:[%s11350_s1 + $0x470] sm:$0xff]  ;;  %v4600_v28 = vpack.c.bf16 %v198_v21, %v188_v20  ;;  %v206_v30 = vld [vmem:[%s11350_s1 + $0x508] sm:$0xff]  ;;  %v216_v31 = vld [vmem:[%s11350_s1 + $0x558] sm:$0xff]  ;;  %v4406_v34 = vpack.c.bf16 %v195_v26, %v185_v25 }
  0x17   :  { %4593 = vmatprep.subr.bf16.mxu1 %v4592_v4  ;;  %v208_v32 = vld [vmem:[%s11350_s1 + $0x518] sm:$0xff]  ;;  %v218_v33 = vld [vmem:[%s11350_s1 + $0x568] sm:$0xff]  ;;  %v4602_v35 = vpack.c.bf16 %v197_v29, %v187_v27  ;;  %v4408_v36 = vpack.c.bf16 %v216_v31, %v206_v30  ;;  %v205_v37 = vld [vmem:[%s11350_s1 + $0x500] sm:$0xff] }
  0x18   :  { %v215_v38 = vld [vmem:[%s11350_s1 + $0x550] sm:$0xff]  ;;  %v4604_v40 = vpack.c.bf16 %v218_v33, %v208_v32  ;;  %v217_v41 = vld [vmem:[%s11350_s1 + $0x560] sm:$0xff]  ;;  %v226_v42 = vld [vmem:[%s11350_s1 + $0x5a8] sm:$0xff] }
  0x19   :  { %4399 = vmatpush1.bf16.msra.mxu0 %v4398_v10  ;;  %v207_v39 = vld [vmem:[%s11350_s1 + $0x510] sm:$0xff]  ;;  %v236_v43 = vld [vmem:[%s11350_s1 + $0x5f8] sm:$0xff]  ;;  %v238_v45 = vld [vmem:[%s11350_s1 + $0x608] sm:$0xff]  ;;  %v4410_v46 = vpack.c.bf16 %v215_v38, %v205_v37 }
  0x1a   :  { %4595 = vmatpush1.bf16.msra.mxu1 %v4594_v11  ;;  %4401 = vmatprep.subr.bf16.mxu0 %v4400_v12  ;;  %v228_v44 = vld [vmem:[%s11350_s1 + $0x5b8] sm:$0xff]  ;;  %v4606_v47 = vpack.c.bf16 %v217_v41, %v207_v39  ;;  %v4412_v48 = vpack.c.bf16 %v236_v43, %v226_v42  ;;  %v225_v49 = vld [vmem:[%s11350_s1 + $0x5a0] sm:$0xff]  ;;  %v235_v50 = vld [vmem:[%s11350_s1 + $0x5f0] sm:$0xff] }
  0x1b   :  { %4597 = vmatprep.subr.bf16.mxu1 %v4596_v16  ;;  %v227_v51 = vld [vmem:[%s11350_s1 + $0x5b0] sm:$0xff]  ;;  %v4608_v52 = vpack.c.bf16 %v238_v45, %v228_v44  ;;  %v237_v53 = vld [vmem:[%s11350_s1 + $0x600] sm:$0xff]  ;;  %v246_v54 = vld [vmem:[%s11350_s1 + $0x648] sm:$0xff]  ;;  %v4414_v58 = vpack.c.bf16 %v235_v50, %v225_v49 }
  0x1c   :  { %v256_v55 = vld [vmem:[%s11350_s1 + $0x698] sm:$0xff]  ;;  %v258_v57 = vld [vmem:[%s11350_s1 + $0x6a8] sm:$0xff]  ;;  %v4610_v59 = vpack.c.bf16 %v237_v53, %v227_v51  ;;  %v245_v61 = vld [vmem:[%s11350_s1 + $0x640] sm:$0xff] }
  0x1d   :  { %4403 = vmatpush1.bf16.msra.mxu0 %v4402_v22  ;;  %v248_v56 = vld [vmem:[%s11350_s1 + $0x658] sm:$0xff]  ;;  %v4416_v60 = vpack.c.bf16 %v256_v55, %v246_v54  ;;  %v255_v62 = vld [vmem:[%s11350_s1 + $0x690] sm:$0xff]  ;;  %v257_v1 = vld [vmem:[%s11350_s1 + $0x6a0] sm:$0xff] }
  0x1e   :  { %4599 = vmatpush1.bf16.msra.mxu1 %v4598_v23  ;;  %4405 = vmatprep.subr.bf16.mxu0 %v4404_v24  ;;  %v247_v63 = vld [vmem:[%s11350_s1 + $0x650] sm:$0xff]  ;;  %v4612_v0 = vpack.c.bf16 %v258_v57, %v248_v56  ;;  %v266_v2 = vld [vmem:[%s11350_s1 + $0x6e8] sm:$0xff]  ;;  %v276_v3 = vld [vmem:[%s11350_s1 + $0x738] sm:$0xff]  ;;  %v4418_v6 = vpack.c.bf16 %v255_v62, %v245_v61 }
  0x1f   :  { %4601 = vmatprep.subr.bf16.mxu1 %v4600_v28  ;;  %v268_v4 = vld [vmem:[%s11350_s1 + $0x6f8] sm:$0xff]  ;;  %v278_v5 = vld [vmem:[%s11350_s1 + $0x748] sm:$0xff]  ;;  %v265_v7 = vld [vmem:[%s11350_s1 + $0x6e0] sm:$0xff]  ;;  %v4614_v8 = vpack.c.bf16 %v257_v1, %v247_v63  ;;  %v4420_v9 = vpack.c.bf16 %v276_v3, %v266_v2 }
  0x20   :  { %v275_v10 = vld [vmem:[%s11350_s1 + $0x730] sm:$0xff]  ;;  %v277_v12 = vld [vmem:[%s11350_s1 + $0x740] sm:$0xff]  ;;  %v4616_v13 = vpack.c.bf16 %v278_v5, %v268_v4  ;;  %v286_v14 = vld [vmem:[%s11350_s1 + $0x788] sm:$0xff] }
  0x21   :  { %4407 = vmatpush1.bf16.msra.mxu0 %v4406_v34  ;;  %v267_v11 = vld [vmem:[%s11350_s1 + $0x6f0] sm:$0xff]  ;;  %v296_v15 = vld [vmem:[%s11350_s1 + $0x7d8] sm:$0xff]  ;;  %v39_v16 = vld [vmem:[%s11351_s0 + $0x8] sm:$0xff]  ;;  %v4422_v19 = vpack.c.bf16 %v275_v10, %v265_v7 }
  0x22   :  { %4603 = vmatpush1.bf16.msra.mxu1 %v4602_v35  ;;  %4409 = vmatprep.subr.bf16.mxu0 %v4408_v36  ;;  %v288_v17 = vld [vmem:[%s11350_s1 + $0x798] sm:$0xff]  ;;  %v298_v18 = vld [vmem:[%s11350_s1 + $0x7e8] sm:$0xff]  ;;  %v4618_v20 = vpack.c.bf16 %v277_v12, %v267_v11  ;;  %v4424_v21 = vpack.c.bf16 %v296_v15, %v286_v14  ;;  %v285_v22 = vld [vmem:[%s11350_s1 + $0x780] sm:$0xff] }
  0x23   :  { %4605 = vmatprep.subr.bf16.mxu1 %v4604_v40  ;;  %1147 = vmatprep.mubr.f32.mxu0 %v39_v16  ;;  %v295_v23 = vld [vmem:[%s11350_s1 + $0x7d0] sm:$0xff]  ;;  %v4620_v25 = vpack.c.bf16 %v298_v18, %v288_v17  ;;  %v297_v26 = vld [vmem:[%s11350_s1 + $0x7e0] sm:$0xff]  ;;  %v306_v27 = vld [vmem:[%s11350_s1 + $0x828] sm:$0xff] }
  0x24   :  { %1431 = vmatprep.mubr.f32.mxu1 %v39_v16  ;;  %v287_v24 = vld [vmem:[%s11350_s1 + $0x790] sm:$0xff]  ;;  %v316_v28 = vld [vmem:[%s11350_s1 + $0x878] sm:$0xff]  ;;  %v318_v30 = vld [vmem:[%s11350_s1 + $0x888] sm:$0xff]  ;;  %v4426_v31 = vpack.c.bf16 %v295_v23, %v285_v22 }
  0x25   :  { %4411 = vmatpush1.bf16.msra.mxu0 %v4410_v46  ;;  %v308_v29 = vld [vmem:[%s11350_s1 + $0x838] sm:$0xff]  ;;  %v4622_v32 = vpack.c.bf16 %v297_v26, %v287_v24  ;;  %v4428_v33 = vpack.c.bf16 %v316_v28, %v306_v27  ;;  %v305_v34 = vld [vmem:[%s11350_s1 + $0x820] sm:$0xff]  ;;  %v315_v35 = vld [vmem:[%s11350_s1 + $0x870] sm:$0xff] }
  0x26   :  { %4607 = vmatpush1.bf16.msra.mxu1 %v4606_v47  ;;  %4413 = vmatprep.subr.bf16.mxu0 %v4412_v48  ;;  %v307_v36 = vld [vmem:[%s11350_s1 + $0x830] sm:$0xff]  ;;  %v4624_v37 = vpack.c.bf16 %v318_v30, %v308_v29  ;;  %v317_v38 = vld [vmem:[%s11350_s1 + $0x880] sm:$0xff]  ;;  %v326_v39 = vld [vmem:[%s11350_s1 + $0x8c8] sm:$0xff]  ;;  %v4430_v43 = vpack.c.bf16 %v315_v35, %v305_v34 }
  0x27   :  { %4609 = vmatprep.subr.bf16.mxu1 %v4608_v52  ;;  %v336_v40 = vld [vmem:[%s11350_s1 + $0x918] sm:$0xff]  ;;  %v338_v42 = vld [vmem:[%s11350_s1 + $0x928] sm:$0xff]  ;;  %v4626_v44 = vpack.c.bf16 %v317_v38, %v307_v36  ;;  %v325_v46 = vld [vmem:[%s11350_s1 + $0x8c0] sm:$0xff] }
  0x28   :  { %v328_v41 = vld [vmem:[%s11350_s1 + $0x8d8] sm:$0xff]  ;;  %v4432_v45 = vpack.c.bf16 %v336_v40, %v326_v39  ;;  %v335_v47 = vld [vmem:[%s11350_s1 + $0x910] sm:$0xff]  ;;  %v337_v50 = vld [vmem:[%s11350_s1 + $0x920] sm:$0xff] }
  0x29   :  { %4415 = vmatpush1.bf16.msra.mxu0 %v4414_v58  ;;  %v327_v48 = vld [vmem:[%s11350_s1 + $0x8d0] sm:$0xff]  ;;  %v4628_v49 = vpack.c.bf16 %v338_v42, %v328_v41  ;;  %v346_v51 = vld [vmem:[%s11350_s1 + $0x968] sm:$0xff]  ;;  %v356_v52 = vld [vmem:[%s11350_s1 + $0x9b8] sm:$0xff]  ;;  %v4434_v55 = vpack.c.bf16 %v335_v47, %v325_v46 }
  0x2a   :  { %4611 = vmatpush1.bf16.msra.mxu1 %v4610_v59  ;;  %4417 = vmatprep.subr.bf16.mxu0 %v4416_v60  ;;  %v348_v53 = vld [vmem:[%s11350_s1 + $0x978] sm:$0xff]  ;;  %v358_v54 = vld [vmem:[%s11350_s1 + $0x9c8] sm:$0xff]  ;;  %v4630_v56 = vpack.c.bf16 %v337_v50, %v327_v48  ;;  %v4436_v57 = vpack.c.bf16 %v356_v52, %v346_v51  ;;  %v345_v58 = vld [vmem:[%s11350_s1 + $0x960] sm:$0xff] }
  0x2b   :  { %4613 = vmatprep.subr.bf16.mxu1 %v4612_v0  ;;  %v355_v59 = vld [vmem:[%s11350_s1 + $0x9b0] sm:$0xff]  ;;  %v4632_v61 = vpack.c.bf16 %v358_v54, %v348_v53  ;;  %v357_v62 = vld [vmem:[%s11350_s1 + $0x9c0] sm:$0xff]  ;;  %v366_v63 = vld [vmem:[%s11350_s1 + $0xa08] sm:$0xff] }
  0x2c   :  { %v347_v60 = vld [vmem:[%s11350_s1 + $0x970] sm:$0xff]  ;;  %v376_v0 = vld [vmem:[%s11350_s1 + $0xa58] sm:$0xff]  ;;  %v378_v2 = vld [vmem:[%s11350_s1 + $0xa68] sm:$0xff]  ;;  %v4438_v3 = vpack.c.bf16 %v355_v59, %v345_v58 }
  0x2d   :  { %4419 = vmatpush1.bf16.msra.mxu0 %v4418_v6  ;;  %v368_v1 = vld [vmem:[%s11350_s1 + $0xa18] sm:$0xff]  ;;  %v4634_v4 = vpack.c.bf16 %v357_v62, %v347_v60  ;;  %v4440_v5 = vpack.c.bf16 %v376_v0, %v366_v63  ;;  %v365_v6 = vld [vmem:[%s11350_s1 + $0xa00] sm:$0xff]  ;;  %v375_v7 = vld [vmem:[%s11350_s1 + $0xa50] sm:$0xff] }
  0x2e   :  { %4615 = vmatpush1.bf16.msra.mxu1 %v4614_v8  ;;  %4421 = vmatprep.subr.bf16.mxu0 %v4420_v9  ;;  %v367_v8 = vld [vmem:[%s11350_s1 + $0xa10] sm:$0xff]  ;;  %v4636_v9 = vpack.c.bf16 %v378_v2, %v368_v1  ;;  %v377_v10 = vld [vmem:[%s11350_s1 + $0xa60] sm:$0xff]  ;;  %v386_v11 = vld [vmem:[%s11350_s1 + $0xaa8] sm:$0xff]  ;;  %v4442_v16 = vpack.c.bf16 %v375_v7, %v365_v6 }
  0x2f   :  { %4617 = vmatprep.subr.bf16.mxu1 %v4616_v13  ;;  %v396_v12 = vld [vmem:[%s11350_s1 + $0xaf8] sm:$0xff]  ;;  %v398_v14 = vld [vmem:[%s11350_s1 + $0xb08] sm:$0xff]  ;;  %v38_v15 = vld [vmem:[%s11351_s0] sm:$0xff]  ;;  %v4638_v17 = vpack.c.bf16 %v377_v10, %v367_v8 }
  0x30   :  { %v388_v13 = vld [vmem:[%s11350_s1 + $0xab8] sm:$0xff]  ;;  %v4444_v18 = vpack.c.bf16 %v396_v12, %v386_v11  ;;  %v397_v23 = vld [vmem:[%s11350_s1 + $0xb00] sm:$0xff]  ;;  %v406_v24 = vld [vmem:[%s11350_s1 + $0xb48] sm:$0xff] }
  0x31   :  { %4423 = vmatpush1.bf16.msra.mxu0 %v4422_v19  ;;  %v385_v19 = vld [vmem:[%s11350_s1 + $0xaa0] sm:$0xff]  ;;  %v4640_v22 = vpack.c.bf16 %v398_v14, %v388_v13  ;;  %v408_v26 = vld [vmem:[%s11350_s1 + $0xb58] sm:$0xff]  ;;  %v418_v27 = vld [vmem:[%s11350_s1 + $0xba8] sm:$0xff] }
  0x32   :  { %4619 = vmatpush1.bf16.msra.mxu1 %v4618_v20  ;;  %4425 = vmatprep.subr.bf16.mxu0 %v4424_v21  ;;  %v395_v20 = vld [vmem:[%s11350_s1 + $0xaf0] sm:$0xff]  ;;  %v4644_v34 = vpack.c.bf16 %v418_v27, %v408_v26  ;;  %v417_v35 = vld [vmem:[%s11350_s1 + $0xba0] sm:$0xff]  ;;  %v426_v36 = vld [vmem:[%s11350_s1 + $0xbe8] sm:$0xff] }
  0x33   :  { %4621 = vmatprep.subr.bf16.mxu1 %v4620_v25  ;;  %v387_v21 = vld [vmem:[%s11350_s1 + $0xab0] sm:$0xff]  ;;  %v416_v25 = vld [vmem:[%s11350_s1 + $0xb98] sm:$0xff]  ;;  %v4446_v28 = vpack.c.bf16 %v395_v20, %v385_v19  ;;  %v438_v39 = vld [vmem:[%s11350_s1 + $0xc48] sm:$0xff] }
  0x34   :  { %v4642_v29 = vpack.c.bf16 %v397_v23, %v387_v21  ;;  %v4448_v30 = vpack.c.bf16 %v416_v25, %v406_v24  ;;  %v428_v38 = vld [vmem:[%s11350_s1 + $0xbf8] sm:$0xff]  ;;  %v437_v47 = vld [vmem:[%s11350_s1 + $0xc40] sm:$0xff]  ;;  %v446_v48 = vld [vmem:[%s11350_s1 + $0xc88] sm:$0xff] }
  0x35   :  { %4427 = vmatpush1.bf16.msra.mxu0 %v4426_v31  ;;  %v405_v31 = vld [vmem:[%s11350_s1 + $0xb40] sm:$0xff]  ;;  %v4648_v46 = vpack.c.bf16 %v438_v39, %v428_v38  ;;  %v448_v50 = vld [vmem:[%s11350_s1 + $0xc98] sm:$0xff]  ;;  %v458_v51 = vld [vmem:[%s11350_s1 + $0xce8] sm:$0xff] }
  0x36   :  { %4623 = vmatpush1.bf16.msra.mxu1 %v4622_v32  ;;  %4429 = vmatprep.subr.bf16.mxu0 %v4428_v33  ;;  %v415_v32 = vld [vmem:[%s11350_s1 + $0xb90] sm:$0xff]  ;;  %v4652_v58 = vpack.c.bf16 %v458_v51, %v448_v50  ;;  %v457_v59 = vld [vmem:[%s11350_s1 + $0xce0] sm:$0xff]  ;;  %v466_v60 = vld [vmem:[%s11350_s1 + $0xd28] sm:$0xff] }
  0x37   :  { %4625 = vmatprep.subr.bf16.mxu1 %v4624_v37  ;;  %v407_v33 = vld [vmem:[%s11350_s1 + $0xb50] sm:$0xff]  ;;  %v436_v37 = vld [vmem:[%s11350_s1 + $0xc38] sm:$0xff]  ;;  %v4450_v40 = vpack.c.bf16 %v415_v32, %v405_v31  ;;  %v478_v63 = vld [vmem:[%s11350_s1 + $0xd88] sm:$0xff] }
  0x38   :  { %v4646_v41 = vpack.c.bf16 %v417_v35, %v407_v33  ;;  %v4452_v42 = vpack.c.bf16 %v436_v37, %v426_v36  ;;  %v468_v62 = vld [vmem:[%s11350_s1 + $0xd38] sm:$0xff]  ;;  %v477_v7 = vld [vmem:[%s11350_s1 + $0xd80] sm:$0xff]  ;;  %v486_v8 = vld [vmem:[%s11350_s1 + $0xdc8] sm:$0xff] }
  0x39   :  { %4431 = vmatpush1.bf16.msra.mxu0 %v4430_v43  ;;  %v425_v43 = vld [vmem:[%s11350_s1 + $0xbe0] sm:$0xff]  ;;  %v4656_v6 = vpack.c.bf16 %v478_v63, %v468_v62  ;;  %v488_v10 = vld [vmem:[%s11350_s1 + $0xdd8] sm:$0xff]  ;;  %v498_v11 = vld [vmem:[%s11350_s1 + $0xe28] sm:$0xff] }
  0x3a   :  { %4627 = vmatpush1.bf16.msra.mxu1 %v4626_v44  ;;  %4433 = vmatprep.subr.bf16.mxu0 %v4432_v45  ;;  %v435_v44 = vld [vmem:[%s11350_s1 + $0xc30] sm:$0xff]  ;;  %v485_v13 = vld [vmem:[%s11350_s1 + $0xdc0] sm:$0xff]  ;;  %v4660_v19 = vpack.c.bf16 %v498_v11, %v488_v10  ;;  %v506_v20 = vld [vmem:[%s11350_s1 + $0xe68] sm:$0xff] }
  0x3b   :  { %4629 = vmatprep.subr.bf16.mxu1 %v4628_v49  ;;  %v427_v45 = vld [vmem:[%s11350_s1 + $0xbf0] sm:$0xff]  ;;  %v456_v49 = vld [vmem:[%s11350_s1 + $0xcd8] sm:$0xff]  ;;  %v4454_v52 = vpack.c.bf16 %v435_v44, %v425_v43  ;;  %v518_v24 = vld [vmem:[%s11350_s1 + $0xec8] sm:$0xff] }
  0x3c   :  { %v4650_v53 = vpack.c.bf16 %v437_v47, %v427_v45  ;;  %v4456_v54 = vpack.c.bf16 %v456_v49, %v446_v48  ;;  %v516_v21 = vld [vmem:[%s11350_s1 + $0xeb8] sm:$0xff]  ;;  %v517_v32 = vld [vmem:[%s11350_s1 + $0xec0] sm:$0xff]  ;;  %v526_v33 = vld [vmem:[%s11350_s1 + $0xf08] sm:$0xff] }
  0x3d   :  { %4435 = vmatpush1.bf16.msra.mxu0 %v4434_v55  ;;  %v445_v55 = vld [vmem:[%s11350_s1 + $0xc80] sm:$0xff]  ;;  %v508_v23 = vld [vmem:[%s11350_s1 + $0xe78] sm:$0xff]  ;;  %v4468_v27 = vpack.c.bf16 %v516_v21, %v506_v20  ;;  %v538_v36 = vld [vmem:[%s11350_s1 + $0xf68] sm:$0xff] }
  0x3e   :  { %4631 = vmatpush1.bf16.msra.mxu1 %v4630_v56  ;;  %4437 = vmatprep.subr.bf16.mxu0 %v4436_v57  ;;  %v455_v56 = vld [vmem:[%s11350_s1 + $0xcd0] sm:$0xff]  ;;  %v4664_v31 = vpack.c.bf16 %v518_v24, %v508_v23  ;;  %v528_v35 = vld [vmem:[%s11350_s1 + $0xf18] sm:$0xff]  ;;  %v537_v44 = vld [vmem:[%s11350_s1 + $0xf60] sm:$0xff] }
  0x3f   :  { %4633 = vmatprep.subr.bf16.mxu1 %v4632_v61  ;;  %v447_v57 = vld [vmem:[%s11350_s1 + $0xc90] sm:$0xff]  ;;  %v476_v61 = vld [vmem:[%s11350_s1 + $0xd78] sm:$0xff]  ;;  %v4458_v0 = vpack.c.bf16 %v455_v56, %v445_v55  ;;  %v4668_v43 = vpack.c.bf16 %v538_v36, %v528_v35  ;;  %v546_v45 = vld [vmem:[%s11350_s1 + $0xfa8] sm:$0xff] }
  0x40   :  { %v4654_v1 = vpack.c.bf16 %v457_v59, %v447_v57  ;;  %v4460_v2 = vpack.c.bf16 %v476_v61, %v466_v60  ;;  %v548_v47 = vld [vmem:[%s11350_s1 + $0xfb8] sm:$0xff]  ;;  %v558_v48 = vld [vmem:[%s11350_s1 + $0x1008] sm:$0xff]  ;;  %v557_v56 = vld [vmem:[%s11350_s1 + $0x1000] sm:$0xff] }
  0x41   :  { %4439 = vmatpush1.bf16.msra.mxu0 %v4438_v3  ;;  %v465_v3 = vld [vmem:[%s11350_s1 + $0xd20] sm:$0xff]  ;;  %v4672_v55 = vpack.c.bf16 %v558_v48, %v548_v47  ;;  %v566_v57 = vld [vmem:[%s11350_s1 + $0x1048] sm:$0xff]  ;;  %v568_v59 = vld [vmem:[%s11350_s1 + $0x1058] sm:$0xff] }
  0x42   :  { %4635 = vmatpush1.bf16.msra.mxu1 %v4634_v4  ;;  %4441 = vmatprep.subr.bf16.mxu0 %v4440_v5  ;;  %v475_v4 = vld [vmem:[%s11350_s1 + $0xd70] sm:$0xff]  ;;  %v578_v60 = vld [vmem:[%s11350_s1 + $0x10a8] sm:$0xff]  ;;  %v605_v24 = vld [vmem:[%s11350_s1 + $0x1180] sm:$0xff] }
  0x43   :  { %4637 = vmatprep.subr.bf16.mxu1 %v4636_v9  ;;  %v467_v5 = vld [vmem:[%s11350_s1 + $0xd30] sm:$0xff]  ;;  %v496_v9 = vld [vmem:[%s11350_s1 + $0xe18] sm:$0xff]  ;;  %v4462_v12 = vpack.c.bf16 %v475_v4, %v465_v3  ;;  %v4676_v3 = vpack.c.bf16 %v578_v60, %v568_v59  ;;  %v577_v4 = vld [vmem:[%s11350_s1 + $0x10a0] sm:$0xff] }
  0x44   :  { %1148 = vmatmul.mubr.f32.vlgmr.msra.gmra.mrb[0].mxu0 %v38_v15  ;;  %v4658_v14 = vpack.c.bf16 %v477_v7, %v467_v5  ;;  %v586_v5 = vld [vmem:[%s11350_s1 + $0x10e8] sm:$0xff]  ;;  %v588_v7 = vld [vmem:[%s11350_s1 + $0x10f8] sm:$0xff]  ;;  %v625_v36 = vld [vmem:[%s11350_s1 + $0x1220] sm:$0xff] }
  0x45   :  { %4443 = vmatpush1.bf16.msra.mxu0 %v4442_v16  ;;  %1432 = vmatmul.mubr.f32.vlgmr.msra.gmra.mrb[0].mxu1 %v38_v15  ;;  %v4464_v15 = vpack.c.bf16 %v496_v9, %v486_v8  ;;  %v495_v16 = vld [vmem:[%s11350_s1 + $0xe10] sm:$0xff]  ;;  %v598_v8 = vld [vmem:[%s11350_s1 + $0x1148] sm:$0xff]  ;;  %v645_v48 = vld [vmem:[%s11350_s1 + $0x12c0] sm:$0xff] }
  0x46   :  { %4639 = vmatpush1.bf16.msra.mxu1 %v4638_v17  ;;  %4445 = vmatprep.subr.bf16.mxu0 %v4444_v18  ;;  %v487_v17 = vld [vmem:[%s11350_s1 + $0xdd0] sm:$0xff]  ;;  %v497_v18 = vld [vmem:[%s11350_s1 + $0xe20] sm:$0xff]  ;;  %v4466_v25 = vpack.c.bf16 %v495_v16, %v485_v13  ;;  %v618_v20 = vld [vmem:[%s11350_s1 + $0x11e8] sm:$0xff] }
  0x47   :  { %4641 = vmatprep.subr.bf16.mxu1 %v4640_v22  ;;  %v41_v22 = vld [vmem:[%s11351_s0 + $0x18] sm:$0xff]  ;;  %v4662_v26 = vpack.c.bf16 %v497_v18, %v487_v17  ;;  %v595_v13 = vld [vmem:[%s11350_s1 + $0x1130] sm:$0xff]  ;;  %v597_v16 = vld [vmem:[%s11350_s1 + $0x1140] sm:$0xff] }
  0x48   :  { %1218 = vmatprep.mubr.f32.mxu0 %v41_v22  ;;  %1502 = vmatprep.mubr.f32.mxu1 %v41_v22  ;;  %v606_v17 = vld [vmem:[%s11350_s1 + $0x1188] sm:$0xff]  ;;  %v616_v18 = vld [vmem:[%s11350_s1 + $0x11d8] sm:$0xff]  ;;  %v665_v60 = vld [vmem:[%s11350_s1 + $0x1360] sm:$0xff] }
  0x49   :  { %4447 = vmatpush1.bf16.msra.mxu0 %v4446_v28  ;;  %v505_v28 = vld [vmem:[%s11350_s1 + $0xe60] sm:$0xff]  ;;  %v4488_v23 = vpack.c.bf16 %v616_v18, %v606_v17  ;;  %v40_v17 = vld [vmem:[%s11351_s0 + $0x10] sm:$0xff] }
  0x4a   :  { %4643 = vmatpush1.bf16.msra.mxu1 %v4642_v29  ;;  %4449 = vmatprep.subr.bf16.mxu0 %v4448_v30  ;;  %v515_v29 = vld [vmem:[%s11350_s1 + $0xeb0] sm:$0xff] }
  0x4b   :  { %4645 = vmatprep.subr.bf16.mxu1 %v4644_v34  ;;  %v507_v30 = vld [vmem:[%s11350_s1 + $0xe70] sm:$0xff]  ;;  %v536_v34 = vld [vmem:[%s11350_s1 + $0xf58] sm:$0xff]  ;;  %v4470_v37 = vpack.c.bf16 %v515_v29, %v505_v28  ;;  %v617_v28 = vld [vmem:[%s11350_s1 + $0x11e0] sm:$0xff] }
  0x4c   :  { %v4666_v38 = vpack.c.bf16 %v517_v32, %v507_v30  ;;  %v4472_v39 = vpack.c.bf16 %v536_v34, %v526_v33  ;;  %v626_v29 = vld [vmem:[%s11350_s1 + $0x1228] sm:$0xff]  ;;  %v636_v30 = vld [vmem:[%s11350_s1 + $0x1278] sm:$0xff] }
  0x4d   :  { %4451 = vmatpush1.bf16.msra.mxu0 %v4450_v40  ;;  %v525_v40 = vld [vmem:[%s11350_s1 + $0xf00] sm:$0xff]  ;;  %v638_v32 = vld [vmem:[%s11350_s1 + $0x1288] sm:$0xff]  ;;  %v4492_v35 = vpack.c.bf16 %v636_v30, %v626_v29 }
  0x4e   :  { %4647 = vmatpush1.bf16.msra.mxu1 %v4646_v41  ;;  %4453 = vmatprep.subr.bf16.mxu0 %v4452_v42  ;;  %v535_v41 = vld [vmem:[%s11350_s1 + $0xf50] sm:$0xff]  ;;  %v738_v29 = vld [vmem:[%s11350_s1 + $0x15a8] sm:$0xff] }
  0x4f   :  { %4649 = vmatprep.subr.bf16.mxu1 %v4648_v46  ;;  %v527_v42 = vld [vmem:[%s11350_s1 + $0xf10] sm:$0xff]  ;;  %v556_v46 = vld [vmem:[%s11350_s1 + $0xff8] sm:$0xff]  ;;  %v4474_v49 = vpack.c.bf16 %v535_v41, %v525_v40  ;;  %v637_v40 = vld [vmem:[%s11350_s1 + $0x1280] sm:$0xff] }
  0x50   :  { %v4670_v50 = vpack.c.bf16 %v537_v44, %v527_v42  ;;  %v4476_v51 = vpack.c.bf16 %v556_v46, %v546_v45  ;;  %v646_v41 = vld [vmem:[%s11350_s1 + $0x12c8] sm:$0xff]  ;;  %v656_v42 = vld [vmem:[%s11350_s1 + $0x1318] sm:$0xff] }
  0x51   :  { %4455 = vmatpush1.bf16.msra.mxu0 %v4454_v52  ;;  %v545_v52 = vld [vmem:[%s11350_s1 + $0xfa0] sm:$0xff]  ;;  %v658_v44 = vld [vmem:[%s11350_s1 + $0x1328] sm:$0xff]  ;;  %v4496_v47 = vpack.c.bf16 %v656_v42, %v646_v41  ;;  %v748_v41 = vld [vmem:[%s11350_s1 + $0x15f8] sm:$0xff] }
  0x52   :  { %4651 = vmatpush1.bf16.msra.mxu1 %v4650_v53  ;;  %4457 = vmatprep.subr.bf16.mxu0 %v4456_v54  ;;  %v555_v53 = vld [vmem:[%s11350_s1 + $0xff0] sm:$0xff]  ;;  %v43_v30 = vld [vmem:[%s11351_s0 + $0x28] sm:$0xff] }
  0x53   :  { %4653 = vmatprep.subr.bf16.mxu1 %v4652_v58  ;;  %v547_v54 = vld [vmem:[%s11350_s1 + $0xfb0] sm:$0xff]  ;;  %v576_v58 = vld [vmem:[%s11350_s1 + $0x1098] sm:$0xff]  ;;  %v4478_v61 = vpack.c.bf16 %v555_v53, %v545_v52  ;;  %v657_v52 = vld [vmem:[%s11350_s1 + $0x1320] sm:$0xff] }
  0x54   :  { %v4674_v62 = vpack.c.bf16 %v557_v56, %v547_v54  ;;  %v4480_v63 = vpack.c.bf16 %v576_v58, %v566_v57  ;;  %v666_v53 = vld [vmem:[%s11350_s1 + $0x1368] sm:$0xff]  ;;  %v676_v54 = vld [vmem:[%s11350_s1 + $0x13b8] sm:$0xff] }
  0x55   :  { %4459 = vmatpush1.bf16.msra.mxu0 %v4458_v0  ;;  %v565_v0 = vld [vmem:[%s11350_s1 + $0x1040] sm:$0xff]  ;;  %v678_v56 = vld [vmem:[%s11350_s1 + $0x13c8] sm:$0xff]  ;;  %v4500_v59 = vpack.c.bf16 %v676_v54, %v666_v53  ;;  %v768_v53 = vld [vmem:[%s11350_s1 + $0x1698] sm:$0xff] }
  0x56   :  { %4655 = vmatpush1.bf16.msra.mxu1 %v4654_v1  ;;  %4461 = vmatprep.subr.bf16.mxu0 %v4460_v2  ;;  %v575_v1 = vld [vmem:[%s11350_s1 + $0x1090] sm:$0xff]  ;;  %v758_v42 = vld [vmem:[%s11350_s1 + $0x1648] sm:$0xff] }
  0x57   :  { %4657 = vmatprep.subr.bf16.mxu1 %v4656_v6  ;;  %v567_v2 = vld [vmem:[%s11350_s1 + $0x1050] sm:$0xff]  ;;  %v596_v6 = vld [vmem:[%s11350_s1 + $0x1138] sm:$0xff]  ;;  %v4482_v9 = vpack.c.bf16 %v575_v1, %v565_v0  ;;  %v677_v0 = vld [vmem:[%s11350_s1 + $0x13c0] sm:$0xff] }
  0x58   :  { %v4678_v10 = vpack.c.bf16 %v577_v4, %v567_v2  ;;  %v4484_v11 = vpack.c.bf16 %v596_v6, %v586_v5  ;;  %v686_v1 = vld [vmem:[%s11350_s1 + $0x1408] sm:$0xff]  ;;  %v696_v2 = vld [vmem:[%s11350_s1 + $0x1458] sm:$0xff] }
  0x59   :  { %4463 = vmatpush1.bf16.msra.mxu0 %v4462_v12  ;;  %v585_v12 = vld [vmem:[%s11350_s1 + $0x10e0] sm:$0xff]  ;;  %v698_v4 = vld [vmem:[%s11350_s1 + $0x1468] sm:$0xff] }
  0x5a   :  { %4659 = vmatpush1.bf16.msra.mxu1 %v4658_v14  ;;  %4465 = vmatprep.subr.bf16.mxu0 %v4464_v15  ;;  %v587_v14 = vld [vmem:[%s11350_s1 + $0x10f0] sm:$0xff]  ;;  %v4680_v15 = vpack.c.bf16 %v598_v8, %v588_v7  ;;  %v4486_v21 = vpack.c.bf16 %v595_v13, %v585_v12  ;;  %v4504_v7 = vpack.c.bf16 %v696_v2, %v686_v1  ;;  %v685_v8 = vld [vmem:[%s11350_s1 + $0x1400] sm:$0xff]  ;;  %v706_v13 = vld [vmem:[%s11350_s1 + $0x14a8] sm:$0xff] }
  0x5b   :  { %4661 = vmatprep.subr.bf16.mxu1 %v4660_v19  ;;  %v608_v19 = vld [vmem:[%s11350_s1 + $0x1198] sm:$0xff]  ;;  %v4682_v22 = vpack.c.bf16 %v597_v16, %v587_v14  ;;  %v697_v12 = vld [vmem:[%s11350_s1 + $0x1460] sm:$0xff]  ;;  %v718_v16 = vld [vmem:[%s11350_s1 + $0x1508] sm:$0xff] }
  0x5c   :  { %v716_v14 = vld [vmem:[%s11350_s1 + $0x14f8] sm:$0xff]  ;;  %v778_v54 = vld [vmem:[%s11350_s1 + $0x16e8] sm:$0xff] }
  0x5d   :  { %4467 = vmatpush1.bf16.msra.mxu0 %v4466_v25  ;;  %v615_v25 = vld [vmem:[%s11350_s1 + $0x11d0] sm:$0xff]  ;;  %v788_v1 = vld [vmem:[%s11350_s1 + $0x1738] sm:$0xff]  ;;  %v798_v2 = vld [vmem:[%s11350_s1 + $0x1788] sm:$0xff] }
  0x5e   :  { %4663 = vmatpush1.bf16.msra.mxu1 %v4662_v26  ;;  %4469 = vmatprep.subr.bf16.mxu0 %v4468_v27  ;;  %v607_v26 = vld [vmem:[%s11350_s1 + $0x1190] sm:$0xff]  ;;  %v4684_v27 = vpack.c.bf16 %v618_v20, %v608_v19  ;;  %v4490_v33 = vpack.c.bf16 %v615_v25, %v605_v24  ;;  %v4508_v20 = vpack.c.bf16 %v716_v14, %v706_v13  ;;  %v717_v25 = vld [vmem:[%s11350_s1 + $0x1500] sm:$0xff]  ;;  %v808_v13 = vld [vmem:[%s11350_s1 + $0x17d8] sm:$0xff] }
  0x5f   :  { %4665 = vmatprep.subr.bf16.mxu1 %v4664_v31  ;;  %v628_v31 = vld [vmem:[%s11350_s1 + $0x1238] sm:$0xff]  ;;  %v4686_v34 = vpack.c.bf16 %v617_v28, %v607_v26  ;;  %v726_v26 = vld [vmem:[%s11350_s1 + $0x1548] sm:$0xff] }
  0x60   :  { %v728_v28 = vld [vmem:[%s11350_s1 + $0x1558] sm:$0xff]  ;;  %v818_v14 = vld [vmem:[%s11350_s1 + $0x1828] sm:$0xff] }
  0x61   :  { %4471 = vmatpush1.bf16.msra.mxu0 %v4470_v37  ;;  %v635_v37 = vld [vmem:[%s11350_s1 + $0x1270] sm:$0xff] }
  0x62   :  { %4667 = vmatpush1.bf16.msra.mxu1 %v4666_v38  ;;  %4473 = vmatprep.subr.bf16.mxu0 %v4472_v39  ;;  %v627_v38 = vld [vmem:[%s11350_s1 + $0x1230] sm:$0xff]  ;;  %v4688_v39 = vpack.c.bf16 %v638_v32, %v628_v31  ;;  %v4494_v45 = vpack.c.bf16 %v635_v37, %v625_v36  ;;  %v4708_v37 = vpack.c.bf16 %v738_v29, %v728_v28 }
  0x63   :  { %4669 = vmatprep.subr.bf16.mxu1 %v4668_v43  ;;  %v648_v43 = vld [vmem:[%s11350_s1 + $0x12d8] sm:$0xff]  ;;  %v4690_v46 = vpack.c.bf16 %v637_v40, %v627_v38  ;;  %v727_v36 = vld [vmem:[%s11350_s1 + $0x1550] sm:$0xff]  ;;  %v737_v38 = vld [vmem:[%s11350_s1 + $0x15a0] sm:$0xff] }
  0x64   :  { %v756_v40 = vld [vmem:[%s11350_s1 + $0x1638] sm:$0xff] }
  0x65   :  { %4475 = vmatpush1.bf16.msra.mxu0 %v4474_v49  ;;  %v655_v49 = vld [vmem:[%s11350_s1 + $0x1310] sm:$0xff] }
  0x66   :  { %4671 = vmatpush1.bf16.msra.mxu1 %v4670_v50  ;;  %4477 = vmatprep.subr.bf16.mxu0 %v4476_v51  ;;  %v647_v50 = vld [vmem:[%s11350_s1 + $0x12d0] sm:$0xff]  ;;  %v4692_v51 = vpack.c.bf16 %v658_v44, %v648_v43  ;;  %v4498_v57 = vpack.c.bf16 %v655_v49, %v645_v48  ;;  %v4710_v44 = vpack.c.bf16 %v737_v38, %v727_v36  ;;  %v856_v36 = vld [vmem:[%s11350_s1 + $0x1958] sm:$0xff]  ;;  %v858_v38 = vld [vmem:[%s11350_s1 + $0x1968] sm:$0xff] }
  0x67   :  { %4673 = vmatprep.subr.bf16.mxu1 %v4672_v55  ;;  %v668_v55 = vld [vmem:[%s11350_s1 + $0x1378] sm:$0xff]  ;;  %v4694_v58 = vpack.c.bf16 %v657_v52, %v647_v50  ;;  %v747_v48 = vld [vmem:[%s11350_s1 + $0x15f0] sm:$0xff]  ;;  %v4712_v49 = vpack.c.bf16 %v758_v42, %v748_v41  ;;  %v757_v50 = vld [vmem:[%s11350_s1 + $0x1640] sm:$0xff] }
  0x68   :  { %v776_v52 = vld [vmem:[%s11350_s1 + $0x16d8] sm:$0xff]  ;;  %v845_v42 = vld [vmem:[%s11350_s1 + $0x1900] sm:$0xff] }
  0x69   :  { %4479 = vmatpush1.bf16.msra.mxu0 %v4478_v61  ;;  %v675_v61 = vld [vmem:[%s11350_s1 + $0x13b0] sm:$0xff] }
  0x6a   :  { %4675 = vmatpush1.bf16.msra.mxu1 %v4674_v62  ;;  %4481 = vmatprep.subr.bf16.mxu0 %v4480_v63  ;;  %v667_v62 = vld [vmem:[%s11350_s1 + $0x1370] sm:$0xff]  ;;  %v4696_v63 = vpack.c.bf16 %v678_v56, %v668_v55  ;;  %v4502_v5 = vpack.c.bf16 %v675_v61, %v665_v60  ;;  %v4714_v56 = vpack.c.bf16 %v757_v50, %v747_v48  ;;  %v876_v48 = vld [vmem:[%s11350_s1 + $0x19f8] sm:$0xff]  ;;  %v878_v50 = vld [vmem:[%s11350_s1 + $0x1a08] sm:$0xff] }
  0x6b   :  { %4677 = vmatprep.subr.bf16.mxu1 %v4676_v3  ;;  %v688_v3 = vld [vmem:[%s11350_s1 + $0x1418] sm:$0xff]  ;;  %v4698_v6 = vpack.c.bf16 %v677_v0, %v667_v62  ;;  %v767_v60 = vld [vmem:[%s11350_s1 + $0x1690] sm:$0xff]  ;;  %v4716_v61 = vpack.c.bf16 %v778_v54, %v768_v53  ;;  %v777_v62 = vld [vmem:[%s11350_s1 + $0x16e0] sm:$0xff] }
  0x6c   :  { %v796_v0 = vld [vmem:[%s11350_s1 + $0x1778] sm:$0xff]  ;;  %v865_v54 = vld [vmem:[%s11350_s1 + $0x19a0] sm:$0xff] }
  0x6d   :  { %4483 = vmatpush1.bf16.msra.mxu0 %v4482_v9  ;;  %v695_v9 = vld [vmem:[%s11350_s1 + $0x1450] sm:$0xff] }
  0x6e   :  { %4679 = vmatpush1.bf16.msra.mxu1 %v4678_v10  ;;  %4485 = vmatprep.subr.bf16.mxu0 %v4484_v11  ;;  %v687_v10 = vld [vmem:[%s11350_s1 + $0x1410] sm:$0xff]  ;;  %v4700_v11 = vpack.c.bf16 %v698_v4, %v688_v3  ;;  %v4506_v18 = vpack.c.bf16 %v695_v9, %v685_v8  ;;  %v4718_v4 = vpack.c.bf16 %v777_v62, %v767_v60  ;;  %v896_v60 = vld [vmem:[%s11350_s1 + $0x1a98] sm:$0xff]  ;;  %v898_v62 = vld [vmem:[%s11350_s1 + $0x1aa8] sm:$0xff] }
  0x6f   :  { %4681 = vmatprep.subr.bf16.mxu1 %v4680_v15  ;;  %v708_v15 = vld [vmem:[%s11350_s1 + $0x14b8] sm:$0xff]  ;;  %v4702_v19 = vpack.c.bf16 %v697_v12, %v687_v10  ;;  %v787_v8 = vld [vmem:[%s11350_s1 + $0x1730] sm:$0xff]  ;;  %v4720_v9 = vpack.c.bf16 %v798_v2, %v788_v1  ;;  %v797_v10 = vld [vmem:[%s11350_s1 + $0x1780] sm:$0xff] }
  0x70   :  { %v4704_v24 = vpack.c.bf16 %v718_v16, %v708_v15  ;;  %v816_v12 = vld [vmem:[%s11350_s1 + $0x1818] sm:$0xff]  ;;  %v4722_v16 = vpack.c.bf16 %v797_v10, %v787_v8  ;;  %v885_v2 = vld [vmem:[%s11350_s1 + $0x1a40] sm:$0xff]  ;;  %v918_v10 = vld [vmem:[%s11350_s1 + $0x1b48] sm:$0xff] }
  0x71   :  { %4487 = vmatpush1.bf16.msra.mxu0 %v4486_v21  ;;  %v705_v21 = vld [vmem:[%s11350_s1 + $0x14a0] sm:$0xff]  ;;  %v916_v8 = vld [vmem:[%s11350_s1 + $0x1b38] sm:$0xff] }
  0x72   :  { %4683 = vmatpush1.bf16.msra.mxu1 %v4682_v22  ;;  %4489 = vmatprep.subr.bf16.mxu0 %v4488_v23  ;;  %v715_v22 = vld [vmem:[%s11350_s1 + $0x14f0] sm:$0xff] }
  0x73   :  { %4685 = vmatprep.subr.bf16.mxu1 %v4684_v27  ;;  %v707_v23 = vld [vmem:[%s11350_s1 + $0x14b0] sm:$0xff]  ;;  %v736_v27 = vld [vmem:[%s11350_s1 + $0x1598] sm:$0xff]  ;;  %v4510_v31 = vpack.c.bf16 %v715_v22, %v705_v21  ;;  %v4724_v21 = vpack.c.bf16 %v818_v14, %v808_v13  ;;  %v817_v22 = vld [vmem:[%s11350_s1 + $0x1820] sm:$0xff] }
  0x74   :  { %v4706_v32 = vpack.c.bf16 %v717_v25, %v707_v23  ;;  %v826_v23 = vld [vmem:[%s11350_s1 + $0x1868] sm:$0xff]  ;;  %v828_v25 = vld [vmem:[%s11350_s1 + $0x1878] sm:$0xff]  ;;  %v905_v14 = vld [vmem:[%s11350_s1 + $0x1ae0] sm:$0xff] }
  0x75   :  { %4491 = vmatpush1.bf16.msra.mxu0 %v4490_v33  ;;  %v4512_v33 = vpack.c.bf16 %v736_v27, %v726_v26  ;;  %v838_v26 = vld [vmem:[%s11350_s1 + $0x18c8] sm:$0xff] }
  0x76   :  { %4687 = vmatpush1.bf16.msra.mxu1 %v4686_v34  ;;  %4493 = vmatprep.subr.bf16.mxu0 %v4492_v35  ;;  %v725_v34 = vld [vmem:[%s11350_s1 + $0x1540] sm:$0xff]  ;;  %v735_v35 = vld [vmem:[%s11350_s1 + $0x1590] sm:$0xff] }
  0x77   :  { %4689 = vmatprep.subr.bf16.mxu1 %v4688_v39  ;;  %v746_v39 = vld [vmem:[%s11350_s1 + $0x15e8] sm:$0xff]  ;;  %v4514_v43 = vpack.c.bf16 %v735_v35, %v725_v34  ;;  %v837_v34 = vld [vmem:[%s11350_s1 + $0x18c0] sm:$0xff] }
  0x78   :  { %v846_v35 = vld [vmem:[%s11350_s1 + $0x1908] sm:$0xff] }
  0x79   :  { %4495 = vmatpush1.bf16.msra.mxu0 %v4494_v45  ;;  %v4516_v45 = vpack.c.bf16 %v756_v40, %v746_v39  ;;  %v4536_v41 = vpack.c.bf16 %v856_v36, %v846_v35 }
  0x7a   :  { %4691 = vmatpush1.bf16.msra.mxu1 %v4690_v46  ;;  %4497 = vmatprep.subr.bf16.mxu0 %v4496_v47  ;;  %v745_v46 = vld [vmem:[%s11350_s1 + $0x15e0] sm:$0xff]  ;;  %v755_v47 = vld [vmem:[%s11350_s1 + $0x1630] sm:$0xff] }
  0x7b   :  { %4693 = vmatprep.subr.bf16.mxu1 %v4692_v51  ;;  %v766_v51 = vld [vmem:[%s11350_s1 + $0x1688] sm:$0xff]  ;;  %v4518_v55 = vpack.c.bf16 %v755_v47, %v745_v46  ;;  %v857_v46 = vld [vmem:[%s11350_s1 + $0x1960] sm:$0xff] }
  0x7c   :  { %v866_v47 = vld [vmem:[%s11350_s1 + $0x19a8] sm:$0xff] }
  0x7d   :  { %4499 = vmatpush1.bf16.msra.mxu0 %v4498_v57  ;;  %v4520_v57 = vpack.c.bf16 %v776_v52, %v766_v51  ;;  %v4540_v53 = vpack.c.bf16 %v876_v48, %v866_v47 }
  0x7e   :  { %4695 = vmatpush1.bf16.msra.mxu1 %v4694_v58  ;;  %4501 = vmatprep.subr.bf16.mxu0 %v4500_v59  ;;  %v765_v58 = vld [vmem:[%s11350_s1 + $0x1680] sm:$0xff]  ;;  %v775_v59 = vld [vmem:[%s11350_s1 + $0x16d0] sm:$0xff] }
  0x7f   :  { %4697 = vmatprep.subr.bf16.mxu1 %v4696_v63  ;;  %v786_v63 = vld [vmem:[%s11350_s1 + $0x1728] sm:$0xff]  ;;  %v4522_v3 = vpack.c.bf16 %v775_v59, %v765_v58  ;;  %v877_v58 = vld [vmem:[%s11350_s1 + $0x1a00] sm:$0xff] }
  0x80   :  { %v886_v59 = vld [vmem:[%s11350_s1 + $0x1a48] sm:$0xff] }
  0x81   :  { %4503 = vmatpush1.bf16.msra.mxu0 %v4502_v5  ;;  %v4524_v5 = vpack.c.bf16 %v796_v0, %v786_v63  ;;  %v4544_v1 = vpack.c.bf16 %v896_v60, %v886_v59 }
  0x82   :  { %4699 = vmatpush1.bf16.msra.mxu1 %v4698_v6  ;;  %4505 = vmatprep.subr.bf16.mxu0 %v4504_v7  ;;  %v785_v6 = vld [vmem:[%s11350_s1 + $0x1720] sm:$0xff]  ;;  %v795_v7 = vld [vmem:[%s11350_s1 + $0x1770] sm:$0xff] }
  0x83   :  { %4701 = vmatprep.subr.bf16.mxu1 %v4700_v11  ;;  %v806_v11 = vld [vmem:[%s11350_s1 + $0x17c8] sm:$0xff]  ;;  %v4526_v15 = vpack.c.bf16 %v795_v7, %v785_v6  ;;  %v897_v6 = vld [vmem:[%s11350_s1 + $0x1aa0] sm:$0xff] }
  0x84   :  { %1219 = vmatmul.mubr.f32.vlgmr.msra.gmra.mrb[0].mxu0 %v40_v17  ;;  %v906_v7 = vld [vmem:[%s11350_s1 + $0x1ae8] sm:$0xff] }
  0x85   :  { %4507 = vmatpush1.bf16.msra.mxu0 %v4506_v18  ;;  %1503 = vmatmul.mubr.f32.vlgmr.msra.gmra.mrb[0].mxu1 %v40_v17  ;;  %v4528_v17 = vpack.c.bf16 %v816_v12, %v806_v11  ;;  %v805_v18 = vld [vmem:[%s11350_s1 + $0x17c0] sm:$0xff]  ;;  %v4548_v13 = vpack.c.bf16 %v916_v8, %v906_v7 }
  0x86   :  { %4703 = vmatpush1.bf16.msra.mxu1 %v4702_v19  ;;  %4509 = vmatprep.subr.bf16.mxu0 %v4508_v20  ;;  %v815_v19 = vld [vmem:[%s11350_s1 + $0x1810] sm:$0xff] }
  0x87   :  { %4705 = vmatprep.subr.bf16.mxu1 %v4704_v24  ;;  %1289 = vmatprep.mubr.f32.mxu0 %v43_v30  ;;  %v807_v20 = vld [vmem:[%s11350_s1 + $0x17d0] sm:$0xff]  ;;  %v836_v24 = vld [vmem:[%s11350_s1 + $0x18b8] sm:$0xff]  ;;  %v4530_v27 = vpack.c.bf16 %v815_v19, %v805_v18  ;;  %v917_v18 = vld [vmem:[%s11350_s1 + $0x1b40] sm:$0xff] }
  0x88   :  { %1573 = vmatprep.mubr.f32.mxu1 %v43_v30  ;;  %v4726_v28 = vpack.c.bf16 %v817_v22, %v807_v20  ;;  %v4532_v29 = vpack.c.bf16 %v836_v24, %v826_v23  ;;  %v825_v30 = vld [vmem:[%s11350_s1 + $0x1860] sm:$0xff]  ;;  %v926_v19 = vld [vmem:[%s11350_s1 + $0x1b88] sm:$0xff]  ;;  %v936_v20 = vld [vmem:[%s11350_s1 + $0x1bd8] sm:$0xff] }
  0x89   :  { %4511 = vmatpush1.bf16.msra.mxu0 %v4510_v31  ;;  %v835_v31 = vld [vmem:[%s11350_s1 + $0x18b0] sm:$0xff]  ;;  %v938_v22 = vld [vmem:[%s11350_s1 + $0x1be8] sm:$0xff] }
  0x8a   :  { %4707 = vmatpush1.bf16.msra.mxu1 %v4706_v32  ;;  %4513 = vmatprep.subr.bf16.mxu0 %v4512_v33  ;;  %v827_v32 = vld [vmem:[%s11350_s1 + $0x1870] sm:$0xff]  ;;  %v4728_v33 = vpack.c.bf16 %v838_v26, %v828_v25  ;;  %v4534_v39 = vpack.c.bf16 %v835_v31, %v825_v30  ;;  %v4552_v25 = vpack.c.bf16 %v936_v20, %v926_v19  ;;  %v925_v26 = vld [vmem:[%s11350_s1 + $0x1b80] sm:$0xff]  ;;  %v946_v31 = vld [vmem:[%s11350_s1 + $0x1c28] sm:$0xff] }
  0x8b   :  { %4709 = vmatprep.subr.bf16.mxu1 %v4708_v37  ;;  %v848_v37 = vld [vmem:[%s11350_s1 + $0x1918] sm:$0xff]  ;;  %v4730_v40 = vpack.c.bf16 %v837_v34, %v827_v32  ;;  %v937_v30 = vld [vmem:[%s11350_s1 + $0x1be0] sm:$0xff]  ;;  %v958_v34 = vld [vmem:[%s11350_s1 + $0x1c88] sm:$0xff] }
  0x8c   :  { %v956_v32 = vld [vmem:[%s11350_s1 + $0x1c78] sm:$0xff]  ;;  %v62_v20 = vld [vmem:[%s11350_s1 + $0x88] sm:$0xff] }
  0x8d   :  { %4515 = vmatpush1.bf16.msra.mxu0 %v4514_v43  ;;  %v855_v43 = vld [vmem:[%s11350_s1 + $0x1950] sm:$0xff]  ;;  %v52_v19 = vld [vmem:[%s11350_s1 + $0x38] sm:$0xff] }
  0x8e   :  { %4711 = vmatpush1.bf16.msra.mxu1 %v4710_v44  ;;  %4517 = vmatprep.subr.bf16.mxu0 %v4516_v45  ;;  %v847_v44 = vld [vmem:[%s11350_s1 + $0x1910] sm:$0xff]  ;;  %v4732_v45 = vpack.c.bf16 %v858_v38, %v848_v37  ;;  %v4538_v51 = vpack.c.bf16 %v855_v43, %v845_v42  ;;  %v4556_v37 = vpack.c.bf16 %v956_v32, %v946_v31  ;;  %v945_v38 = vld [vmem:[%s11350_s1 + $0x1c20] sm:$0xff]  ;;  %v966_v43 = vld [vmem:[%s11350_s1 + $0x1cc8] sm:$0xff] }
  0x8f   :  { %4713 = vmatprep.subr.bf16.mxu1 %v4712_v49  ;;  %v868_v49 = vld [vmem:[%s11350_s1 + $0x19b8] sm:$0xff]  ;;  %v4734_v52 = vpack.c.bf16 %v857_v46, %v847_v44  ;;  %v957_v42 = vld [vmem:[%s11350_s1 + $0x1c80] sm:$0xff]  ;;  %v978_v46 = vld [vmem:[%s11350_s1 + $0x1d28] sm:$0xff] }
  0x90   :  { %v976_v44 = vld [vmem:[%s11350_s1 + $0x1d18] sm:$0xff]  ;;  %v82_v32 = vld [vmem:[%s11350_s1 + $0x128] sm:$0xff] }
  0x91   :  { %4519 = vmatpush1.bf16.msra.mxu0 %v4518_v55  ;;  %v875_v55 = vld [vmem:[%s11350_s1 + $0x19f0] sm:$0xff]  ;;  %v72_v31 = vld [vmem:[%s11350_s1 + $0xd8] sm:$0xff] }
  0x92   :  { %4715 = vmatpush1.bf16.msra.mxu1 %v4714_v56  ;;  %4521 = vmatprep.subr.bf16.mxu0 %v4520_v57  ;;  %v867_v56 = vld [vmem:[%s11350_s1 + $0x19b0] sm:$0xff]  ;;  %v4736_v57 = vpack.c.bf16 %v878_v50, %v868_v49  ;;  %v4542_v63 = vpack.c.bf16 %v875_v55, %v865_v54  ;;  %v4560_v49 = vpack.c.bf16 %v976_v44, %v966_v43  ;;  %v965_v50 = vld [vmem:[%s11350_s1 + $0x1cc0] sm:$0xff]  ;;  %v986_v55 = vld [vmem:[%s11350_s1 + $0x1d68] sm:$0xff] }
  0x93   :  { %4717 = vmatprep.subr.bf16.mxu1 %v4716_v61  ;;  %v888_v61 = vld [vmem:[%s11350_s1 + $0x1a58] sm:$0xff]  ;;  %v4738_v0 = vpack.c.bf16 %v877_v58, %v867_v56  ;;  %v977_v54 = vld [vmem:[%s11350_s1 + $0x1d20] sm:$0xff]  ;;  %v998_v58 = vld [vmem:[%s11350_s1 + $0x1dc8] sm:$0xff] }
  0x94   :  { %v996_v56 = vld [vmem:[%s11350_s1 + $0x1db8] sm:$0xff] }
  0x95   :  { %4523 = vmatpush1.bf16.msra.mxu0 %v4522_v3  ;;  %v895_v3 = vld [vmem:[%s11350_s1 + $0x1a90] sm:$0xff]  ;;  %v100_v43 = vld [vmem:[%s11350_s1 + $0x1b8] sm:$0xff] }
  0x96   :  { %4719 = vmatpush1.bf16.msra.mxu1 %v4718_v4  ;;  %4525 = vmatprep.subr.bf16.mxu0 %v4524_v5  ;;  %v887_v4 = vld [vmem:[%s11350_s1 + $0x1a50] sm:$0xff]  ;;  %v4740_v5 = vpack.c.bf16 %v898_v62, %v888_v61  ;;  %v4546_v11 = vpack.c.bf16 %v895_v3, %v885_v2  ;;  %v4564_v61 = vpack.c.bf16 %v996_v56, %v986_v55  ;;  %v985_v62 = vld [vmem:[%s11350_s1 + $0x1d60] sm:$0xff]  ;;  %v1006_v3 = vld [vmem:[%s11350_s1 + $0x1e08] sm:$0xff] }
  0x97   :  { %4721 = vmatprep.subr.bf16.mxu1 %v4720_v9  ;;  %v908_v9 = vld [vmem:[%s11350_s1 + $0x1af8] sm:$0xff]  ;;  %v4742_v12 = vpack.c.bf16 %v897_v6, %v887_v4  ;;  %v997_v2 = vld [vmem:[%s11350_s1 + $0x1dc0] sm:$0xff]  ;;  %v1018_v6 = vld [vmem:[%s11350_s1 + $0x1e68] sm:$0xff] }
  0x98   :  { %v1016_v4 = vld [vmem:[%s11350_s1 + $0x1e58] sm:$0xff]  ;;  %v6098_v56 = vld [vmem:[%s11351_s0 + $0x8] sm:$0xff] }
  0x99   :  { %4527 = vmatpush1.bf16.msra.mxu0 %v4526_v15  ;;  %v915_v15 = vld [vmem:[%s11350_s1 + $0x1b30] sm:$0xff]  ;;  %v92_v44 = vld [vmem:[%s11350_s1 + $0x178] sm:$0xff] }
  0x9a   :  { %4723 = vmatpush1.bf16.msra.mxu1 %v4722_v16  ;;  %4529 = vmatprep.subr.bf16.mxu0 %v4528_v17  ;;  %v907_v16 = vld [vmem:[%s11350_s1 + $0x1af0] sm:$0xff]  ;;  %v4744_v17 = vpack.c.bf16 %v918_v10, %v908_v9  ;;  %v4550_v23 = vpack.c.bf16 %v915_v15, %v905_v14  ;;  %v4568_v9 = vpack.c.bf16 %v1016_v4, %v1006_v3  ;;  %v1005_v10 = vld [vmem:[%s11350_s1 + $0x1e00] sm:$0xff]  ;;  %v50_v15 = vld [vmem:[%s11350_s1 + $0x28] sm:$0xff] }
  0x9b   :  { %4725 = vmatprep.subr.bf16.mxu1 %v4724_v21  ;;  %v928_v21 = vld [vmem:[%s11350_s1 + $0x1b98] sm:$0xff]  ;;  %v4746_v24 = vpack.c.bf16 %v917_v18, %v907_v16  ;;  %v1017_v14 = vld [vmem:[%s11350_s1 + $0x1e60] sm:$0xff]  ;;  %v130_v3 = vld [vmem:[%s11350_s1 + $0x2a8] sm:$0xff] }
  0x9c   :  { %v60_v16 = vld [vmem:[%s11350_s1 + $0x78] sm:$0xff] }
  0x9d   :  { %4531 = vmatpush1.bf16.msra.mxu0 %v4530_v27  ;;  %v935_v27 = vld [vmem:[%s11350_s1 + $0x1bd0] sm:$0xff]  ;;  %v120_v55 = vld [vmem:[%s11350_s1 + $0x258] sm:$0xff] }
  0x9e   :  { %4727 = vmatpush1.bf16.msra.mxu1 %v4726_v28  ;;  %4533 = vmatprep.subr.bf16.mxu0 %v4532_v29  ;;  %v927_v28 = vld [vmem:[%s11350_s1 + $0x1b90] sm:$0xff]  ;;  %v4748_v29 = vpack.c.bf16 %v938_v22, %v928_v21  ;;  %v4554_v35 = vpack.c.bf16 %v935_v27, %v925_v26  ;;  %v4768_v22 = vpack.c.bf16 %v60_v16, %v50_v15  ;;  %v140_v4 = vld [vmem:[%s11350_s1 + $0x2f8] sm:$0xff]  ;;  %v150_v15 = vld [vmem:[%s11350_s1 + $0x348] sm:$0xff] }
  0x9f   :  { %4729 = vmatprep.subr.bf16.mxu1 %v4728_v33  ;;  %v948_v33 = vld [vmem:[%s11350_s1 + $0x1c38] sm:$0xff]  ;;  %v4750_v36 = vpack.c.bf16 %v937_v30, %v927_v28  ;;  %v59_v26 = vld [vmem:[%s11350_s1 + $0x70] sm:$0xff]  ;;  %v61_v28 = vld [vmem:[%s11350_s1 + $0x80] sm:$0xff] }
  0xa0   :  { %v51_v27 = vld [vmem:[%s11350_s1 + $0x30] sm:$0xff]  ;;  %v80_v30 = vld [vmem:[%s11350_s1 + $0x118] sm:$0xff] }
  0xa1   :  { %4535 = vmatpush1.bf16.msra.mxu0 %v4534_v39  ;;  %v955_v39 = vld [vmem:[%s11350_s1 + $0x1c70] sm:$0xff]  ;;  %v160_v16 = vld [vmem:[%s11350_s1 + $0x398] sm:$0xff] }
  0xa2   :  { %4731 = vmatpush1.bf16.msra.mxu1 %v4730_v40  ;;  %4537 = vmatprep.subr.bf16.mxu0 %v4536_v41  ;;  %v947_v40 = vld [vmem:[%s11350_s1 + $0x1c30] sm:$0xff]  ;;  %v4752_v41 = vpack.c.bf16 %v958_v34, %v948_v33  ;;  %v4558_v47 = vpack.c.bf16 %v955_v39, %v945_v38 }
  0xa3   :  { %4733 = vmatprep.subr.bf16.mxu1 %v4732_v45  ;;  %v968_v45 = vld [vmem:[%s11350_s1 + $0x1cd8] sm:$0xff]  ;;  %v4754_v48 = vpack.c.bf16 %v957_v42, %v947_v40  ;;  %v44_v33 = vld [vmem:[%s11351_s0 + $0x30] sm:$0xff]  ;;  %v4968_v40 = vpack.c.bf16 %v82_v32, %v72_v31  ;;  %v90_v42 = vld [vmem:[%s11350_s1 + $0x168] sm:$0xff] }
  0xa4   :  { %v79_v38 = vld [vmem:[%s11350_s1 + $0x110] sm:$0xff]  ;;  %v182_v31 = vld [vmem:[%s11350_s1 + $0x448] sm:$0xff] }
  0xa5   :  { %4539 = vmatpush1.bf16.msra.mxu0 %v4538_v51  ;;  %v975_v51 = vld [vmem:[%s11350_s1 + $0x1d10] sm:$0xff] }
  0xa6   :  { %4735 = vmatpush1.bf16.msra.mxu1 %v4734_v52  ;;  %4541 = vmatprep.subr.bf16.mxu0 %v4540_v53  ;;  %v967_v52 = vld [vmem:[%s11350_s1 + $0x1cd0] sm:$0xff]  ;;  %v4756_v53 = vpack.c.bf16 %v978_v46, %v968_v45  ;;  %v4562_v59 = vpack.c.bf16 %v975_v51, %v965_v50  ;;  %v102_v45 = vld [vmem:[%s11350_s1 + $0x1c8] sm:$0xff] }
  0xa7   :  { %4737 = vmatprep.subr.bf16.mxu1 %v4736_v57  ;;  %v988_v57 = vld [vmem:[%s11350_s1 + $0x1d78] sm:$0xff]  ;;  %v4758_v60 = vpack.c.bf16 %v977_v54, %v967_v52  ;;  %v71_v39 = vld [vmem:[%s11350_s1 + $0xd0] sm:$0xff]  ;;  %v4972_v52 = vpack.c.bf16 %v102_v45, %v92_v44  ;;  %v110_v54 = vld [vmem:[%s11350_s1 + $0x208] sm:$0xff] }
  0xa8   :  { %v99_v50 = vld [vmem:[%s11350_s1 + $0x1b0] sm:$0xff] }
  0xa9   :  { %4543 = vmatpush1.bf16.msra.mxu0 %v4542_v63  ;;  %v995_v63 = vld [vmem:[%s11350_s1 + $0x1db0] sm:$0xff] }
  0xaa   :  { %4739 = vmatpush1.bf16.msra.mxu1 %v4738_v0  ;;  %4545 = vmatprep.subr.bf16.mxu0 %v4544_v1  ;;  %v987_v0 = vld [vmem:[%s11350_s1 + $0x1d70] sm:$0xff]  ;;  %v4760_v1 = vpack.c.bf16 %v998_v58, %v988_v57  ;;  %v4566_v7 = vpack.c.bf16 %v995_v63, %v985_v62  ;;  %v112_v57 = vld [vmem:[%s11350_s1 + $0x218] sm:$0xff]  ;;  %v122_v58 = vld [vmem:[%s11350_s1 + $0x268] sm:$0xff] }
  0xab   :  { %4741 = vmatprep.subr.bf16.mxu1 %v4740_v5  ;;  %v1008_v5 = vld [vmem:[%s11350_s1 + $0x1e18] sm:$0xff]  ;;  %v4762_v8 = vpack.c.bf16 %v997_v2, %v987_v0  ;;  %v91_v51 = vld [vmem:[%s11350_s1 + $0x170] sm:$0xff]  ;;  %v109_v62 = vld [vmem:[%s11350_s1 + $0x200] sm:$0xff] }
  0xac   :  { %v119_v63 = vld [vmem:[%s11350_s1 + $0x250] sm:$0xff]  ;;  %v121_v2 = vld [vmem:[%s11350_s1 + $0x260] sm:$0xff] }
  0xad   :  { %4547 = vmatpush1.bf16.msra.mxu0 %v4546_v11  ;;  %v1015_v11 = vld [vmem:[%s11350_s1 + $0x1e50] sm:$0xff] }
  0xae   :  { %4743 = vmatpush1.bf16.msra.mxu1 %v4742_v12  ;;  %4549 = vmatprep.subr.bf16.mxu0 %v4548_v13  ;;  %v4764_v12 = vpack.c.bf16 %v1018_v6, %v1008_v5  ;;  %v1007_v13 = vld [vmem:[%s11350_s1 + $0x1e10] sm:$0xff]  ;;  %v4570_v18 = vpack.c.bf16 %v1015_v11, %v1005_v10  ;;  %v132_v5 = vld [vmem:[%s11350_s1 + $0x2b8] sm:$0xff]  ;;  %v142_v6 = vld [vmem:[%s11350_s1 + $0x308] sm:$0xff] }
  0xaf   :  { %4745 = vmatprep.subr.bf16.mxu1 %v4744_v17  ;;  %v42_v17 = vld [vmem:[%s11351_s0 + $0x20] sm:$0xff]  ;;  %v4766_v21 = vpack.c.bf16 %v1017_v14, %v1007_v13  ;;  %v111_v0 = vld [vmem:[%s11350_s1 + $0x210] sm:$0xff]  ;;  %v4980_v13 = vpack.c.bf16 %v142_v6, %v132_v5 }
  0xb0   :  { %v129_v10 = vld [vmem:[%s11350_s1 + $0x2a0] sm:$0xff]  ;;  %v139_v11 = vld [vmem:[%s11350_s1 + $0x2f0] sm:$0xff] }
  0xb1   :  { %4551 = vmatpush1.bf16.msra.mxu0 %v4550_v23  ;;  %v4964_v23 = vpack.c.bf16 %v62_v20, %v52_v19  ;;  %v141_v14 = vld [vmem:[%s11350_s1 + $0x300] sm:$0xff]  ;;  %v4786_v19 = vpack.c.bf16 %v139_v11, %v129_v10 }
  0xb2   :  { %4747 = vmatpush1.bf16.msra.mxu1 %v4746_v24  ;;  %4553 = vmatprep.subr.bf16.mxu0 %v4552_v25  ;;  %v6113_v24 = vmov 0.0   ;;  %v49_v25 = vld [vmem:[%s11350_s1 + $0x20] sm:$0xff] }
  0xb3   :  { %4749 = vmatprep.subr.bf16.mxu1 %v4748_v29  ;;  %v70_v29 = vld [vmem:[%s11350_s1 + $0xc8] sm:$0xff]  ;;  %v4770_v34 = vpack.c.bf16 %v59_v26, %v49_v25  ;;  %v151_v25 = vld [vmem:[%s11350_s1 + $0x350] sm:$0xff]  ;;  %v241_v11 = vld [vmem:[%s11350_s1 + $0x620] sm:$0xff] }
  0xb5   :  { %4555 = vmatpush1.bf16.msra.mxu0 %v4554_v35  ;;  %v4966_v35 = vpack.c.bf16 %v61_v28, %v51_v27  ;;  %v161_v27 = vld [vmem:[%s11350_s1 + $0x3a0] sm:$0xff]  ;;  %v170_v28 = vld [vmem:[%s11350_s1 + $0x3e8] sm:$0xff] }
  0xb6   :  { %4751 = vmatpush1.bf16.msra.mxu1 %v4750_v36  ;;  %4557 = vmatprep.subr.bf16.mxu0 %v4556_v37  ;;  %v4772_v36 = vpack.c.bf16 %v80_v30, %v70_v29  ;;  %v69_v37 = vld [vmem:[%s11350_s1 + $0xc0] sm:$0xff]  ;;  %v180_v29 = vld [vmem:[%s11350_s1 + $0x438] sm:$0xff] }
  0xb7   :  { %4753 = vmatprep.subr.bf16.mxu1 %v4752_v41  ;;  %v81_v41 = vld [vmem:[%s11350_s1 + $0x120] sm:$0xff]  ;;  %v4774_v46 = vpack.c.bf16 %v79_v38, %v69_v37  ;;  %v172_v30 = vld [vmem:[%s11350_s1 + $0x3f8] sm:$0xff]  ;;  %v171_v37 = vld [vmem:[%s11350_s1 + $0x3f0] sm:$0xff] }
  0xb8   :  { %v4988_v38 = vpack.c.bf16 %v182_v31, %v172_v30 }
  0xb9   :  { %4559 = vmatpush1.bf16.msra.mxu0 %v4558_v47  ;;  %v4970_v47 = vpack.c.bf16 %v81_v41, %v71_v39  ;;  %v181_v39 = vld [vmem:[%s11350_s1 + $0x440] sm:$0xff]  ;;  %v200_v41 = vld [vmem:[%s11350_s1 + $0x4d8] sm:$0xff] }
  0xba   :  { %4755 = vmatpush1.bf16.msra.mxu1 %v4754_v48  ;;  %4561 = vmatprep.subr.bf16.mxu0 %v4560_v49  ;;  %v4776_v48 = vpack.c.bf16 %v100_v43, %v90_v42  ;;  %v89_v49 = vld [vmem:[%s11350_s1 + $0x160] sm:$0xff]  ;;  %v192_v42 = vld [vmem:[%s11350_s1 + $0x498] sm:$0xff]  ;;  %v202_v43 = vld [vmem:[%s11350_s1 + $0x4e8] sm:$0xff]  ;;  %v4990_v45 = vpack.c.bf16 %v181_v39, %v171_v37 }
  0xbb   :  { %4757 = vmatprep.subr.bf16.mxu1 %v4756_v53  ;;  %v101_v53 = vld [vmem:[%s11350_s1 + $0x1c0] sm:$0xff]  ;;  %v290_v37 = vld [vmem:[%s11350_s1 + $0x7a8] sm:$0xff]  ;;  %v292_v39 = vld [vmem:[%s11350_s1 + $0x7b8] sm:$0xff] }
  0xbd   :  { %4563 = vmatpush1.bf16.msra.mxu0 %v4562_v59  ;;  %v4778_v59 = vpack.c.bf16 %v99_v50, %v89_v49  ;;  %v191_v49 = vld [vmem:[%s11350_s1 + $0x490] sm:$0xff]  ;;  %v4992_v50 = vpack.c.bf16 %v202_v43, %v192_v42 }
  0xbe   :  { %4759 = vmatpush1.bf16.msra.mxu1 %v4758_v60  ;;  %4565 = vmatprep.subr.bf16.mxu0 %v4564_v61  ;;  %v4974_v60 = vpack.c.bf16 %v101_v53, %v91_v51  ;;  %v4780_v61 = vpack.c.bf16 %v120_v55, %v110_v54  ;;  %v201_v51 = vld [vmem:[%s11350_s1 + $0x4e0] sm:$0xff]  ;;  %v220_v53 = vld [vmem:[%s11350_s1 + $0x578] sm:$0xff]  ;;  %v222_v55 = vld [vmem:[%s11350_s1 + $0x588] sm:$0xff] }
  0xbf   :  { %4761 = vmatprep.subr.bf16.mxu1 %v4760_v1  ;;  %v4976_v1 = vpack.c.bf16 %v122_v58, %v112_v57  ;;  %v212_v54 = vld [vmem:[%s11350_s1 + $0x538] sm:$0xff]  ;;  %v4994_v57 = vpack.c.bf16 %v201_v51, %v191_v49  ;;  %v310_v49 = vld [vmem:[%s11350_s1 + $0x848] sm:$0xff] }
  0xc0   :  { %v312_v51 = vld [vmem:[%s11350_s1 + $0x858] sm:$0xff] }
  0xc1   :  { %4567 = vmatpush1.bf16.msra.mxu0 %v4566_v7  ;;  %v4782_v7 = vpack.c.bf16 %v119_v63, %v109_v62  ;;  %v4996_v62 = vpack.c.bf16 %v222_v55, %v212_v54  ;;  %v221_v63 = vld [vmem:[%s11350_s1 + $0x580] sm:$0xff] }
  0xc2   :  { %4763 = vmatpush1.bf16.msra.mxu1 %v4762_v8  ;;  %4569 = vmatprep.subr.bf16.mxu0 %v4568_v9  ;;  %v4978_v8 = vpack.c.bf16 %v121_v2, %v111_v0  ;;  %v4784_v9 = vpack.c.bf16 %v140_v4, %v130_v3  ;;  %v230_v0 = vld [vmem:[%s11350_s1 + $0x5c8] sm:$0xff]  ;;  %v232_v2 = vld [vmem:[%s11350_s1 + $0x5d8] sm:$0xff] }
  0xc3   :  { %4765 = vmatprep.subr.bf16.mxu1 %v4764_v12  ;;  %v131_v12 = vld [vmem:[%s11350_s1 + $0x2b0] sm:$0xff]  ;;  %v242_v3 = vld [vmem:[%s11350_s1 + $0x628] sm:$0xff] }
  0xc4   :  { %1290 = vmatmul.mubr.f32.vlgmr.msra.gmra.mrb[0].mxu0 %v42_v17  ;;  %v4982_v20 = vpack.c.bf16 %v141_v14, %v131_v12  ;;  %v5000_v10 = vpack.c.bf16 %v242_v3, %v232_v2  ;;  %v250_v12 = vld [vmem:[%s11350_s1 + $0x668] sm:$0xff]  ;;  %v252_v14 = vld [vmem:[%s11350_s1 + $0x678] sm:$0xff] }
  0xc5   :  { %1574 = vmatmul.mubr.f32.vlgmr.msra.gmra.mrb[0].mxu1 %v42_v17  ;;  %4571 = vmatpush1.bf16.msra.mxu0 %v4570_v18  ;;  %v152_v17 = vld [vmem:[%s11350_s1 + $0x358] sm:$0xff]  ;;  %v162_v18 = vld [vmem:[%s11350_s1 + $0x3a8] sm:$0xff] }
  0xc6   :  { %4767 = vmatpush1.bf16.msra.mxu1 %v4766_v21  ;;  %1360 = vmatprep.mubr.f32.mxu0 %v6113_v24  ;;  %v4788_v21 = vpack.c.bf16 %v160_v16, %v150_v15  ;;  %v4984_v26 = vpack.c.bf16 %v162_v18, %v152_v17  ;;  %v262_v15 = vld [vmem:[%s11350_s1 + $0x6c8] sm:$0xff] }
  0xc7   :  { %1644 = vmatprep.mubr.f32.mxu1 %v6113_v24  ;;  %4769 = vmatprep.subr.bf16.mxu0 %v4768_v22  ;;  %v149_v22 = vld [vmem:[%s11350_s1 + $0x340] sm:$0xff] }
  0xc8   :  { %4965 = vmatprep.subr.bf16.mxu1 %v4964_v23  ;;  %v159_v23 = vld [vmem:[%s11350_s1 + $0x390] sm:$0xff] }
  0xc9   :  { %v4790_v32 = vpack.c.bf16 %v159_v23, %v149_v22  ;;  %v5004_v22 = vpack.c.bf16 %v262_v15, %v252_v14  ;;  %v261_v23 = vld [vmem:[%s11350_s1 + $0x6c0] sm:$0xff] }
  0xcc   :  { %4241 = vmatmul.mubr.msk.f32.vlgmr.msra.gmra.mrb[0].mxu0 %vm1079_vm0, %v44_v33 }
  0xcd   :  { %4242 = vmatmul.mubr.msk.f32.vlgmr.msra.gmra.mrb[0].mxu1 %vm1079_vm0, %v44_v33  ;;  %4771 = vmatpush1.bf16.msra.mxu0 %v4770_v34  ;;  %v4986_v33 = vpack.c.bf16 %v161_v27, %v151_v25  ;;  %v4792_v34 = vpack.c.bf16 %v180_v29, %v170_v28  ;;  %v270_v25 = vld [vmem:[%s11350_s1 + $0x708] sm:$0xff]  ;;  %v272_v27 = vld [vmem:[%s11350_s1 + $0x718] sm:$0xff] }
  0xce   :  { %4967 = vmatpush1.bf16.msra.mxu1 %v4966_v35  ;;  %4773 = vmatprep.subr.bf16.mxu0 %v4772_v36  ;;  %v169_v35 = vld [vmem:[%s11350_s1 + $0x3e0] sm:$0xff]  ;;  %v179_v36 = vld [vmem:[%s11350_s1 + $0x430] sm:$0xff]  ;;  %v282_v28 = vld [vmem:[%s11350_s1 + $0x768] sm:$0xff] }
  0xcf   :  { %4969 = vmatprep.subr.bf16.mxu1 %v4968_v40  ;;  %1715 = vmatprep.mubr.f32.mxu0 %v6098_v56  ;;  %v190_v40 = vld [vmem:[%s11350_s1 + $0x488] sm:$0xff]  ;;  %v4794_v44 = vpack.c.bf16 %v179_v36, %v169_v35  ;;  %v5008_v35 = vpack.c.bf16 %v282_v28, %v272_v27  ;;  %v281_v36 = vld [vmem:[%s11350_s1 + $0x760] sm:$0xff] }
  0xd0   :  { %1999 = vmatprep.mubr.f32.mxu1 %v6098_v56 }
  0xd1   :  { %4775 = vmatpush1.bf16.msra.mxu0 %v4774_v46  ;;  %v4796_v46 = vpack.c.bf16 %v200_v41, %v190_v40  ;;  %v302_v40 = vld [vmem:[%s11350_s1 + $0x808] sm:$0xff] }
  0xd2   :  { %4971 = vmatpush1.bf16.msra.mxu1 %v4970_v47  ;;  %4777 = vmatprep.subr.bf16.mxu0 %v4776_v48  ;;  %v189_v47 = vld [vmem:[%s11350_s1 + $0x480] sm:$0xff]  ;;  %v199_v48 = vld [vmem:[%s11350_s1 + $0x4d0] sm:$0xff] }
  0xd3   :  { %4973 = vmatprep.subr.bf16.mxu1 %v4972_v52  ;;  %v210_v52 = vld [vmem:[%s11350_s1 + $0x528] sm:$0xff]  ;;  %v4798_v56 = vpack.c.bf16 %v199_v48, %v189_v47  ;;  %v5012_v47 = vpack.c.bf16 %v302_v40, %v292_v39  ;;  %v301_v48 = vld [vmem:[%s11350_s1 + $0x800] sm:$0xff] }
  0xd4   :  { %v4800_v58 = vpack.c.bf16 %v220_v53, %v210_v52  ;;  %v322_v52 = vld [vmem:[%s11350_s1 + $0x8a8] sm:$0xff] }
  0xd5   :  { %4779 = vmatpush1.bf16.msra.mxu0 %v4778_v59  ;;  %v209_v59 = vld [vmem:[%s11350_s1 + $0x520] sm:$0xff] }
  0xd6   :  { %4975 = vmatpush1.bf16.msra.mxu1 %v4974_v60  ;;  %4781 = vmatprep.subr.bf16.mxu0 %v4780_v61  ;;  %v219_v60 = vld [vmem:[%s11350_s1 + $0x570] sm:$0xff] }
  0xd7   :  { %4977 = vmatprep.subr.bf16.mxu1 %v4976_v1  ;;  %v211_v61 = vld [vmem:[%s11350_s1 + $0x530] sm:$0xff]  ;;  %v240_v1 = vld [vmem:[%s11350_s1 + $0x618] sm:$0xff]  ;;  %v4802_v4 = vpack.c.bf16 %v219_v60, %v209_v59  ;;  %v5016_v59 = vpack.c.bf16 %v322_v52, %v312_v51  ;;  %v321_v60 = vld [vmem:[%s11350_s1 + $0x8a0] sm:$0xff] }
  0xd8   :  { %v4998_v5 = vpack.c.bf16 %v221_v63, %v211_v61  ;;  %v4804_v6 = vpack.c.bf16 %v240_v1, %v230_v0  ;;  %v330_v61 = vld [vmem:[%s11350_s1 + $0x8e8] sm:$0xff]  ;;  %v332_v63 = vld [vmem:[%s11350_s1 + $0x8f8] sm:$0xff] }
  0xd9   :  { %4783 = vmatpush1.bf16.msra.mxu0 %v4782_v7  ;;  %v229_v7 = vld [vmem:[%s11350_s1 + $0x5c0] sm:$0xff]  ;;  %v342_v0 = vld [vmem:[%s11350_s1 + $0x948] sm:$0xff] }
  0xda   :  { %4979 = vmatpush1.bf16.msra.mxu1 %v4978_v8  ;;  %4785 = vmatprep.subr.bf16.mxu0 %v4784_v9  ;;  %v239_v8 = vld [vmem:[%s11350_s1 + $0x610] sm:$0xff] }
  0xdb   :  { %4981 = vmatprep.subr.bf16.mxu1 %v4980_v13  ;;  %v231_v9 = vld [vmem:[%s11350_s1 + $0x5d0] sm:$0xff]  ;;  %v260_v13 = vld [vmem:[%s11350_s1 + $0x6b8] sm:$0xff]  ;;  %v4806_v16 = vpack.c.bf16 %v239_v8, %v229_v7  ;;  %v5020_v7 = vpack.c.bf16 %v342_v0, %v332_v63  ;;  %v341_v8 = vld [vmem:[%s11350_s1 + $0x940] sm:$0xff] }
  0xdc   :  { %v5002_v17 = vpack.c.bf16 %v241_v11, %v231_v9  ;;  %v4808_v18 = vpack.c.bf16 %v260_v13, %v250_v12  ;;  %v350_v9 = vld [vmem:[%s11350_s1 + $0x988] sm:$0xff]  ;;  %v352_v11 = vld [vmem:[%s11350_s1 + $0x998] sm:$0xff] }
  0xdd   :  { %4787 = vmatpush1.bf16.msra.mxu0 %v4786_v19  ;;  %v249_v19 = vld [vmem:[%s11350_s1 + $0x660] sm:$0xff]  ;;  %v362_v12 = vld [vmem:[%s11350_s1 + $0x9e8] sm:$0xff] }
  0xde   :  { %4983 = vmatpush1.bf16.msra.mxu1 %v4982_v20  ;;  %4789 = vmatprep.subr.bf16.mxu0 %v4788_v21  ;;  %v259_v20 = vld [vmem:[%s11350_s1 + $0x6b0] sm:$0xff]  ;;  %v442_v63 = vld [vmem:[%s11350_s1 + $0xc68] sm:$0xff] }
  0xdf   :  { %4985 = vmatprep.subr.bf16.mxu1 %v4984_v26  ;;  %v251_v21 = vld [vmem:[%s11350_s1 + $0x670] sm:$0xff]  ;;  %v280_v26 = vld [vmem:[%s11350_s1 + $0x758] sm:$0xff]  ;;  %v4810_v29 = vpack.c.bf16 %v259_v20, %v249_v19  ;;  %v5024_v19 = vpack.c.bf16 %v362_v12, %v352_v11  ;;  %v361_v20 = vld [vmem:[%s11350_s1 + $0x9e0] sm:$0xff] }
  0xe0   :  { %v5006_v30 = vpack.c.bf16 %v261_v23, %v251_v21  ;;  %v4812_v31 = vpack.c.bf16 %v280_v26, %v270_v25  ;;  %v370_v21 = vld [vmem:[%s11350_s1 + $0xa28] sm:$0xff]  ;;  %v372_v23 = vld [vmem:[%s11350_s1 + $0xa38] sm:$0xff] }
  0xe1   :  { %4791 = vmatpush1.bf16.msra.mxu0 %v4790_v32  ;;  %v269_v32 = vld [vmem:[%s11350_s1 + $0x700] sm:$0xff]  ;;  %v382_v25 = vld [vmem:[%s11350_s1 + $0xa88] sm:$0xff] }
  0xe2   :  { %4987 = vmatpush1.bf16.msra.mxu1 %v4986_v33  ;;  %4793 = vmatprep.subr.bf16.mxu0 %v4792_v34  ;;  %v279_v33 = vld [vmem:[%s11350_s1 + $0x750] sm:$0xff]  ;;  %v462_v11 = vld [vmem:[%s11350_s1 + $0xd08] sm:$0xff] }
  0xe3   :  { %4989 = vmatprep.subr.bf16.mxu1 %v4988_v38  ;;  %v271_v34 = vld [vmem:[%s11350_s1 + $0x710] sm:$0xff]  ;;  %v300_v38 = vld [vmem:[%s11350_s1 + $0x7f8] sm:$0xff]  ;;  %v4814_v41 = vpack.c.bf16 %v279_v33, %v269_v32  ;;  %v5028_v32 = vpack.c.bf16 %v382_v25, %v372_v23  ;;  %v381_v33 = vld [vmem:[%s11350_s1 + $0xa80] sm:$0xff] }
  0xe4   :  { %v5010_v42 = vpack.c.bf16 %v281_v36, %v271_v34  ;;  %v4816_v43 = vpack.c.bf16 %v300_v38, %v290_v37  ;;  %v390_v34 = vld [vmem:[%s11350_s1 + $0xac8] sm:$0xff]  ;;  %v392_v36 = vld [vmem:[%s11350_s1 + $0xad8] sm:$0xff] }
  0xe5   :  { %4795 = vmatpush1.bf16.msra.mxu0 %v4794_v44  ;;  %v289_v44 = vld [vmem:[%s11350_s1 + $0x7a0] sm:$0xff]  ;;  %v402_v37 = vld [vmem:[%s11350_s1 + $0xb28] sm:$0xff] }
  0xe6   :  { %4991 = vmatpush1.bf16.msra.mxu1 %v4990_v45  ;;  %4797 = vmatprep.subr.bf16.mxu0 %v4796_v46  ;;  %v299_v45 = vld [vmem:[%s11350_s1 + $0x7f0] sm:$0xff]  ;;  %v482_v23 = vld [vmem:[%s11350_s1 + $0xda8] sm:$0xff] }
  0xe7   :  { %4993 = vmatprep.subr.bf16.mxu1 %v4992_v50  ;;  %v291_v46 = vld [vmem:[%s11350_s1 + $0x7b0] sm:$0xff]  ;;  %v320_v50 = vld [vmem:[%s11350_s1 + $0x898] sm:$0xff]  ;;  %v4818_v53 = vpack.c.bf16 %v299_v45, %v289_v44  ;;  %v5032_v44 = vpack.c.bf16 %v402_v37, %v392_v36  ;;  %v401_v45 = vld [vmem:[%s11350_s1 + $0xb20] sm:$0xff] }
  0xe8   :  { %v5014_v54 = vpack.c.bf16 %v301_v48, %v291_v46  ;;  %v4820_v55 = vpack.c.bf16 %v320_v50, %v310_v49  ;;  %v410_v46 = vld [vmem:[%s11350_s1 + $0xb68] sm:$0xff]  ;;  %v6099_v48 = vld [vmem:[%s11351_s0] sm:$0xff]  ;;  %v412_v49 = vld [vmem:[%s11350_s1 + $0xb78] sm:$0xff] }
  0xe9   :  { %4799 = vmatpush1.bf16.msra.mxu0 %v4798_v56  ;;  %v309_v56 = vld [vmem:[%s11350_s1 + $0x840] sm:$0xff]  ;;  %v422_v50 = vld [vmem:[%s11350_s1 + $0xbc8] sm:$0xff] }
  0xea   :  { %4995 = vmatpush1.bf16.msra.mxu1 %v4994_v57  ;;  %4801 = vmatprep.subr.bf16.mxu0 %v4800_v58  ;;  %v319_v57 = vld [vmem:[%s11350_s1 + $0x890] sm:$0xff]  ;;  %v502_v36 = vld [vmem:[%s11350_s1 + $0xe48] sm:$0xff] }
  0xeb   :  { %4997 = vmatprep.subr.bf16.mxu1 %v4996_v62  ;;  %v311_v58 = vld [vmem:[%s11350_s1 + $0x850] sm:$0xff]  ;;  %v340_v62 = vld [vmem:[%s11350_s1 + $0x938] sm:$0xff]  ;;  %v4822_v1 = vpack.c.bf16 %v319_v57, %v309_v56  ;;  %v5036_v57 = vpack.c.bf16 %v422_v50, %v412_v49 }
  0xec   :  { %v5018_v2 = vpack.c.bf16 %v321_v60, %v311_v58  ;;  %v4824_v3 = vpack.c.bf16 %v340_v62, %v330_v61  ;;  %v411_v56 = vld [vmem:[%s11350_s1 + $0xb70] sm:$0xff]  ;;  %v421_v58 = vld [vmem:[%s11350_s1 + $0xbc0] sm:$0xff]  ;;  %v440_v60 = vld [vmem:[%s11350_s1 + $0xc58] sm:$0xff] }
  0xed   :  { %4803 = vmatpush1.bf16.msra.mxu0 %v4802_v4  ;;  %v329_v4 = vld [vmem:[%s11350_s1 + $0x8e0] sm:$0xff]  ;;  %v6100_v61 = vld [vmem:[%s11351_s0 + $0x18] sm:$0xff] }
  0xee   :  { %4999 = vmatpush1.bf16.msra.mxu1 %v4998_v5  ;;  %4805 = vmatprep.subr.bf16.mxu0 %v4804_v6  ;;  %v339_v5 = vld [vmem:[%s11350_s1 + $0x930] sm:$0xff]  ;;  %v432_v62 = vld [vmem:[%s11350_s1 + $0xc18] sm:$0xff] }
  0xef   :  { %5001 = vmatprep.subr.bf16.mxu1 %v5000_v10  ;;  %v331_v6 = vld [vmem:[%s11350_s1 + $0x8f0] sm:$0xff]  ;;  %v360_v10 = vld [vmem:[%s11350_s1 + $0x9d8] sm:$0xff]  ;;  %v4826_v13 = vpack.c.bf16 %v339_v5, %v329_v4 }
  0xf0   :  { %v5022_v14 = vpack.c.bf16 %v341_v8, %v331_v6  ;;  %v4828_v15 = vpack.c.bf16 %v360_v10, %v350_v9  ;;  %v439_v4 = vld [vmem:[%s11350_s1 + $0xc50] sm:$0xff]  ;;  %v5040_v6 = vpack.c.bf16 %v442_v63, %v432_v62  ;;  %v450_v8 = vld [vmem:[%s11350_s1 + $0xca8] sm:$0xff]  ;;  %v460_v9 = vld [vmem:[%s11350_s1 + $0xcf8] sm:$0xff] }
  0xf1   :  { %4807 = vmatpush1.bf16.msra.mxu0 %v4806_v16  ;;  %v349_v16 = vld [vmem:[%s11350_s1 + $0x980] sm:$0xff]  ;;  %v431_v5 = vld [vmem:[%s11350_s1 + $0xc10] sm:$0xff]  ;;  %v452_v10 = vld [vmem:[%s11350_s1 + $0xcb8] sm:$0xff] }
  0xf2   :  { %5003 = vmatpush1.bf16.msra.mxu1 %v5002_v17  ;;  %4809 = vmatprep.subr.bf16.mxu0 %v4808_v18  ;;  %v359_v17 = vld [vmem:[%s11350_s1 + $0x9d0] sm:$0xff] }
  0xf3   :  { %5005 = vmatprep.subr.bf16.mxu1 %v5004_v22  ;;  %v351_v18 = vld [vmem:[%s11350_s1 + $0x990] sm:$0xff]  ;;  %v380_v22 = vld [vmem:[%s11350_s1 + $0xa78] sm:$0xff]  ;;  %v4830_v26 = vpack.c.bf16 %v359_v17, %v349_v16 }
  0xf4   :  { %v5026_v27 = vpack.c.bf16 %v361_v20, %v351_v18  ;;  %v4832_v28 = vpack.c.bf16 %v380_v22, %v370_v21  ;;  %v459_v16 = vld [vmem:[%s11350_s1 + $0xcf0] sm:$0xff]  ;;  %v5044_v18 = vpack.c.bf16 %v462_v11, %v452_v10  ;;  %v470_v20 = vld [vmem:[%s11350_s1 + $0xd48] sm:$0xff]  ;;  %v480_v21 = vld [vmem:[%s11350_s1 + $0xd98] sm:$0xff] }
  0xf5   :  { %4811 = vmatpush1.bf16.msra.mxu0 %v4810_v29  ;;  %v369_v29 = vld [vmem:[%s11350_s1 + $0xa20] sm:$0xff]  ;;  %v451_v17 = vld [vmem:[%s11350_s1 + $0xcb0] sm:$0xff]  ;;  %v472_v22 = vld [vmem:[%s11350_s1 + $0xd58] sm:$0xff] }
  0xf6   :  { %5007 = vmatpush1.bf16.msra.mxu1 %v5006_v30  ;;  %4813 = vmatprep.subr.bf16.mxu0 %v4812_v31  ;;  %v379_v30 = vld [vmem:[%s11350_s1 + $0xa70] sm:$0xff] }
  0xf7   :  { %5009 = vmatprep.subr.bf16.mxu1 %v5008_v35  ;;  %v371_v31 = vld [vmem:[%s11350_s1 + $0xa30] sm:$0xff]  ;;  %v400_v35 = vld [vmem:[%s11350_s1 + $0xb18] sm:$0xff]  ;;  %v4834_v38 = vpack.c.bf16 %v379_v30, %v369_v29 }
  0xf8   :  { %v5030_v39 = vpack.c.bf16 %v381_v33, %v371_v31  ;;  %v4836_v40 = vpack.c.bf16 %v400_v35, %v390_v34  ;;  %v479_v29 = vld [vmem:[%s11350_s1 + $0xd90] sm:$0xff]  ;;  %v5048_v31 = vpack.c.bf16 %v482_v23, %v472_v22  ;;  %v490_v33 = vld [vmem:[%s11350_s1 + $0xde8] sm:$0xff]  ;;  %v500_v34 = vld [vmem:[%s11350_s1 + $0xe38] sm:$0xff] }
  0xf9   :  { %4815 = vmatpush1.bf16.msra.mxu0 %v4814_v41  ;;  %v389_v41 = vld [vmem:[%s11350_s1 + $0xac0] sm:$0xff]  ;;  %v471_v30 = vld [vmem:[%s11350_s1 + $0xd50] sm:$0xff]  ;;  %v492_v35 = vld [vmem:[%s11350_s1 + $0xdf8] sm:$0xff] }
  0xfa   :  { %5011 = vmatpush1.bf16.msra.mxu1 %v5010_v42  ;;  %4817 = vmatprep.subr.bf16.mxu0 %v4816_v43  ;;  %v399_v42 = vld [vmem:[%s11350_s1 + $0xb10] sm:$0xff] }
  0xfb   :  { %5013 = vmatprep.subr.bf16.mxu1 %v5012_v47  ;;  %v391_v43 = vld [vmem:[%s11350_s1 + $0xad0] sm:$0xff]  ;;  %v420_v47 = vld [vmem:[%s11350_s1 + $0xbb8] sm:$0xff]  ;;  %v4838_v51 = vpack.c.bf16 %v399_v42, %v389_v41 }
  0xfc   :  { %v5034_v52 = vpack.c.bf16 %v401_v45, %v391_v43  ;;  %v499_v41 = vld [vmem:[%s11350_s1 + $0xe30] sm:$0xff]  ;;  %v5052_v43 = vpack.c.bf16 %v502_v36, %v492_v35  ;;  %v510_v45 = vld [vmem:[%s11350_s1 + $0xe88] sm:$0xff] }
  0xfd   :  { %4819 = vmatpush1.bf16.msra.mxu0 %v4818_v53  ;;  %v4840_v53 = vpack.c.bf16 %v420_v47, %v410_v46  ;;  %v491_v42 = vld [vmem:[%s11350_s1 + $0xdf0] sm:$0xff]  ;;  %v520_v46 = vld [vmem:[%s11350_s1 + $0xed8] sm:$0xff] }
  0xfe   :  { %5015 = vmatpush1.bf16.msra.mxu1 %v5014_v54  ;;  %4821 = vmatprep.subr.bf16.mxu0 %v4820_v55  ;;  %v409_v54 = vld [vmem:[%s11350_s1 + $0xb60] sm:$0xff]  ;;  %v419_v55 = vld [vmem:[%s11350_s1 + $0xbb0] sm:$0xff]  ;;  %v512_v47 = vld [vmem:[%s11350_s1 + $0xe98] sm:$0xff] }
  0xff   :  { %5017 = vmatprep.subr.bf16.mxu1 %v5016_v59  ;;  %v430_v59 = vld [vmem:[%s11350_s1 + $0xc08] sm:$0xff]  ;;  %v4842_v0 = vpack.c.bf16 %v419_v55, %v409_v54  ;;  %v511_v54 = vld [vmem:[%s11350_s1 + $0xe90] sm:$0xff] }
 0x101   :  { %4823 = vmatpush1.bf16.msra.mxu0 %v4822_v1  ;;  %v5038_v1 = vpack.c.bf16 %v421_v58, %v411_v56  ;;  %v521_v56 = vld [vmem:[%s11350_s1 + $0xee0] sm:$0xff]  ;;  %v540_v58 = vld [vmem:[%s11350_s1 + $0xf78] sm:$0xff] }
 0x102   :  { %5019 = vmatpush1.bf16.msra.mxu1 %v5018_v2  ;;  %4825 = vmatprep.subr.bf16.mxu0 %v4824_v3  ;;  %v4844_v2 = vpack.c.bf16 %v440_v60, %v430_v59  ;;  %v429_v3 = vld [vmem:[%s11350_s1 + $0xc00] sm:$0xff]  ;;  %v532_v59 = vld [vmem:[%s11350_s1 + $0xf38] sm:$0xff]  ;;  %v542_v60 = vld [vmem:[%s11350_s1 + $0xf88] sm:$0xff]  ;;  %v5058_v62 = vpack.c.bf16 %v521_v56, %v511_v54 }
 0x103   :  { %5021 = vmatprep.subr.bf16.mxu1 %v5020_v7  ;;  %v441_v7 = vld [vmem:[%s11350_s1 + $0xc60] sm:$0xff]  ;;  %v4846_v12 = vpack.c.bf16 %v439_v4, %v429_v3  ;;  %v5060_v3 = vpack.c.bf16 %v542_v60, %v532_v59  ;;  %v630_v54 = vld [vmem:[%s11350_s1 + $0x1248] sm:$0xff]  ;;  %v632_v56 = vld [vmem:[%s11350_s1 + $0x1258] sm:$0xff] }
 0x104   :  { %v541_v4 = vld [vmem:[%s11350_s1 + $0xf80] sm:$0xff] }
 0x105   :  { %4827 = vmatpush1.bf16.msra.mxu0 %v4826_v13  ;;  %v5042_v13 = vpack.c.bf16 %v441_v7, %v431_v5  ;;  %v550_v5 = vld [vmem:[%s11350_s1 + $0xfc8] sm:$0xff]  ;;  %v552_v7 = vld [vmem:[%s11350_s1 + $0xfd8] sm:$0xff] }
 0x106   :  { %5023 = vmatpush1.bf16.msra.mxu1 %v5022_v14  ;;  %4829 = vmatprep.subr.bf16.mxu0 %v4828_v15  ;;  %v4848_v14 = vpack.c.bf16 %v460_v9, %v450_v8  ;;  %v449_v15 = vld [vmem:[%s11350_s1 + $0xca0] sm:$0xff]  ;;  %v562_v8 = vld [vmem:[%s11350_s1 + $0x1028] sm:$0xff] }
 0x107   :  { %5025 = vmatprep.subr.bf16.mxu1 %v5024_v19  ;;  %v461_v19 = vld [vmem:[%s11350_s1 + $0xd00] sm:$0xff]  ;;  %v4850_v25 = vpack.c.bf16 %v459_v16, %v449_v15  ;;  %v5064_v15 = vpack.c.bf16 %v562_v8, %v552_v7 }
 0x108   :  { %v561_v16 = vld [vmem:[%s11350_s1 + $0x1020] sm:$0xff] }
 0x109   :  { %4831 = vmatpush1.bf16.msra.mxu0 %v4830_v26  ;;  %v5046_v26 = vpack.c.bf16 %v461_v19, %v451_v17  ;;  %v570_v17 = vld [vmem:[%s11350_s1 + $0x1068] sm:$0xff]  ;;  %v572_v19 = vld [vmem:[%s11350_s1 + $0x1078] sm:$0xff] }
 0x10a   :  { %5027 = vmatpush1.bf16.msra.mxu1 %v5026_v27  ;;  %4833 = vmatprep.subr.bf16.mxu0 %v4832_v28  ;;  %v4852_v27 = vpack.c.bf16 %v480_v21, %v470_v20  ;;  %v469_v28 = vld [vmem:[%s11350_s1 + $0xd40] sm:$0xff]  ;;  %v582_v20 = vld [vmem:[%s11350_s1 + $0x10c8] sm:$0xff] }
 0x10b   :  { %5029 = vmatprep.subr.bf16.mxu1 %v5028_v32  ;;  %v481_v32 = vld [vmem:[%s11350_s1 + $0xda0] sm:$0xff]  ;;  %v4854_v37 = vpack.c.bf16 %v479_v29, %v469_v28  ;;  %v5068_v28 = vpack.c.bf16 %v582_v20, %v572_v19 }
 0x10c   :  { %1716 = vmatmul.mubr.f32.vlgmr.msra.gmra.mrb[2].mxu0 %v6099_v48  ;;  %v581_v29 = vld [vmem:[%s11350_s1 + $0x10c0] sm:$0xff] }
 0x10d   :  { %4835 = vmatpush1.bf16.msra.mxu0 %v4834_v38  ;;  %2000 = vmatmul.mubr.f32.vlgmr.msra.gmra.mrb[2].mxu1 %v6099_v48  ;;  %v5050_v38 = vpack.c.bf16 %v481_v32, %v471_v30  ;;  %v522_v48 = vld [vmem:[%s11350_s1 + $0xee8] sm:$0xff]  ;;  %v592_v32 = vld [vmem:[%s11350_s1 + $0x1118] sm:$0xff] }
 0x10e   :  { %5031 = vmatpush1.bf16.msra.mxu1 %v5030_v39  ;;  %4837 = vmatprep.subr.bf16.mxu0 %v4836_v40  ;;  %v4856_v39 = vpack.c.bf16 %v500_v34, %v490_v33  ;;  %v489_v40 = vld [vmem:[%s11350_s1 + $0xde0] sm:$0xff]  ;;  %v5056_v55 = vpack.c.bf16 %v522_v48, %v512_v47  ;;  %v590_v30 = vld [vmem:[%s11350_s1 + $0x1108] sm:$0xff] }
 0x10f   :  { %5033 = vmatprep.subr.bf16.mxu1 %v5032_v44  ;;  %1786 = vmatprep.mubr.f32.mxu0 %v6100_v61  ;;  %v501_v44 = vld [vmem:[%s11350_s1 + $0xe40] sm:$0xff]  ;;  %v4858_v49 = vpack.c.bf16 %v499_v41, %v489_v40  ;;  %v602_v33 = vld [vmem:[%s11350_s1 + $0x1168] sm:$0xff] }
 0x110   :  { %2070 = vmatprep.mubr.f32.mxu1 %v6100_v61  ;;  %v5054_v50 = vpack.c.bf16 %v501_v44, %v491_v42  ;;  %v5072_v40 = vpack.c.bf16 %v602_v33, %v592_v32  ;;  %v601_v41 = vld [vmem:[%s11350_s1 + $0x1160] sm:$0xff]  ;;  %v610_v42 = vld [vmem:[%s11350_s1 + $0x11a8] sm:$0xff]  ;;  %v612_v44 = vld [vmem:[%s11350_s1 + $0x11b8] sm:$0xff] }
 0x111   :  { %4839 = vmatpush1.bf16.msra.mxu0 %v4838_v51  ;;  %v4860_v51 = vpack.c.bf16 %v520_v46, %v510_v45  ;;  %v622_v45 = vld [vmem:[%s11350_s1 + $0x1208] sm:$0xff] }
 0x112   :  { %5035 = vmatpush1.bf16.msra.mxu1 %v5034_v52  ;;  %4841 = vmatprep.subr.bf16.mxu0 %v4840_v53  ;;  %v509_v52 = vld [vmem:[%s11350_s1 + $0xe80] sm:$0xff]  ;;  %v519_v53 = vld [vmem:[%s11350_s1 + $0xed0] sm:$0xff] }
 0x113   :  { %5037 = vmatprep.subr.bf16.mxu1 %v5036_v57  ;;  %v530_v57 = vld [vmem:[%s11350_s1 + $0xf28] sm:$0xff]  ;;  %v4862_v61 = vpack.c.bf16 %v519_v53, %v509_v52  ;;  %v5076_v52 = vpack.c.bf16 %v622_v45, %v612_v44  ;;  %v621_v53 = vld [vmem:[%s11350_s1 + $0x1200] sm:$0xff] }
 0x114   :  { %v4864_v63 = vpack.c.bf16 %v540_v58, %v530_v57  ;;  %v642_v57 = vld [vmem:[%s11350_s1 + $0x12a8] sm:$0xff] }
 0x115   :  { %4843 = vmatpush1.bf16.msra.mxu0 %v4842_v0  ;;  %v529_v0 = vld [vmem:[%s11350_s1 + $0xf20] sm:$0xff] }
 0x116   :  { %5039 = vmatpush1.bf16.msra.mxu1 %v5038_v1  ;;  %4845 = vmatprep.subr.bf16.mxu0 %v4844_v2  ;;  %v539_v1 = vld [vmem:[%s11350_s1 + $0xf70] sm:$0xff] }
 0x117   :  { %5041 = vmatprep.subr.bf16.mxu1 %v5040_v6  ;;  %v531_v2 = vld [vmem:[%s11350_s1 + $0xf30] sm:$0xff]  ;;  %v560_v6 = vld [vmem:[%s11350_s1 + $0x1018] sm:$0xff]  ;;  %v4866_v9 = vpack.c.bf16 %v539_v1, %v529_v0  ;;  %v5080_v0 = vpack.c.bf16 %v642_v57, %v632_v56  ;;  %v641_v1 = vld [vmem:[%s11350_s1 + $0x12a0] sm:$0xff] }
 0x118   :  { %v5062_v10 = vpack.c.bf16 %v541_v4, %v531_v2  ;;  %v4868_v11 = vpack.c.bf16 %v560_v6, %v550_v5  ;;  %v650_v2 = vld [vmem:[%s11350_s1 + $0x12e8] sm:$0xff]  ;;  %v652_v4 = vld [vmem:[%s11350_s1 + $0x12f8] sm:$0xff] }
 0x119   :  { %4847 = vmatpush1.bf16.msra.mxu0 %v4846_v12  ;;  %v549_v12 = vld [vmem:[%s11350_s1 + $0xfc0] sm:$0xff]  ;;  %v662_v5 = vld [vmem:[%s11350_s1 + $0x1348] sm:$0xff] }
 0x11a   :  { %5043 = vmatpush1.bf16.msra.mxu1 %v5042_v13  ;;  %4849 = vmatprep.subr.bf16.mxu0 %v4848_v14  ;;  %v559_v13 = vld [vmem:[%s11350_s1 + $0x1010] sm:$0xff] }
 0x11b   :  { %5045 = vmatprep.subr.bf16.mxu1 %v5044_v18  ;;  %v551_v14 = vld [vmem:[%s11350_s1 + $0xfd0] sm:$0xff]  ;;  %v580_v18 = vld [vmem:[%s11350_s1 + $0x10b8] sm:$0xff]  ;;  %v4870_v21 = vpack.c.bf16 %v559_v13, %v549_v12  ;;  %v5084_v12 = vpack.c.bf16 %v662_v5, %v652_v4  ;;  %v661_v13 = vld [vmem:[%s11350_s1 + $0x1340] sm:$0xff] }
 0x11c   :  { %v5066_v22 = vpack.c.bf16 %v561_v16, %v551_v14  ;;  %v4872_v23 = vpack.c.bf16 %v580_v18, %v570_v17  ;;  %v670_v14 = vld [vmem:[%s11350_s1 + $0x1388] sm:$0xff]  ;;  %v672_v16 = vld [vmem:[%s11350_s1 + $0x1398] sm:$0xff] }
 0x11d   :  { %4851 = vmatpush1.bf16.msra.mxu0 %v4850_v25  ;;  %v569_v25 = vld [vmem:[%s11350_s1 + $0x1060] sm:$0xff]  ;;  %v682_v17 = vld [vmem:[%s11350_s1 + $0x13e8] sm:$0xff] }
 0x11e   :  { %5047 = vmatpush1.bf16.msra.mxu1 %v5046_v26  ;;  %4853 = vmatprep.subr.bf16.mxu0 %v4852_v27  ;;  %v579_v26 = vld [vmem:[%s11350_s1 + $0x10b0] sm:$0xff]  ;;  %v762_v4 = vld [vmem:[%s11350_s1 + $0x1668] sm:$0xff] }
 0x11f   :  { %5049 = vmatprep.subr.bf16.mxu1 %v5048_v31  ;;  %v571_v27 = vld [vmem:[%s11350_s1 + $0x1070] sm:$0xff]  ;;  %v600_v31 = vld [vmem:[%s11350_s1 + $0x1158] sm:$0xff]  ;;  %v4874_v34 = vpack.c.bf16 %v579_v26, %v569_v25  ;;  %v5088_v25 = vpack.c.bf16 %v682_v17, %v672_v16  ;;  %v681_v26 = vld [vmem:[%s11350_s1 + $0x13e0] sm:$0xff] }
 0x120   :  { %v5070_v35 = vpack.c.bf16 %v581_v29, %v571_v27  ;;  %v4876_v36 = vpack.c.bf16 %v600_v31, %v590_v30  ;;  %v690_v27 = vld [vmem:[%s11350_s1 + $0x1428] sm:$0xff]  ;;  %v692_v29 = vld [vmem:[%s11350_s1 + $0x1438] sm:$0xff] }
 0x121   :  { %4855 = vmatpush1.bf16.msra.mxu0 %v4854_v37  ;;  %v589_v37 = vld [vmem:[%s11350_s1 + $0x1100] sm:$0xff]  ;;  %v702_v30 = vld [vmem:[%s11350_s1 + $0x1488] sm:$0xff] }
 0x122   :  { %5051 = vmatpush1.bf16.msra.mxu1 %v5050_v38  ;;  %4857 = vmatprep.subr.bf16.mxu0 %v4856_v39  ;;  %v599_v38 = vld [vmem:[%s11350_s1 + $0x1150] sm:$0xff]  ;;  %v782_v16 = vld [vmem:[%s11350_s1 + $0x1708] sm:$0xff] }
 0x123   :  { %5053 = vmatprep.subr.bf16.mxu1 %v5052_v43  ;;  %v591_v39 = vld [vmem:[%s11350_s1 + $0x1110] sm:$0xff]  ;;  %v620_v43 = vld [vmem:[%s11350_s1 + $0x11f8] sm:$0xff]  ;;  %v4878_v46 = vpack.c.bf16 %v599_v38, %v589_v37  ;;  %v5092_v37 = vpack.c.bf16 %v702_v30, %v692_v29  ;;  %v701_v38 = vld [vmem:[%s11350_s1 + $0x1480] sm:$0xff] }
 0x124   :  { %v5074_v47 = vpack.c.bf16 %v601_v41, %v591_v39  ;;  %v4880_v48 = vpack.c.bf16 %v620_v43, %v610_v42  ;;  %v710_v39 = vld [vmem:[%s11350_s1 + $0x14c8] sm:$0xff]  ;;  %v712_v41 = vld [vmem:[%s11350_s1 + $0x14d8] sm:$0xff] }
 0x125   :  { %4859 = vmatpush1.bf16.msra.mxu0 %v4858_v49  ;;  %v609_v49 = vld [vmem:[%s11350_s1 + $0x11a0] sm:$0xff]  ;;  %v722_v42 = vld [vmem:[%s11350_s1 + $0x1528] sm:$0xff] }
 0x126   :  { %5055 = vmatpush1.bf16.msra.mxu1 %v5054_v50  ;;  %4861 = vmatprep.subr.bf16.mxu0 %v4860_v51  ;;  %v619_v50 = vld [vmem:[%s11350_s1 + $0x11f0] sm:$0xff]  ;;  %v802_v29 = vld [vmem:[%s11350_s1 + $0x17a8] sm:$0xff] }
 0x127   :  { %5057 = vmatprep.subr.bf16.mxu1 %v5056_v55  ;;  %v611_v51 = vld [vmem:[%s11350_s1 + $0x11b0] sm:$0xff]  ;;  %v640_v55 = vld [vmem:[%s11350_s1 + $0x1298] sm:$0xff]  ;;  %v4882_v58 = vpack.c.bf16 %v619_v50, %v609_v49  ;;  %v5096_v49 = vpack.c.bf16 %v722_v42, %v712_v41  ;;  %v721_v50 = vld [vmem:[%s11350_s1 + $0x1520] sm:$0xff] }
 0x128   :  { %v5078_v59 = vpack.c.bf16 %v621_v53, %v611_v51  ;;  %v4884_v60 = vpack.c.bf16 %v640_v55, %v630_v54  ;;  %v730_v51 = vld [vmem:[%s11350_s1 + $0x1568] sm:$0xff]  ;;  %v6101_v53 = vld [vmem:[%s11351_s0 + $0x10] sm:$0xff]  ;;  %v732_v54 = vld [vmem:[%s11350_s1 + $0x1578] sm:$0xff] }
 0x129   :  { %4863 = vmatpush1.bf16.msra.mxu0 %v4862_v61  ;;  %v629_v61 = vld [vmem:[%s11350_s1 + $0x1240] sm:$0xff]  ;;  %v742_v55 = vld [vmem:[%s11350_s1 + $0x15c8] sm:$0xff] }
 0x12a   :  { %5059 = vmatpush1.bf16.msra.mxu1 %v5058_v62  ;;  %4865 = vmatprep.subr.bf16.mxu0 %v4864_v63  ;;  %v639_v62 = vld [vmem:[%s11350_s1 + $0x1290] sm:$0xff]  ;;  %v822_v41 = vld [vmem:[%s11350_s1 + $0x1848] sm:$0xff] }
 0x12b   :  { %5061 = vmatprep.subr.bf16.mxu1 %v5060_v3  ;;  %v631_v63 = vld [vmem:[%s11350_s1 + $0x1250] sm:$0xff]  ;;  %v660_v3 = vld [vmem:[%s11350_s1 + $0x1338] sm:$0xff]  ;;  %v4886_v6 = vpack.c.bf16 %v639_v62, %v629_v61  ;;  %v5100_v62 = vpack.c.bf16 %v742_v55, %v732_v54 }
 0x12c   :  { %v5082_v7 = vpack.c.bf16 %v641_v1, %v631_v63  ;;  %v4888_v8 = vpack.c.bf16 %v660_v3, %v650_v2  ;;  %v731_v61 = vld [vmem:[%s11350_s1 + $0x1570] sm:$0xff]  ;;  %v741_v63 = vld [vmem:[%s11350_s1 + $0x15c0] sm:$0xff]  ;;  %v760_v1 = vld [vmem:[%s11350_s1 + $0x1658] sm:$0xff] }
 0x12d   :  { %4867 = vmatpush1.bf16.msra.mxu0 %v4866_v9  ;;  %v649_v9 = vld [vmem:[%s11350_s1 + $0x12e0] sm:$0xff]  ;;  %v6102_v2 = vld [vmem:[%s11351_s0 + $0x28] sm:$0xff]  ;;  %v752_v3 = vld [vmem:[%s11350_s1 + $0x1618] sm:$0xff] }
 0x12e   :  { %5063 = vmatpush1.bf16.msra.mxu1 %v5062_v10  ;;  %4869 = vmatprep.subr.bf16.mxu0 %v4868_v11  ;;  %v659_v10 = vld [vmem:[%s11350_s1 + $0x1330] sm:$0xff] }
 0x12f   :  { %5065 = vmatprep.subr.bf16.mxu1 %v5064_v15  ;;  %v651_v11 = vld [vmem:[%s11350_s1 + $0x12f0] sm:$0xff]  ;;  %v680_v15 = vld [vmem:[%s11350_s1 + $0x13d8] sm:$0xff]  ;;  %v4890_v18 = vpack.c.bf16 %v659_v10, %v649_v9 }
 0x130   :  { %v5086_v19 = vpack.c.bf16 %v661_v13, %v651_v11  ;;  %v4892_v20 = vpack.c.bf16 %v680_v15, %v670_v14  ;;  %v759_v9 = vld [vmem:[%s11350_s1 + $0x1650] sm:$0xff]  ;;  %v5104_v11 = vpack.c.bf16 %v762_v4, %v752_v3  ;;  %v770_v13 = vld [vmem:[%s11350_s1 + $0x16a8] sm:$0xff]  ;;  %v780_v14 = vld [vmem:[%s11350_s1 + $0x16f8] sm:$0xff] }
 0x131   :  { %4871 = vmatpush1.bf16.msra.mxu0 %v4870_v21  ;;  %v669_v21 = vld [vmem:[%s11350_s1 + $0x1380] sm:$0xff]  ;;  %v751_v10 = vld [vmem:[%s11350_s1 + $0x1610] sm:$0xff]  ;;  %v772_v15 = vld [vmem:[%s11350_s1 + $0x16b8] sm:$0xff] }
 0x132   :  { %5067 = vmatpush1.bf16.msra.mxu1 %v5066_v22  ;;  %4873 = vmatprep.subr.bf16.mxu0 %v4872_v23  ;;  %v679_v22 = vld [vmem:[%s11350_s1 + $0x13d0] sm:$0xff] }
 0x133   :  { %5069 = vmatprep.subr.bf16.mxu1 %v5068_v28  ;;  %v671_v23 = vld [vmem:[%s11350_s1 + $0x1390] sm:$0xff]  ;;  %v700_v28 = vld [vmem:[%s11350_s1 + $0x1478] sm:$0xff]  ;;  %v4894_v31 = vpack.c.bf16 %v679_v22, %v669_v21 }
 0x134   :  { %v5090_v32 = vpack.c.bf16 %v681_v26, %v671_v23  ;;  %v4896_v33 = vpack.c.bf16 %v700_v28, %v690_v27  ;;  %v779_v21 = vld [vmem:[%s11350_s1 + $0x16f0] sm:$0xff]  ;;  %v5108_v23 = vpack.c.bf16 %v782_v16, %v772_v15  ;;  %v790_v26 = vld [vmem:[%s11350_s1 + $0x1748] sm:$0xff]  ;;  %v800_v27 = vld [vmem:[%s11350_s1 + $0x1798] sm:$0xff] }
 0x135   :  { %4875 = vmatpush1.bf16.msra.mxu0 %v4874_v34  ;;  %v689_v34 = vld [vmem:[%s11350_s1 + $0x1420] sm:$0xff]  ;;  %v771_v22 = vld [vmem:[%s11350_s1 + $0x16b0] sm:$0xff]  ;;  %v792_v28 = vld [vmem:[%s11350_s1 + $0x1758] sm:$0xff] }
 0x136   :  { %5071 = vmatpush1.bf16.msra.mxu1 %v5070_v35  ;;  %4877 = vmatprep.subr.bf16.mxu0 %v4876_v36  ;;  %v699_v35 = vld [vmem:[%s11350_s1 + $0x1470] sm:$0xff] }
 0x137   :  { %5073 = vmatprep.subr.bf16.mxu1 %v5072_v40  ;;  %v691_v36 = vld [vmem:[%s11350_s1 + $0x1430] sm:$0xff]  ;;  %v720_v40 = vld [vmem:[%s11350_s1 + $0x1518] sm:$0xff]  ;;  %v4898_v43 = vpack.c.bf16 %v699_v35, %v689_v34 }
 0x138   :  { %v5094_v44 = vpack.c.bf16 %v701_v38, %v691_v36  ;;  %v4900_v45 = vpack.c.bf16 %v720_v40, %v710_v39  ;;  %v799_v34 = vld [vmem:[%s11350_s1 + $0x1790] sm:$0xff]  ;;  %v5112_v36 = vpack.c.bf16 %v802_v29, %v792_v28  ;;  %v810_v38 = vld [vmem:[%s11350_s1 + $0x17e8] sm:$0xff]  ;;  %v820_v39 = vld [vmem:[%s11350_s1 + $0x1838] sm:$0xff] }
 0x139   :  { %4879 = vmatpush1.bf16.msra.mxu0 %v4878_v46  ;;  %v709_v46 = vld [vmem:[%s11350_s1 + $0x14c0] sm:$0xff]  ;;  %v791_v35 = vld [vmem:[%s11350_s1 + $0x1750] sm:$0xff]  ;;  %v812_v40 = vld [vmem:[%s11350_s1 + $0x17f8] sm:$0xff] }
 0x13a   :  { %5075 = vmatpush1.bf16.msra.mxu1 %v5074_v47  ;;  %4881 = vmatprep.subr.bf16.mxu0 %v4880_v48  ;;  %v719_v47 = vld [vmem:[%s11350_s1 + $0x1510] sm:$0xff] }
 0x13b   :  { %5077 = vmatprep.subr.bf16.mxu1 %v5076_v52  ;;  %v711_v48 = vld [vmem:[%s11350_s1 + $0x14d0] sm:$0xff]  ;;  %v740_v52 = vld [vmem:[%s11350_s1 + $0x15b8] sm:$0xff]  ;;  %v4902_v56 = vpack.c.bf16 %v719_v47, %v709_v46 }
 0x13c   :  { %v5098_v57 = vpack.c.bf16 %v721_v50, %v711_v48  ;;  %v819_v46 = vld [vmem:[%s11350_s1 + $0x1830] sm:$0xff]  ;;  %v5116_v48 = vpack.c.bf16 %v822_v41, %v812_v40  ;;  %v830_v50 = vld [vmem:[%s11350_s1 + $0x1888] sm:$0xff] }
 0x13d   :  { %4883 = vmatpush1.bf16.msra.mxu0 %v4882_v58  ;;  %v4904_v58 = vpack.c.bf16 %v740_v52, %v730_v51  ;;  %v811_v47 = vld [vmem:[%s11350_s1 + $0x17f0] sm:$0xff]  ;;  %v840_v51 = vld [vmem:[%s11350_s1 + $0x18d8] sm:$0xff] }
 0x13e   :  { %5079 = vmatpush1.bf16.msra.mxu1 %v5078_v59  ;;  %4885 = vmatprep.subr.bf16.mxu0 %v4884_v60  ;;  %v729_v59 = vld [vmem:[%s11350_s1 + $0x1560] sm:$0xff]  ;;  %v739_v60 = vld [vmem:[%s11350_s1 + $0x15b0] sm:$0xff]  ;;  %v832_v52 = vld [vmem:[%s11350_s1 + $0x1898] sm:$0xff] }
 0x13f   :  { %5081 = vmatprep.subr.bf16.mxu1 %v5080_v0  ;;  %v750_v0 = vld [vmem:[%s11350_s1 + $0x1608] sm:$0xff]  ;;  %v4906_v5 = vpack.c.bf16 %v739_v60, %v729_v59  ;;  %v831_v59 = vld [vmem:[%s11350_s1 + $0x1890] sm:$0xff] }
 0x141   :  { %4887 = vmatpush1.bf16.msra.mxu0 %v4886_v6  ;;  %v5102_v6 = vpack.c.bf16 %v741_v63, %v731_v61  ;;  %v841_v61 = vld [vmem:[%s11350_s1 + $0x18e0] sm:$0xff]  ;;  %v860_v63 = vld [vmem:[%s11350_s1 + $0x1978] sm:$0xff] }
 0x142   :  { %5083 = vmatpush1.bf16.msra.mxu1 %v5082_v7  ;;  %4889 = vmatprep.subr.bf16.mxu0 %v4888_v8  ;;  %v4908_v7 = vpack.c.bf16 %v760_v1, %v750_v0  ;;  %v749_v8 = vld [vmem:[%s11350_s1 + $0x1600] sm:$0xff]  ;;  %v852_v0 = vld [vmem:[%s11350_s1 + $0x1938] sm:$0xff]  ;;  %v862_v1 = vld [vmem:[%s11350_s1 + $0x1988] sm:$0xff]  ;;  %v5122_v3 = vpack.c.bf16 %v841_v61, %v831_v59 }
 0x143   :  { %5085 = vmatprep.subr.bf16.mxu1 %v5084_v12  ;;  %v761_v12 = vld [vmem:[%s11350_s1 + $0x1660] sm:$0xff]  ;;  %v4910_v17 = vpack.c.bf16 %v759_v9, %v749_v8  ;;  %v5124_v8 = vpack.c.bf16 %v862_v1, %v852_v0  ;;  %v950_v59 = vld [vmem:[%s11350_s1 + $0x1c48] sm:$0xff]  ;;  %v952_v61 = vld [vmem:[%s11350_s1 + $0x1c58] sm:$0xff] }
 0x144   :  { %v861_v9 = vld [vmem:[%s11350_s1 + $0x1980] sm:$0xff] }
 0x145   :  { %4891 = vmatpush1.bf16.msra.mxu0 %v4890_v18  ;;  %v5106_v18 = vpack.c.bf16 %v761_v12, %v751_v10  ;;  %v870_v10 = vld [vmem:[%s11350_s1 + $0x19c8] sm:$0xff]  ;;  %v872_v12 = vld [vmem:[%s11350_s1 + $0x19d8] sm:$0xff] }
 0x146   :  { %5087 = vmatpush1.bf16.msra.mxu1 %v5086_v19  ;;  %4893 = vmatprep.subr.bf16.mxu0 %v4892_v20  ;;  %v4912_v19 = vpack.c.bf16 %v780_v14, %v770_v13  ;;  %v769_v20 = vld [vmem:[%s11350_s1 + $0x16a0] sm:$0xff]  ;;  %v882_v13 = vld [vmem:[%s11350_s1 + $0x1a28] sm:$0xff] }
 0x147   :  { %5089 = vmatprep.subr.bf16.mxu1 %v5088_v25  ;;  %v781_v25 = vld [vmem:[%s11350_s1 + $0x1700] sm:$0xff]  ;;  %v4914_v30 = vpack.c.bf16 %v779_v21, %v769_v20  ;;  %v5128_v20 = vpack.c.bf16 %v882_v13, %v872_v12 }
 0x148   :  { %v881_v21 = vld [vmem:[%s11350_s1 + $0x1a20] sm:$0xff] }
 0x149   :  { %4895 = vmatpush1.bf16.msra.mxu0 %v4894_v31  ;;  %v5110_v31 = vpack.c.bf16 %v781_v25, %v771_v22  ;;  %v890_v22 = vld [vmem:[%s11350_s1 + $0x1a68] sm:$0xff]  ;;  %v892_v25 = vld [vmem:[%s11350_s1 + $0x1a78] sm:$0xff] }
 0x14a   :  { %5091 = vmatpush1.bf16.msra.mxu1 %v5090_v32  ;;  %4897 = vmatprep.subr.bf16.mxu0 %v4896_v33  ;;  %v4916_v32 = vpack.c.bf16 %v800_v27, %v790_v26  ;;  %v789_v33 = vld [vmem:[%s11350_s1 + $0x1740] sm:$0xff]  ;;  %v902_v26 = vld [vmem:[%s11350_s1 + $0x1ac8] sm:$0xff] }
 0x14b   :  { %5093 = vmatprep.subr.bf16.mxu1 %v5092_v37  ;;  %v801_v37 = vld [vmem:[%s11350_s1 + $0x17a0] sm:$0xff]  ;;  %v4918_v42 = vpack.c.bf16 %v799_v34, %v789_v33  ;;  %v5132_v33 = vpack.c.bf16 %v902_v26, %v892_v25 }
 0x14c   :  { %1787 = vmatmul.mubr.f32.vlgmr.msra.gmra.mrb[2].mxu0 %v6101_v53  ;;  %v901_v34 = vld [vmem:[%s11350_s1 + $0x1ac0] sm:$0xff] }
 0x14d   :  { %4899 = vmatpush1.bf16.msra.mxu0 %v4898_v43  ;;  %2071 = vmatmul.mubr.f32.vlgmr.msra.gmra.mrb[2].mxu1 %v6101_v53  ;;  %v5114_v43 = vpack.c.bf16 %v801_v37, %v791_v35  ;;  %v842_v53 = vld [vmem:[%s11350_s1 + $0x18e8] sm:$0xff]  ;;  %v912_v37 = vld [vmem:[%s11350_s1 + $0x1b18] sm:$0xff] }
 0x14e   :  { %5095 = vmatpush1.bf16.msra.mxu1 %v5094_v44  ;;  %4901 = vmatprep.subr.bf16.mxu0 %v4900_v45  ;;  %v4920_v44 = vpack.c.bf16 %v820_v39, %v810_v38  ;;  %v809_v45 = vld [vmem:[%s11350_s1 + $0x17e0] sm:$0xff]  ;;  %v5120_v60 = vpack.c.bf16 %v842_v53, %v832_v52  ;;  %v910_v35 = vld [vmem:[%s11350_s1 + $0x1b08] sm:$0xff] }
 0x14f   :  { %5097 = vmatprep.subr.bf16.mxu1 %v5096_v49  ;;  %1857 = vmatprep.mubr.f32.mxu0 %v6102_v2  ;;  %v821_v49 = vld [vmem:[%s11350_s1 + $0x1840] sm:$0xff]  ;;  %v4922_v54 = vpack.c.bf16 %v819_v46, %v809_v45  ;;  %v922_v38 = vld [vmem:[%s11350_s1 + $0x1b68] sm:$0xff] }
 0x150   :  { %2141 = vmatprep.mubr.f32.mxu1 %v6102_v2  ;;  %v5118_v55 = vpack.c.bf16 %v821_v49, %v811_v47  ;;  %v5136_v45 = vpack.c.bf16 %v922_v38, %v912_v37  ;;  %v921_v46 = vld [vmem:[%s11350_s1 + $0x1b60] sm:$0xff]  ;;  %v930_v47 = vld [vmem:[%s11350_s1 + $0x1ba8] sm:$0xff]  ;;  %v932_v49 = vld [vmem:[%s11350_s1 + $0x1bb8] sm:$0xff] }
 0x151   :  { %4903 = vmatpush1.bf16.msra.mxu0 %v4902_v56  ;;  %v4924_v56 = vpack.c.bf16 %v840_v51, %v830_v50  ;;  %v942_v50 = vld [vmem:[%s11350_s1 + $0x1c08] sm:$0xff] }
 0x152   :  { %5099 = vmatpush1.bf16.msra.mxu1 %v5098_v57  ;;  %4905 = vmatprep.subr.bf16.mxu0 %v4904_v58  ;;  %v829_v57 = vld [vmem:[%s11350_s1 + $0x1880] sm:$0xff]  ;;  %v839_v58 = vld [vmem:[%s11350_s1 + $0x18d0] sm:$0xff] }
 0x153   :  { %5101 = vmatprep.subr.bf16.mxu1 %v5100_v62  ;;  %v850_v62 = vld [vmem:[%s11350_s1 + $0x1928] sm:$0xff]  ;;  %v4926_v2 = vpack.c.bf16 %v839_v58, %v829_v57  ;;  %v5140_v57 = vpack.c.bf16 %v942_v50, %v932_v49  ;;  %v941_v58 = vld [vmem:[%s11350_s1 + $0x1c00] sm:$0xff] }
 0x154   :  { %v4928_v4 = vpack.c.bf16 %v860_v63, %v850_v62  ;;  %v962_v62 = vld [vmem:[%s11350_s1 + $0x1ca8] sm:$0xff] }
 0x155   :  { %4907 = vmatpush1.bf16.msra.mxu0 %v4906_v5  ;;  %v849_v5 = vld [vmem:[%s11350_s1 + $0x1920] sm:$0xff] }
 0x156   :  { %5103 = vmatpush1.bf16.msra.mxu1 %v5102_v6  ;;  %4909 = vmatprep.subr.bf16.mxu0 %v4908_v7  ;;  %v859_v6 = vld [vmem:[%s11350_s1 + $0x1970] sm:$0xff] }
 0x157   :  { %5105 = vmatprep.subr.bf16.mxu1 %v5104_v11  ;;  %v851_v7 = vld [vmem:[%s11350_s1 + $0x1930] sm:$0xff]  ;;  %v880_v11 = vld [vmem:[%s11350_s1 + $0x1a18] sm:$0xff]  ;;  %v4930_v14 = vpack.c.bf16 %v859_v6, %v849_v5  ;;  %v5144_v5 = vpack.c.bf16 %v962_v62, %v952_v61  ;;  %v961_v6 = vld [vmem:[%s11350_s1 + $0x1ca0] sm:$0xff]  ;;  %v1029_v62 = vlaneseq }
 0x158   :  { %v5126_v15 = vpack.c.bf16 %v861_v9, %v851_v7  ;;  %v4932_v16 = vpack.c.bf16 %v880_v11, %v870_v10  ;;  %v970_v7 = vld [vmem:[%s11350_s1 + $0x1ce8] sm:$0xff]  ;;  %v972_v9 = vld [vmem:[%s11350_s1 + $0x1cf8] sm:$0xff] }
 0x159   :  { %4911 = vmatpush1.bf16.msra.mxu0 %v4910_v17  ;;  %v869_v17 = vld [vmem:[%s11350_s1 + $0x19c0] sm:$0xff]  ;;  %v982_v10 = vld [vmem:[%s11350_s1 + $0x1d48] sm:$0xff] }
 0x15a   :  { %5107 = vmatpush1.bf16.msra.mxu1 %v5106_v18  ;;  %4913 = vmatprep.subr.bf16.mxu0 %v4912_v19  ;;  %v879_v18 = vld [vmem:[%s11350_s1 + $0x1a10] sm:$0xff] }
 0x15b   :  { %5109 = vmatprep.subr.bf16.mxu1 %v5108_v23  ;;  %v871_v19 = vld [vmem:[%s11350_s1 + $0x19d0] sm:$0xff]  ;;  %v900_v23 = vld [vmem:[%s11350_s1 + $0x1ab8] sm:$0xff]  ;;  %v4934_v27 = vpack.c.bf16 %v879_v18, %v869_v17  ;;  %v5148_v17 = vpack.c.bf16 %v982_v10, %v972_v9  ;;  %v981_v18 = vld [vmem:[%s11350_s1 + $0x1d40] sm:$0xff] }
 0x15c   :  { %v5130_v28 = vpack.c.bf16 %v881_v21, %v871_v19  ;;  %v4936_v29 = vpack.c.bf16 %v900_v23, %v890_v22  ;;  %v990_v19 = vld [vmem:[%s11350_s1 + $0x1d88] sm:$0xff]  ;;  %v992_v21 = vld [vmem:[%s11350_s1 + $0x1d98] sm:$0xff] }
 0x15d   :  { %4915 = vmatpush1.bf16.msra.mxu0 %v4914_v30  ;;  %v889_v30 = vld [vmem:[%s11350_s1 + $0x1a60] sm:$0xff]  ;;  %v1002_v22 = vld [vmem:[%s11350_s1 + $0x1de8] sm:$0xff] }
 0x15e   :  { %5111 = vmatpush1.bf16.msra.mxu1 %v5110_v31  ;;  %4917 = vmatprep.subr.bf16.mxu0 %v4916_v32  ;;  %v899_v31 = vld [vmem:[%s11350_s1 + $0x1ab0] sm:$0xff]  ;;  %v2530_v9 = vld [vmem:[%s11352_s3 + $0x88] sm:$0xff] }
 0x15f   :  { %5113 = vmatprep.subr.bf16.mxu1 %v5112_v36  ;;  %v891_v32 = vld [vmem:[%s11350_s1 + $0x1a70] sm:$0xff]  ;;  %v920_v36 = vld [vmem:[%s11350_s1 + $0x1b58] sm:$0xff]  ;;  %v4938_v39 = vpack.c.bf16 %v899_v31, %v889_v30  ;;  %v5152_v30 = vpack.c.bf16 %v1002_v22, %v992_v21  ;;  %v1001_v31 = vld [vmem:[%s11350_s1 + $0x1de0] sm:$0xff] }
 0x160   :  { %v5134_v40 = vpack.c.bf16 %v901_v34, %v891_v32  ;;  %v4940_v41 = vpack.c.bf16 %v920_v36, %v910_v35  ;;  %v1010_v32 = vld [vmem:[%s11350_s1 + $0x1e28] sm:$0xff]  ;;  %v1012_v34 = vld [vmem:[%s11350_s1 + $0x1e38] sm:$0xff] }
 0x161   :  { %4919 = vmatpush1.bf16.msra.mxu0 %v4918_v42  ;;  %v909_v42 = vld [vmem:[%s11350_s1 + $0x1b00] sm:$0xff]  ;;  %v1022_v35 = vld [vmem:[%s11350_s1 + $0x1e88] sm:$0xff]  ;;  %v124_v21 = vld [vmem:[%s11350_s1 + $0x278] sm:$0xff] }
 0x162   :  { %5115 = vmatpush1.bf16.msra.mxu1 %v5114_v43  ;;  %4921 = vmatprep.subr.bf16.mxu0 %v4920_v44  ;;  %v919_v43 = vld [vmem:[%s11350_s1 + $0x1b50] sm:$0xff]  ;;  %v2534_v10 = vld [vmem:[%s11352_s3 + $0xa8] sm:$0xff] }
 0x163   :  { %5117 = vmatprep.subr.bf16.mxu1 %v5116_v48  ;;  %v911_v44 = vld [vmem:[%s11350_s1 + $0x1b10] sm:$0xff]  ;;  %v940_v48 = vld [vmem:[%s11350_s1 + $0x1bf8] sm:$0xff]  ;;  %v4942_v51 = vpack.c.bf16 %v919_v43, %v909_v42  ;;  %v1021_v43 = vld [vmem:[%s11350_s1 + $0x1e80] sm:$0xff] }
 0x164   :  { %v5138_v52 = vpack.c.bf16 %v921_v46, %v911_v44  ;;  %v4944_v53 = vpack.c.bf16 %v940_v48, %v930_v47  ;;  %v1011_v42 = vld [vmem:[%s11350_s1 + $0x1e30] sm:$0xff]  ;;  %v54_v44 = vld [vmem:[%s11350_s1 + $0x48] sm:$0xff] }
 0x165   :  { %4923 = vmatpush1.bf16.msra.mxu0 %v4922_v54  ;;  %v929_v54 = vld [vmem:[%s11350_s1 + $0x1ba0] sm:$0xff]  ;;  %v2514_v47 = vld [vmem:[%s11352_s3 + $0x8] sm:$0xff]  ;;  %v5158_v49 = vpack.c.bf16 %v1021_v43, %v1011_v42 }
 0x166   :  { %5119 = vmatpush1.bf16.msra.mxu1 %v5118_v55  ;;  %4925 = vmatprep.subr.bf16.mxu0 %v4924_v56  ;;  %v939_v55 = vld [vmem:[%s11350_s1 + $0x1bf0] sm:$0xff]  ;;  %v2518_v48 = vld [vmem:[%s11352_s3 + $0x28] sm:$0xff] }
 0x167   :  { %5121 = vmatprep.subr.bf16.mxu1 %v5120_v60  ;;  %v931_v56 = vld [vmem:[%s11350_s1 + $0x1bb0] sm:$0xff]  ;;  %v960_v60 = vld [vmem:[%s11350_s1 + $0x1c98] sm:$0xff]  ;;  %v4946_v63 = vpack.c.bf16 %v939_v55, %v929_v54  ;;  %v2513_v55 = vld [vmem:[%s11352_s3] sm:$0xff] }
 0x168   :  { %v5142_v0 = vpack.c.bf16 %v941_v58, %v931_v56  ;;  %v4948_v1 = vpack.c.bf16 %v960_v60, %v950_v59  ;;  %v63_v54 = vld [vmem:[%s11350_s1 + $0x90] sm:$0xff]  ;;  %v2517_v56 = vld [vmem:[%s11352_s3 + $0x20] sm:$0xff]  ;;  %v84_v58 = vld [vmem:[%s11350_s1 + $0x138] sm:$0xff] }
 0x169   :  { %4927 = vmatpush1.bf16.msra.mxu0 %v4926_v2  ;;  %v949_v2 = vld [vmem:[%s11350_s1 + $0x1c40] sm:$0xff]  ;;  %v2522_v59 = vld [vmem:[%s11352_s3 + $0x48] sm:$0xff] }
 0x16a   :  { %5123 = vmatpush1.bf16.msra.mxu1 %v5122_v3  ;;  %4929 = vmatprep.subr.bf16.mxu0 %v4928_v4  ;;  %v959_v3 = vld [vmem:[%s11350_s1 + $0x1c90] sm:$0xff]  ;;  %v2526_v60 = vld [vmem:[%s11352_s3 + $0x68] sm:$0xff] }
 0x16b   :  { %5125 = vmatprep.subr.bf16.mxu1 %v5124_v8  ;;  %v951_v4 = vld [vmem:[%s11350_s1 + $0x1c50] sm:$0xff]  ;;  %v980_v8 = vld [vmem:[%s11350_s1 + $0x1d38] sm:$0xff]  ;;  %v4950_v11 = vpack.c.bf16 %v959_v3, %v949_v2  ;;  %v2521_v3 = vld [vmem:[%s11352_s3 + $0x40] sm:$0xff] }
 0x16c   :  { %v5146_v12 = vpack.c.bf16 %v961_v6, %v951_v4  ;;  %v4952_v13 = vpack.c.bf16 %v980_v8, %v970_v7  ;;  %v83_v2 = vld [vmem:[%s11350_s1 + $0x130] sm:$0xff]  ;;  %v5360_v4 = vpack.c.bf16 %v2526_v60, %v2522_v59  ;;  %v94_v6 = vld [vmem:[%s11350_s1 + $0x188] sm:$0xff]  ;;  %v104_v7 = vld [vmem:[%s11350_s1 + $0x1d8] sm:$0xff] }
 0x16d   :  { %4931 = vmatpush1.bf16.msra.mxu0 %v4930_v14  ;;  %v969_v14 = vld [vmem:[%s11350_s1 + $0x1ce0] sm:$0xff]  ;;  %v6104_v8 = vld [vmem:[%s11351_s0 + $0x30] sm:$0xff]  ;;  %v6105_v22 = vld [vmem:[%s11351_s0 + $0x8] sm:$0xff] }
 0x16e   :  { %5127 = vmatpush1.bf16.msra.mxu1 %v5126_v15  ;;  %4933 = vmatprep.subr.bf16.mxu0 %v4932_v16  ;;  %v979_v15 = vld [vmem:[%s11350_s1 + $0x1d30] sm:$0xff] }
 0x16f   :  { %5129 = vmatprep.subr.bf16.mxu1 %v5128_v20  ;;  %v971_v16 = vld [vmem:[%s11350_s1 + $0x1cf0] sm:$0xff]  ;;  %v1000_v20 = vld [vmem:[%s11350_s1 + $0x1dd8] sm:$0xff]  ;;  %v4954_v23 = vpack.c.bf16 %v979_v15, %v969_v14  ;;  %v5168_v14 = vpack.c.bf16 %v104_v7, %v94_v6  ;;  %v93_v15 = vld [vmem:[%s11350_s1 + $0x180] sm:$0xff] }
 0x170   :  { %v5150_v25 = vpack.c.bf16 %v981_v18, %v971_v16  ;;  %v4956_v26 = vpack.c.bf16 %v1000_v20, %v990_v19  ;;  %v103_v16 = vld [vmem:[%s11350_s1 + $0x1d0] sm:$0xff]  ;;  %v5364_v18 = vpack.c.bf16 %v2534_v10, %v2530_v9  ;;  %v2533_v19 = vld [vmem:[%s11352_s3 + $0xa0] sm:$0xff]  ;;  %v114_v20 = vld [vmem:[%s11350_s1 + $0x228] sm:$0xff] }
 0x171   :  { %4935 = vmatpush1.bf16.msra.mxu0 %v4934_v27  ;;  %v989_v27 = vld [vmem:[%s11350_s1 + $0x1d80] sm:$0xff]  ;;  %v2566_v6 = vld [vmem:[%s11352_s3 + $0x1a8] sm:$0xff] }
 0x172   :  { %5131 = vmatpush1.bf16.msra.mxu1 %v5130_v28  ;;  %4937 = vmatprep.subr.bf16.mxu0 %v4936_v29  ;;  %v999_v28 = vld [vmem:[%s11350_s1 + $0x1dd0] sm:$0xff]  ;;  %v173_v10 = vld [vmem:[%s11350_s1 + $0x400] sm:$0xff] }
 0x173   :  { %5133 = vmatprep.subr.bf16.mxu1 %v5132_v33  ;;  %v991_v29 = vld [vmem:[%s11350_s1 + $0x1d90] sm:$0xff]  ;;  %v1020_v33 = vld [vmem:[%s11350_s1 + $0x1e78] sm:$0xff]  ;;  %v4958_v36 = vpack.c.bf16 %v999_v28, %v989_v27  ;;  %v113_v27 = vld [vmem:[%s11350_s1 + $0x220] sm:$0xff] }
 0x174   :  { %v5154_v37 = vpack.c.bf16 %v1001_v31, %v991_v29  ;;  %v4960_v38 = vpack.c.bf16 %v1020_v33, %v1010_v32  ;;  %v8676_v31 = vld [vmem:[%s11353_s2] sm:$0xff]  ;;  %v123_v32 = vld [vmem:[%s11350_s1 + $0x270] sm:$0xff] }
 0x175   :  { %4939 = vmatpush1.bf16.msra.mxu0 %v4938_v39  ;;  %v1009_v39 = vld [vmem:[%s11350_s1 + $0x1e20] sm:$0xff] }
 0x176   :  { %5135 = vmatpush1.bf16.msra.mxu1 %v5134_v40  ;;  %4941 = vmatprep.subr.bf16.mxu0 %v4940_v41  ;;  %v1019_v40 = vld [vmem:[%s11350_s1 + $0x1e70] sm:$0xff]  ;;  %v5156_v41 = vpack.c.bf16 %v1022_v35, %v1012_v34  ;;  %v2537_v33 = vld [vmem:[%s11352_s3 + $0xc0] sm:$0xff] }
 0x177   :  { %5137 = vmatprep.subr.bf16.mxu1 %v5136_v45  ;;  %v64_v45 = vld [vmem:[%s11350_s1 + $0x98] sm:$0xff]  ;;  %v4962_v46 = vpack.c.bf16 %v1019_v40, %v1009_v39  ;;  %v2541_v35 = vld [vmem:[%s11352_s3 + $0xe0] sm:$0xff]  ;;  %v2550_v39 = vld [vmem:[%s11352_s3 + $0x128] sm:$0xff]  ;;  %v5174_v40 = vpack.c.bf16 %v123_v32, %v113_v27 }
 0x178   :  { %v5160_v50 = vpack.c.bf16 %v64_v45, %v54_v44  ;;  %v5370_v42 = vpack.c.bf16 %v2541_v35, %v2537_v33  ;;  %v133_v44 = vld [vmem:[%s11350_s1 + $0x2c0] sm:$0xff]  ;;  %v143_v45 = vld [vmem:[%s11350_s1 + $0x310] sm:$0xff]  ;;  %v224_v32 = vld [vmem:[%s11350_s1 + $0x598] sm:$0xff] }
 0x179   :  { %4943 = vmatpush1.bf16.msra.mxu0 %v4942_v51  ;;  %v6103_v51 = vld [vmem:[%s11351_s0 + $0x20] sm:$0xff]  ;;  %v2578_v33 = vld [vmem:[%s11352_s3 + $0x208] sm:$0xff] }
 0x17a   :  { %5139 = vmatpush1.bf16.msra.mxu1 %v5138_v52  ;;  %4945 = vmatprep.subr.bf16.mxu0 %v4944_v53  ;;  %v5356_v52 = vpack.c.bf16 %v2518_v48, %v2514_v47  ;;  %v53_v53 = vld [vmem:[%s11350_s1 + $0x40] sm:$0xff] }
 0x17b   :  { %5141 = vmatprep.subr.bf16.mxu1 %v5140_v57  ;;  %v74_v57 = vld [vmem:[%s11350_s1 + $0xe8] sm:$0xff]  ;;  %v5162_v61 = vpack.c.bf16 %v63_v54, %v53_v53 }
 0x17c   :  { %v2554_v54 = vld [vmem:[%s11352_s3 + $0x148] sm:$0xff] }
 0x17d   :  { %4947 = vmatpush1.bf16.msra.mxu0 %v4946_v63  ;;  %v5358_v63 = vpack.c.bf16 %v2517_v56, %v2513_v55  ;;  %v2558_v55 = vld [vmem:[%s11352_s3 + $0x168] sm:$0xff] }
 0x17e   :  { %5143 = vmatpush1.bf16.msra.mxu1 %v5142_v0  ;;  %4949 = vmatprep.subr.bf16.mxu0 %v4948_v1  ;;  %v5164_v0 = vpack.c.bf16 %v84_v58, %v74_v57  ;;  %v73_v1 = vld [vmem:[%s11350_s1 + $0xe0] sm:$0xff]  ;;  %v5178_v58 = vpack.c.bf16 %v143_v45, %v133_v44  ;;  %v244_v44 = vld [vmem:[%s11350_s1 + $0x638] sm:$0xff]  ;;  %v2586_v45 = vld [vmem:[%s11352_s3 + $0x248] sm:$0xff] }
 0x17f   :  { %5145 = vmatprep.subr.bf16.mxu1 %v5144_v5  ;;  %v2525_v5 = vld [vmem:[%s11352_s3 + $0x60] sm:$0xff] }
 0x181   :  { %4951 = vmatpush1.bf16.msra.mxu0 %v4950_v11  ;;  %v5166_v11 = vpack.c.bf16 %v83_v2, %v73_v1  ;;  %v5376_v1 = vpack.c.bf16 %v2558_v55, %v2554_v54  ;;  %v2557_v2 = vld [vmem:[%s11352_s3 + $0x160] sm:$0xff] }
 0x182   :  { %5147 = vmatpush1.bf16.msra.mxu1 %v5146_v12  ;;  %4953 = vmatprep.subr.bf16.mxu0 %v4952_v13  ;;  %v8638_v12 = vshrl.u32 %v1029_v62, 7  ;;  %v5362_v13 = vpack.c.bf16 %v2525_v5, %v2521_v3  ;;  %v163_v62 = vld [vmem:[%s11350_s1 + $0x3b0] sm:$0xff]  ;;  %v174_v3 = vld [vmem:[%s11350_s1 + $0x408] sm:$0xff]  ;;  %v2585_v54 = vld [vmem:[%s11352_s3 + $0x240] sm:$0xff] }
 0x183   :  { %5149 = vmatprep.subr.bf16.mxu1 %v5148_v17  ;;  %v2529_v17 = vld [vmem:[%s11352_s3 + $0x80] sm:$0xff]  ;;  %v2562_v5 = vld [vmem:[%s11352_s3 + $0x188] sm:$0xff] }
 0x184   :  { %v8671_v28 = vsub.s32 1, %v8638_v12  ;;  %v5366_v29 = vpack.c.bf16 %v2533_v19, %v2529_v17  ;;  %v204_v17 = vld [vmem:[%s11350_s1 + $0x4f8] sm:$0xff]  ;;  %v2574_v19 = vld [vmem:[%s11352_s3 + $0x1e8] sm:$0xff] }
 0x185   :  { %4955 = vmatpush1.bf16.msra.mxu0 %v4954_v23  ;;  %v2538_v23 = vld [vmem:[%s11352_s3 + $0xc8] sm:$0xff] }
 0x186   :  { %5151 = vmatpush1.bf16.msra.mxu1 %v5150_v25  ;;  %4957 = vmatprep.subr.bf16.mxu0 %v4956_v26  ;;  %v2542_v25 = vld [vmem:[%s11352_s3 + $0xe8] sm:$0xff]  ;;  %v5170_v26 = vpack.c.bf16 %v103_v16, %v93_v15  ;;  %v2565_v15 = vld [vmem:[%s11352_s3 + $0x1a0] sm:$0xff] }
 0x187   :  { %5153 = vmatprep.subr.bf16.mxu1 %v5152_v30  ;;  %v5172_v30 = vpack.c.bf16 %v124_v21, %v114_v20  ;;  %v5368_v34 = vpack.c.bf16 %v2542_v25, %v2538_v23  ;;  %v194_v16 = vld [vmem:[%s11350_s1 + $0x4a8] sm:$0xff]  ;;  %v193_v23 = vld [vmem:[%s11350_s1 + $0x4a0] sm:$0xff]  ;;  %v203_v25 = vld [vmem:[%s11350_s1 + $0x4f0] sm:$0xff] }
 0x188   :  { %v5190_v35 = vpack.c.bf16 %v203_v25, %v193_v23  ;;  %v2610_v23 = vld [vmem:[%s11352_s3 + $0x308] sm:$0xff] }
 0x189   :  { %4959 = vmatpush1.bf16.msra.mxu0 %v4958_v36  ;;  %v134_v36 = vld [vmem:[%s11350_s1 + $0x2c8] sm:$0xff] }
 0x18a   :  { %5155 = vmatpush1.bf16.msra.mxu1 %v5154_v37  ;;  %4961 = vmatprep.subr.bf16.mxu0 %v4960_v38  ;;  %v144_v37 = vld [vmem:[%s11350_s1 + $0x318] sm:$0xff]  ;;  %v2546_v38 = vld [vmem:[%s11352_s3 + $0x108] sm:$0xff] }
 0x18b   :  { %5157 = vmatprep.subr.bf16.mxu1 %v5156_v41  ;;  %v1036_v41 = vrot.slane %v8676_v31, %v8671_v28  ;;  %v5176_v43 = vpack.c.bf16 %v144_v37, %v134_v36  ;;  %v5372_v48 = vpack.c.bf16 %v2550_v39, %v2546_v38  ;;  %v213_v38 = vld [vmem:[%s11350_s1 + $0x540] sm:$0xff]  ;;  %v223_v39 = vld [vmem:[%s11350_s1 + $0x590] sm:$0xff]  ;;  %v2614_v25 = vld [vmem:[%s11352_s3 + $0x328] sm:$0xff] }
 0x18c   :  { %1858 = vmatmul.mubr.f32.vlgmr.msra.gmra.mrb[2].mxu0 %v6103_v51 }
 0x18d   :  { %2142 = vmatmul.mubr.f32.vlgmr.msra.gmra.mrb[2].mxu1 %v6103_v51  ;;  %4963 = vmatpush1.bf16.msra.mxu0 %v4962_v46  ;;  %v2545_v46 = vld [vmem:[%s11352_s3 + $0x100] sm:$0xff]  ;;  %v164_v51 = vld [vmem:[%s11350_s1 + $0x3b8] sm:$0xff] }
 0x18e   :  { %5159 = vmatpush1.bf16.msra.mxu1 %v5158_v49  ;;  %1928 = vmatprep.mubr.f32.mxu0 %v6113_v24  ;;  %v2549_v49 = vld [vmem:[%s11352_s3 + $0x120] sm:$0xff] }
 0x18f   :  { %2212 = vmatprep.mubr.f32.mxu1 %v6113_v24  ;;  %5161 = vmatprep.subr.bf16.mxu0 %v5160_v50  ;;  %v154_v50 = vld [vmem:[%s11350_s1 + $0x368] sm:$0xff]  ;;  %v5374_v59 = vpack.c.bf16 %v2549_v49, %v2545_v46 }
 0x190   :  { %5357 = vmatprep.subr.bf16.mxu1 %v5356_v52  ;;  %v5180_v60 = vpack.c.bf16 %v164_v51, %v154_v50  ;;  %v2590_v46 = vld [vmem:[%s11352_s3 + $0x268] sm:$0xff]  ;;  %v233_v51 = vld [vmem:[%s11350_s1 + $0x5e0] sm:$0xff] }
 0x191   :  { %v5392_v55 = vpack.c.bf16 %v2590_v46, %v2586_v45  ;;  %v2617_v45 = vld [vmem:[%s11352_s3 + $0x340] sm:$0xff] }
 0x194   :  { %4243 = vmatmul.mubr.msk.f32.vlgmr.msra.gmra.mrb[2].mxu0 %vm1079_vm0, %v6104_v8 }
 0x195   :  { %4244 = vmatmul.mubr.msk.f32.vlgmr.msra.gmra.mrb[2].mxu1 %vm1079_vm0, %v6104_v8  ;;  %5163 = vmatpush1.bf16.msra.mxu0 %v5162_v61  ;;  %v153_v61 = vld [vmem:[%s11350_s1 + $0x360] sm:$0xff] }
 0x196   :  { %5359 = vmatpush1.bf16.msra.mxu1 %v5358_v63  ;;  %5165 = vmatprep.subr.bf16.mxu0 %v5164_v0  ;;  %v2553_v63 = vld [vmem:[%s11352_s3 + $0x140] sm:$0xff]  ;;  %v5182_v7 = vpack.c.bf16 %v163_v62, %v153_v61  ;;  %v2594_v61 = vld [vmem:[%s11352_s3 + $0x288] sm:$0xff] }
 0x197   :  { %5361 = vmatprep.subr.bf16.mxu1 %v5360_v4  ;;  %2283 = vmatprep.mubr.f32.mxu0 %v6105_v22  ;;  %v184_v4 = vld [vmem:[%s11350_s1 + $0x458] sm:$0xff]  ;;  %v5378_v8 = vpack.c.bf16 %v2557_v2, %v2553_v63  ;;  %v5188_v22 = vpack.c.bf16 %v204_v17, %v194_v16  ;;  %v2598_v62 = vld [vmem:[%s11352_s3 + $0x2a8] sm:$0xff]  ;;  %v273_v16 = vld [vmem:[%s11350_s1 + $0x720] sm:$0xff] }
 0x198   :  { %v5184_v9 = vpack.c.bf16 %v184_v4, %v174_v3  ;;  %v253_v3 = vld [vmem:[%s11350_s1 + $0x680] sm:$0xff]  ;;  %v263_v4 = vld [vmem:[%s11350_s1 + $0x6d0] sm:$0xff] }
 0x199   :  { %5167 = vmatpush1.bf16.msra.mxu0 %v5166_v11  ;;  %v183_v11 = vld [vmem:[%s11350_s1 + $0x450] sm:$0xff] }
 0x19a   :  { %5363 = vmatpush1.bf16.msra.mxu1 %v5362_v13  ;;  %5169 = vmatprep.subr.bf16.mxu0 %v5168_v14  ;;  %v2561_v13 = vld [vmem:[%s11352_s3 + $0x180] sm:$0xff]  ;;  %v5380_v14 = vpack.c.bf16 %v2566_v6, %v2562_v5  ;;  %v5186_v20 = vpack.c.bf16 %v183_v11, %v173_v10  ;;  %v5396_v6 = vpack.c.bf16 %v2598_v62, %v2594_v61  ;;  %v2602_v10 = vld [vmem:[%s11352_s3 + $0x2c8] sm:$0xff]  ;;  %v283_v17 = vld [vmem:[%s11350_s1 + $0x770] sm:$0xff]  ;;  %v8962_v62 = vsub.s32 0, %v8638_v12 }
 0x19b   :  { %5365 = vmatprep.subr.bf16.mxu1 %v5364_v18  ;;  %v2570_v18 = vld [vmem:[%s11352_s3 + $0x1c8] sm:$0xff]  ;;  %v5382_v21 = vpack.c.bf16 %v2565_v15, %v2561_v13  ;;  %v2593_v5 = vld [vmem:[%s11352_s3 + $0x280] sm:$0xff]  ;;  %v5202_v13 = vpack.c.bf16 %v263_v4, %v253_v3  ;;  %v364_v3 = vld [vmem:[%s11350_s1 + $0x9f8] sm:$0xff]  ;;  %v1043_v4 = vsub.s32 3, %v8638_v12 }
 0x19c   :  { %v5384_v27 = vpack.c.bf16 %v2574_v19, %v2570_v18  ;;  %v2606_v11 = vld [vmem:[%s11352_s3 + $0x2e8] sm:$0xff]  ;;  %v2601_v18 = vld [vmem:[%s11352_s3 + $0x2c0] sm:$0xff] }
 0x19d   :  { %5171 = vmatpush1.bf16.msra.mxu0 %v5170_v26  ;;  %v2569_v26 = vld [vmem:[%s11352_s3 + $0x1c0] sm:$0xff]  ;;  %v5400_v19 = vpack.c.bf16 %v2606_v11, %v2602_v10  ;;  %v363_v11 = vld [vmem:[%s11350_s1 + $0x9f0] sm:$0xff] }
 0x19e   :  { %5367 = vmatpush1.bf16.msra.mxu1 %v5366_v29  ;;  %5173 = vmatprep.subr.bf16.mxu0 %v5172_v30  ;;  %v2573_v29 = vld [vmem:[%s11352_s3 + $0x1e0] sm:$0xff]  ;;  %v214_v30 = vld [vmem:[%s11350_s1 + $0x548] sm:$0xff] }
 0x19f   :  { %5369 = vmatprep.subr.bf16.mxu1 %v5368_v34  ;;  %v8710_v47 = vpop.f32.mrb[0].mxu0  ;;  %v2582_v34 = vld [vmem:[%s11352_s3 + $0x228] sm:$0xff]  ;;  %v5386_v36 = vpack.c.bf16 %v2573_v29, %v2569_v26  ;;  %v5192_v37 = vpack.c.bf16 %v224_v32, %v214_v30  ;;  %v5206_v26 = vpack.c.bf16 %v283_v17, %v273_v16  ;;  %v293_v30 = vld [vmem:[%s11350_s1 + $0x7c0] sm:$0xff]  ;;  %v303_v32 = vld [vmem:[%s11350_s1 + $0x810] sm:$0xff] }
 0x1a0   :  { %v8721_v52 = vpop.f32.mrb[0].mxu1  ;;  %v1364_v53 = vpop.f32.mrb[1].mxu0  ;;  %v2625_v61 = vld [vmem:[%s11352_s3 + $0x380] sm:$0xff]  ;;  %v374_v17 = vld [vmem:[%s11350_s1 + $0xa48] sm:$0xff] }
 0x1a1   :  { %5175 = vmatpush1.bf16.msra.mxu0 %v5174_v40  ;;  %v8729_v56 = vadd.f32 %v1364_v53, %v1036_v41  ;;  %v8731_v57 = vpop.f32.mrb[1].mxu1  ;;  %v2577_v40 = vld [vmem:[%s11352_s3 + $0x200] sm:$0xff]  ;;  %v5388_v41 = vpack.c.bf16 %v2582_v34, %v2578_v33  ;;  %v243_v53 = vld [vmem:[%s11350_s1 + $0x630] sm:$0xff]  ;;  %v5404_v34 = vpack.c.bf16 %v2614_v25, %v2610_v23 }
 0x1a2   :  { %5371 = vmatpush1.bf16.msra.mxu1 %v5370_v42  ;;  %5177 = vmatprep.subr.bf16.mxu0 %v5176_v43  ;;  %v2581_v42 = vld [vmem:[%s11352_s3 + $0x220] sm:$0xff]  ;;  %v234_v43 = vld [vmem:[%s11350_s1 + $0x5e8] sm:$0xff]  ;;  %v5198_v63 = vpack.c.bf16 %v243_v53, %v233_v51 }
 0x1a3   :  { %v2504_v0 = vmax.f32 %v8729_v56, 0.0  ;;  %5373 = vmatprep.subr.bf16.mxu1 %v5372_v48  ;;  %v5194_v48 = vpack.c.bf16 %v223_v39, %v213_v38  ;;  %v5390_v49 = vpack.c.bf16 %v2581_v42, %v2577_v40  ;;  %v5196_v50 = vpack.c.bf16 %v244_v44, %v234_v43  ;;  %v2609_v33 = vld [vmem:[%s11352_s3 + $0x300] sm:$0xff]  ;;  %v2618_v38 = vld [vmem:[%s11352_s3 + $0x348] sm:$0xff]  ;;  %v323_v44 = vld [vmem:[%s11350_s1 + $0x8b0] sm:$0xff] }
 0x1a4   :  { %v2622_v39 = vld [vmem:[%s11352_s3 + $0x368] sm:$0xff]  ;;  %v5210_v40 = vpack.c.bf16 %v303_v32, %v293_v30  ;;  %v313_v43 = vld [vmem:[%s11350_s1 + $0x860] sm:$0xff]  ;;  %v2544_v56 = vld [vmem:[%s11352_s3 + $0xf8] sm:$0xff] }
 0x1a5   :  { %5179 = vmatpush1.bf16.msra.mxu0 %v5178_v58  ;;  %3191 = vmatprep.mubr.f32.mxu1 %v2504_v0  ;;  %v2589_v58 = vld [vmem:[%s11352_s3 + $0x260] sm:$0xff]  ;;  %v5408_v46 = vpack.c.bf16 %v2622_v39, %v2618_v38  ;;  %v2626_v51 = vld [vmem:[%s11352_s3 + $0x388] sm:$0xff] }
 0x1a6   :  { %5375 = vmatpush1.bf16.msra.mxu1 %v5374_v59  ;;  %5181 = vmatprep.subr.bf16.mxu0 %v5180_v60  ;;  %v254_v59 = vld [vmem:[%s11350_s1 + $0x688] sm:$0xff]  ;;  %v264_v60 = vld [vmem:[%s11350_s1 + $0x6d8] sm:$0xff]  ;;  %v353_v10 = vld [vmem:[%s11350_s1 + $0x9a0] sm:$0xff] }
 0x1a7   :  { %5377 = vmatprep.subr.bf16.mxu1 %v5376_v1  ;;  %v5394_v1 = vpack.c.bf16 %v2589_v58, %v2585_v54  ;;  %v5200_v2 = vpack.c.bf16 %v264_v60, %v254_v59  ;;  %v2630_v53 = vld [vmem:[%s11352_s3 + $0x3a8] sm:$0xff]  ;;  %v5214_v54 = vpack.c.bf16 %v323_v44, %v313_v43  ;;  %v333_v59 = vld [vmem:[%s11350_s1 + $0x900] sm:$0xff]  ;;  %v343_v60 = vld [vmem:[%s11350_s1 + $0x950] sm:$0xff] }
 0x1a8   :  { %v2637_v16 = vld [vmem:[%s11352_s3 + $0x3e0] sm:$0xff] }
 0x1a9   :  { %5183 = vmatpush1.bf16.msra.mxu0 %v5182_v7  ;;  %v2597_v7 = vld [vmem:[%s11352_s3 + $0x2a0] sm:$0xff] }
 0x1aa   :  { %5379 = vmatpush1.bf16.msra.mxu1 %v5378_v8  ;;  %5185 = vmatprep.subr.bf16.mxu0 %v5184_v9  ;;  %v274_v8 = vld [vmem:[%s11350_s1 + $0x728] sm:$0xff]  ;;  %v284_v9 = vld [vmem:[%s11350_s1 + $0x778] sm:$0xff]  ;;  %v2641_v32 = vld [vmem:[%s11352_s3 + $0x400] sm:$0xff] }
 0x1ab   :  { %5381 = vmatprep.subr.bf16.mxu1 %v5380_v14  ;;  %v5398_v14 = vpack.c.bf16 %v2597_v7, %v2593_v5  ;;  %v5204_v15 = vpack.c.bf16 %v284_v9, %v274_v8  ;;  %v2634_v5 = vld [vmem:[%s11352_s3 + $0x3c8] sm:$0xff]  ;;  %v5218_v7 = vpack.c.bf16 %v343_v60, %v333_v59  ;;  %v413_v59 = vld [vmem:[%s11350_s1 + $0xb80] sm:$0xff]  ;;  %v423_v60 = vld [vmem:[%s11350_s1 + $0xbd0] sm:$0xff] }
 0x1ad   :  { %5187 = vmatpush1.bf16.msra.mxu0 %v5186_v20  ;;  %v2605_v20 = vld [vmem:[%s11352_s3 + $0x2e0] sm:$0xff] }
 0x1ae   :  { %5383 = vmatpush1.bf16.msra.mxu1 %v5382_v21  ;;  %5189 = vmatprep.subr.bf16.mxu0 %v5188_v22  ;;  %v294_v21 = vld [vmem:[%s11350_s1 + $0x7c8] sm:$0xff]  ;;  %v304_v22 = vld [vmem:[%s11350_s1 + $0x818] sm:$0xff] }
 0x1af   :  { %5385 = vmatprep.subr.bf16.mxu1 %v5384_v27  ;;  %v5402_v27 = vpack.c.bf16 %v2605_v20, %v2601_v18  ;;  %v5208_v29 = vpack.c.bf16 %v304_v22, %v294_v21  ;;  %v384_v18 = vld [vmem:[%s11350_s1 + $0xa98] sm:$0xff]  ;;  %v2642_v20 = vld [vmem:[%s11352_s3 + $0x408] sm:$0xff]  ;;  %v5222_v22 = vpack.c.bf16 %v363_v11, %v353_v10  ;;  %v433_v11 = vld [vmem:[%s11350_s1 + $0xc20] sm:$0xff] }
 0x1b0   :  { %v2646_v21 = vld [vmem:[%s11352_s3 + $0x428] sm:$0xff]  ;;  %v5224_v25 = vpack.c.bf16 %v384_v18, %v374_v17  ;;  %v464_v18 = vld [vmem:[%s11350_s1 + $0xd18] sm:$0xff] }
 0x1b1   :  { %5191 = vmatpush1.bf16.msra.mxu0 %v5190_v35  ;;  %v2613_v35 = vld [vmem:[%s11352_s3 + $0x320] sm:$0xff]  ;;  %v5420_v30 = vpack.c.bf16 %v2646_v21, %v2642_v20  ;;  %v454_v17 = vld [vmem:[%s11350_s1 + $0xcc8] sm:$0xff] }
 0x1b2   :  { %5387 = vmatpush1.bf16.msra.mxu1 %v5386_v36  ;;  %5193 = vmatprep.subr.bf16.mxu0 %v5192_v37  ;;  %v314_v36 = vld [vmem:[%s11350_s1 + $0x868] sm:$0xff]  ;;  %v324_v37 = vld [vmem:[%s11350_s1 + $0x8b8] sm:$0xff] }
 0x1b3   :  { %5389 = vmatprep.subr.bf16.mxu1 %v5388_v41  ;;  %v5406_v41 = vpack.c.bf16 %v2613_v35, %v2609_v33  ;;  %v5212_v42 = vpack.c.bf16 %v324_v37, %v314_v36  ;;  %v2645_v33 = vld [vmem:[%s11352_s3 + $0x420] sm:$0xff]  ;;  %v2650_v36 = vld [vmem:[%s11352_s3 + $0x448] sm:$0xff] }
 0x1b4   :  { %v2654_v37 = vld [vmem:[%s11352_s3 + $0x468] sm:$0xff]  ;;  %v5422_v39 = vpack.c.bf16 %v2645_v33, %v2641_v32  ;;  %v2677_v32 = vld [vmem:[%s11352_s3 + $0x520] sm:$0xff] }
 0x1b5   :  { %5195 = vmatpush1.bf16.msra.mxu0 %v5194_v48  ;;  %v2621_v48 = vld [vmem:[%s11352_s3 + $0x360] sm:$0xff]  ;;  %v5424_v44 = vpack.c.bf16 %v2654_v37, %v2650_v36  ;;  %v2678_v20 = vld [vmem:[%s11352_s3 + $0x528] sm:$0xff] }
 0x1b6   :  { %5391 = vmatpush1.bf16.msra.mxu1 %v5390_v49  ;;  %5197 = vmatprep.subr.bf16.mxu0 %v5196_v50  ;;  %v334_v49 = vld [vmem:[%s11350_s1 + $0x908] sm:$0xff]  ;;  %v344_v50 = vld [vmem:[%s11350_s1 + $0x958] sm:$0xff] }
 0x1b7   :  { %5393 = vmatprep.subr.bf16.mxu1 %v5392_v55  ;;  %v5410_v55 = vpack.c.bf16 %v2621_v48, %v2617_v45  ;;  %v5216_v58 = vpack.c.bf16 %v344_v50, %v334_v49  ;;  %v2653_v45 = vld [vmem:[%s11352_s3 + $0x460] sm:$0xff]  ;;  %v424_v48 = vld [vmem:[%s11350_s1 + $0xbd8] sm:$0xff]  ;;  %v474_v33 = vld [vmem:[%s11350_s1 + $0xd68] sm:$0xff] }
 0x1b8   :  { %v6106_v50 = vld [vmem:[%s11351_s0] sm:$0xff]  ;;  %v2686_v36 = vld [vmem:[%s11352_s3 + $0x568] sm:$0xff] }
 0x1b9   :  { %5199 = vmatpush1.bf16.msra.mxu0 %v5198_v63  ;;  %v5412_v63 = vpack.c.bf16 %v2630_v53, %v2626_v51  ;;  %v2658_v51 = vld [vmem:[%s11352_s3 + $0x488] sm:$0xff] }
 0x1ba   :  { %5395 = vmatpush1.bf16.msra.mxu1 %v5394_v1  ;;  %5201 = vmatprep.subr.bf16.mxu0 %v5200_v2  ;;  %v2629_v1 = vld [vmem:[%s11352_s3 + $0x3a0] sm:$0xff]  ;;  %v354_v2 = vld [vmem:[%s11350_s1 + $0x9a8] sm:$0xff] }
 0x1bb   :  { %5397 = vmatprep.subr.bf16.mxu1 %v5396_v6  ;;  %v2638_v6 = vld [vmem:[%s11352_s3 + $0x3e8] sm:$0xff]  ;;  %v5414_v8 = vpack.c.bf16 %v2629_v1, %v2625_v61  ;;  %v5220_v9 = vpack.c.bf16 %v364_v3, %v354_v2  ;;  %v2657_v61 = vld [vmem:[%s11352_s3 + $0x480] sm:$0xff]  ;;  %v444_v3 = vld [vmem:[%s11350_s1 + $0xc78] sm:$0xff] }
 0x1bc   :  { %v2662_v53 = vld [vmem:[%s11352_s3 + $0x4a8] sm:$0xff]  ;;  %v2661_v1 = vld [vmem:[%s11352_s3 + $0x4a0] sm:$0xff] }
 0x1bd   :  { %5203 = vmatpush1.bf16.msra.mxu0 %v5202_v13  ;;  %v2633_v13 = vld [vmem:[%s11352_s3 + $0x3c0] sm:$0xff]  ;;  %v434_v2 = vld [vmem:[%s11350_s1 + $0xc28] sm:$0xff] }
 0x1be   :  { %5399 = vmatpush1.bf16.msra.mxu1 %v5398_v14  ;;  %5205 = vmatprep.subr.bf16.mxu0 %v5204_v15  ;;  %v1032_v14 = vrot.slane %v8676_v31, %v8962_v62  ;;  %v5416_v15 = vpack.c.bf16 %v2638_v6, %v2634_v5  ;;  %v5418_v23 = vpack.c.bf16 %v2637_v16, %v2633_v13  ;;  %v2666_v5 = vld [vmem:[%s11352_s3 + $0x4c8] sm:$0xff]  ;;  %v443_v13 = vld [vmem:[%s11350_s1 + $0xc70] sm:$0xff]  ;;  %v2669_v16 = vld [vmem:[%s11352_s3 + $0x4e0] sm:$0xff] }
 0x1bf   :  { %5401 = vmatprep.subr.bf16.mxu1 %v5400_v19  ;;  %v1044_v19 = vrot.slane %v8676_v31, %v1043_v4  ;;  %v2670_v6 = vld [vmem:[%s11352_s3 + $0x4e8] sm:$0xff]  ;;  %v5236_v10 = vpack.c.bf16 %v444_v3, %v434_v2  ;;  %v5238_v21 = vpack.c.bf16 %v443_v13, %v433_v11  ;;  %v2701_v13 = vld [vmem:[%s11352_s3 + $0x5e0] sm:$0xff] }
 0x1c0   :  { %v2698_v2 = vld [vmem:[%s11352_s3 + $0x5c8] sm:$0xff] }
 0x1c1   :  { %5207 = vmatpush1.bf16.msra.mxu0 %v5206_v26  ;;  %v373_v26 = vld [vmem:[%s11350_s1 + $0xa40] sm:$0xff]  ;;  %v9028_v35 = vadd.f32 %v8731_v57, %v1044_v19  ;;  %v2674_v19 = vld [vmem:[%s11352_s3 + $0x508] sm:$0xff] }
 0x1c2   :  { %5403 = vmatpush1.bf16.msra.mxu1 %v5402_v27  ;;  %5209 = vmatprep.subr.bf16.mxu0 %v5208_v29  ;;  %v383_v27 = vld [vmem:[%s11350_s1 + $0xa90] sm:$0xff]  ;;  %v9016_v29 = vadd.f32 %v8710_v47, %v1032_v14  ;;  %v404_v47 = vld [vmem:[%s11350_s1 + $0xb38] sm:$0xff]  ;;  %v393_v57 = vld [vmem:[%s11350_s1 + $0xae0] sm:$0xff] }
 0x1c3   :  { %5405 = vmatprep.subr.bf16.mxu1 %v5404_v34  ;;  %v394_v34 = vld [vmem:[%s11350_s1 + $0xae8] sm:$0xff]  ;;  %v5226_v38 = vpack.c.bf16 %v383_v27, %v373_v26  ;;  %v2506_v49 = vmax.f32 %v9028_v35, 0.0  ;;  %v2665_v14 = vld [vmem:[%s11352_s3 + $0x4c0] sm:$0xff]  ;;  %v463_v26 = vld [vmem:[%s11350_s1 + $0xd10] sm:$0xff] }
 0x1c4   :  { %v5228_v43 = vpack.c.bf16 %v404_v47, %v394_v34  ;;  %v2673_v27 = vld [vmem:[%s11352_s3 + $0x500] sm:$0xff]  ;;  %v484_v34 = vld [vmem:[%s11350_s1 + $0xdb8] sm:$0xff]  ;;  %v2682_v47 = vld [vmem:[%s11352_s3 + $0x548] sm:$0xff] }
 0x1c5   :  { %5211 = vmatpush1.bf16.msra.mxu0 %v5210_v40  ;;  %v403_v40 = vld [vmem:[%s11350_s1 + $0xb30] sm:$0xff]  ;;  %v2702_v3 = vld [vmem:[%s11352_s3 + $0x5e8] sm:$0xff] }
 0x1c6   :  { %5407 = vmatpush1.bf16.msra.mxu1 %v5406_v41  ;;  %5213 = vmatprep.subr.bf16.mxu0 %v5212_v42  ;;  %v2649_v41 = vld [vmem:[%s11352_s3 + $0x440] sm:$0xff]  ;;  %v2503_v42 = vmax.f32 %v9016_v29, 0.0  ;;  %v5448_v11 = vpack.c.bf16 %v2702_v3, %v2698_v2  ;;  %v3010_v29 = vld [vmem:[%s11352_s3 + $0xf88] sm:$0xff]  ;;  %v2663_v35 = vld [vmem:[%s11352_s3 + $0x4b0] sm:$0xff] }
 0x1c7   :  { %5409 = vmatprep.subr.bf16.mxu1 %v5408_v46  ;;  %v414_v46 = vld [vmem:[%s11350_s1 + $0xb88] sm:$0xff] }
 0x1c9   :  { %5215 = vmatpush1.bf16.msra.mxu0 %v5214_v54  ;;  %v5230_v54 = vpack.c.bf16 %v403_v40, %v393_v57  ;;  %v473_v57 = vld [vmem:[%s11350_s1 + $0xd60] sm:$0xff]  ;;  %v483_v40 = vld [vmem:[%s11350_s1 + $0xdb0] sm:$0xff] }
 0x1ca   :  { %5411 = vmatpush1.bf16.msra.mxu1 %v5410_v55  ;;  %5217 = vmatprep.subr.bf16.mxu0 %v5216_v58  ;;  %v5426_v55 = vpack.c.bf16 %v2653_v45, %v2649_v41  ;;  %v5232_v58 = vpack.c.bf16 %v424_v48, %v414_v46  ;;  %v2681_v41 = vld [vmem:[%s11352_s3 + $0x540] sm:$0xff]  ;;  %v494_v45 = vld [vmem:[%s11350_s1 + $0xe08] sm:$0xff]  ;;  %v504_v46 = vld [vmem:[%s11350_s1 + $0xe58] sm:$0xff] }
 0x1cb   :  { %5413 = vmatprep.subr.bf16.mxu1 %v5412_v63  ;;  %v5428_v63 = vpack.c.bf16 %v2662_v53, %v2658_v51  ;;  %v2690_v48 = vld [vmem:[%s11352_s3 + $0x588] sm:$0xff]  ;;  %v5246_v51 = vpack.c.bf16 %v483_v40, %v473_v57  ;;  %v2717_v40 = vld [vmem:[%s11352_s3 + $0x660] sm:$0xff] }
 0x1cd   :  { %5219 = vmatpush1.bf16.msra.mxu0 %v5218_v7  ;;  %v6107_v7 = vld [vmem:[%s11351_s0 + $0x18] sm:$0xff] }
 0x1ce   :  { %5415 = vmatpush1.bf16.msra.mxu1 %v5414_v8  ;;  %5221 = vmatprep.subr.bf16.mxu0 %v5220_v9  ;;  %v5234_v8 = vpack.c.bf16 %v423_v60, %v413_v59  ;;  %v5430_v9 = vpack.c.bf16 %v2661_v1, %v2657_v61  ;;  %v2689_v59 = vld [vmem:[%s11352_s3 + $0x580] sm:$0xff]  ;;  %v524_v1 = vld [vmem:[%s11350_s1 + $0xef8] sm:$0xff] }
 0x1cf   :  { %5417 = vmatprep.subr.bf16.mxu1 %v5416_v15  ;;  %v5432_v15 = vpack.c.bf16 %v2670_v6, %v2666_v5  ;;  %v2693_v61 = vld [vmem:[%s11352_s3 + $0x5a0] sm:$0xff] }
 0x1d0   :  { %v5446_v6 = vpack.c.bf16 %v2693_v61, %v2689_v59  ;;  %v594_v59 = vld [vmem:[%s11350_s1 + $0x1128] sm:$0xff] }
 0x1d1   :  { %5223 = vmatpush1.bf16.msra.mxu0 %v5222_v22  ;;  %v5434_v22 = vpack.c.bf16 %v2669_v16, %v2665_v14  ;;  %v534_v14 = vld [vmem:[%s11350_s1 + $0xf48] sm:$0xff] }
 0x1d2   :  { %5419 = vmatpush1.bf16.msra.mxu1 %v5418_v23  ;;  %5225 = vmatprep.subr.bf16.mxu0 %v5224_v25  ;;  %v5240_v23 = vpack.c.bf16 %v464_v18, %v454_v17  ;;  %v453_v25 = vld [vmem:[%s11350_s1 + $0xcc0] sm:$0xff]  ;;  %v2706_v16 = vld [vmem:[%s11352_s3 + $0x608] sm:$0xff] }
 0x1d3   :  { %5421 = vmatprep.subr.bf16.mxu1 %v5420_v30  ;;  %v5436_v30 = vpack.c.bf16 %v2678_v20, %v2674_v19  ;;  %v5242_v37 = vpack.c.bf16 %v463_v26, %v453_v25  ;;  %v2710_v17 = vld [vmem:[%s11352_s3 + $0x628] sm:$0xff]  ;;  %v2709_v26 = vld [vmem:[%s11352_s3 + $0x620] sm:$0xff] }
 0x1d4   :  { %2284 = vmatmul.mubr.f32.vlgmr.msra.gmra.mrb[4].mxu0 %v6106_v50  ;;  %v2694_v50 = vld [vmem:[%s11352_s3 + $0x5a8] sm:$0xff]  ;;  %v5452_v25 = vpack.c.bf16 %v2710_v17, %v2706_v16 }
 0x1d5   :  { %3192 = vmatmul.mubr.f32.vlgmr.msra.gmra.mrb[4].mxu1 %v2503_v42  ;;  %5227 = vmatpush1.bf16.msra.mxu0 %v5226_v38  ;;  %v5438_v38 = vpack.c.bf16 %v2677_v32, %v2673_v27  ;;  %v5444_v60 = vpack.c.bf16 %v2694_v50, %v2690_v48  ;;  %v554_v27 = vld [vmem:[%s11350_s1 + $0xfe8] sm:$0xff] }
 0x1d6   :  { %5423 = vmatpush1.bf16.msra.mxu1 %v5422_v39  ;;  %3262 = vmatprep.mubr.f32.mxu1 %v2506_v49  ;;  %v5244_v39 = vpack.c.bf16 %v484_v34, %v474_v33  ;;  %v2714_v32 = vld [vmem:[%s11352_s3 + $0x648] sm:$0xff] }
 0x1d7   :  { %5229 = vmatprep.subr.bf16.mxu0 %v5228_v43  ;;  %5425 = vmatprep.subr.bf16.mxu1 %v5424_v44  ;;  %v5440_v43 = vpack.c.bf16 %v2686_v36, %v2682_v47  ;;  %v2685_v44 = vld [vmem:[%s11352_s3 + $0x560] sm:$0xff]  ;;  %v2718_v33 = vld [vmem:[%s11352_s3 + $0x668] sm:$0xff] }
 0x1d8   :  { %2354 = vmatprep.mubr.f32.mxu0 %v6107_v7  ;;  %v5442_v53 = vpack.c.bf16 %v2685_v44, %v2681_v41  ;;  %v5456_v57 = vpack.c.bf16 %v2718_v33, %v2714_v32  ;;  %v574_v41 = vld [vmem:[%s11350_s1 + $0x1088] sm:$0xff] }
 0x1d9   :  { %5231 = vmatpush1.bf16.msra.mxu0 %v5230_v54  ;;  %v5248_v54 = vpack.c.bf16 %v504_v46, %v494_v45  ;;  %v2722_v44 = vld [vmem:[%s11352_s3 + $0x688] sm:$0xff] }
 0x1da   :  { %5427 = vmatpush1.bf16.msra.mxu1 %v5426_v55  ;;  %5233 = vmatprep.subr.bf16.mxu0 %v5232_v58  ;;  %v493_v55 = vld [vmem:[%s11350_s1 + $0xe00] sm:$0xff]  ;;  %v503_v58 = vld [vmem:[%s11350_s1 + $0xe50] sm:$0xff]  ;;  %v2726_v45 = vld [vmem:[%s11352_s3 + $0x6a8] sm:$0xff] }
 0x1db   :  { %5429 = vmatprep.subr.bf16.mxu1 %v5428_v63  ;;  %v514_v63 = vld [vmem:[%s11350_s1 + $0xea8] sm:$0xff]  ;;  %v5250_v5 = vpack.c.bf16 %v503_v58, %v493_v55  ;;  %v5460_v55 = vpack.c.bf16 %v2726_v45, %v2722_v44  ;;  %v2725_v58 = vld [vmem:[%s11352_s3 + $0x6a0] sm:$0xff] }
 0x1dc   :  { %v5252_v7 = vpack.c.bf16 %v524_v1, %v514_v63  ;;  %v2730_v61 = vld [vmem:[%s11352_s3 + $0x6c8] sm:$0xff] }
 0x1dd   :  { %5235 = vmatpush1.bf16.msra.mxu0 %v5234_v8  ;;  %v513_v8 = vld [vmem:[%s11350_s1 + $0xea0] sm:$0xff]  ;;  %v2734_v63 = vld [vmem:[%s11352_s3 + $0x6e8] sm:$0xff] }
 0x1de   :  { %5431 = vmatpush1.bf16.msra.mxu1 %v5430_v9  ;;  %5237 = vmatprep.subr.bf16.mxu0 %v5236_v10  ;;  %v523_v9 = vld [vmem:[%s11350_s1 + $0xef0] sm:$0xff]  ;;  %v2697_v10 = vld [vmem:[%s11352_s3 + $0x5c0] sm:$0xff] }
 0x1df   :  { %5433 = vmatprep.subr.bf16.mxu1 %v5432_v15  ;;  %v544_v15 = vld [vmem:[%s11350_s1 + $0xf98] sm:$0xff]  ;;  %v5254_v18 = vpack.c.bf16 %v523_v9, %v513_v8  ;;  %v5450_v19 = vpack.c.bf16 %v2701_v13, %v2697_v10  ;;  %v5464_v8 = vpack.c.bf16 %v2734_v63, %v2730_v61  ;;  %v2733_v9 = vld [vmem:[%s11352_s3 + $0x6e0] sm:$0xff]  ;;  %v614_v10 = vld [vmem:[%s11350_s1 + $0x11c8] sm:$0xff] }
 0x1e0   :  { %v5256_v20 = vpack.c.bf16 %v544_v15, %v534_v14  ;;  %v2738_v13 = vld [vmem:[%s11352_s3 + $0x708] sm:$0xff] }
 0x1e1   :  { %5239 = vmatpush1.bf16.msra.mxu0 %v5238_v21  ;;  %v533_v21 = vld [vmem:[%s11350_s1 + $0xf40] sm:$0xff]  ;;  %v2742_v14 = vld [vmem:[%s11352_s3 + $0x728] sm:$0xff] }
 0x1e2   :  { %5435 = vmatpush1.bf16.msra.mxu1 %v5434_v22  ;;  %5241 = vmatprep.subr.bf16.mxu0 %v5240_v23  ;;  %v543_v22 = vld [vmem:[%s11350_s1 + $0xf90] sm:$0xff]  ;;  %v2705_v23 = vld [vmem:[%s11352_s3 + $0x600] sm:$0xff] }
 0x1e3   :  { %5437 = vmatprep.subr.bf16.mxu1 %v5436_v30  ;;  %v564_v30 = vld [vmem:[%s11350_s1 + $0x1038] sm:$0xff]  ;;  %v5258_v34 = vpack.c.bf16 %v543_v22, %v533_v21  ;;  %v5454_v47 = vpack.c.bf16 %v2709_v26, %v2705_v23  ;;  %v5468_v21 = vpack.c.bf16 %v2742_v14, %v2738_v13  ;;  %v2741_v22 = vld [vmem:[%s11352_s3 + $0x720] sm:$0xff]  ;;  %v634_v23 = vld [vmem:[%s11350_s1 + $0x1268] sm:$0xff] }
 0x1e4   :  { %v5260_v36 = vpack.c.bf16 %v564_v30, %v554_v27  ;;  %v2746_v26 = vld [vmem:[%s11352_s3 + $0x748] sm:$0xff] }
 0x1e5   :  { %5243 = vmatpush1.bf16.msra.mxu0 %v5242_v37  ;;  %v553_v37 = vld [vmem:[%s11350_s1 + $0xfe0] sm:$0xff]  ;;  %v2750_v27 = vld [vmem:[%s11352_s3 + $0x768] sm:$0xff] }
 0x1e6   :  { %5439 = vmatpush1.bf16.msra.mxu1 %v5438_v38  ;;  %5245 = vmatprep.subr.bf16.mxu0 %v5244_v39  ;;  %v563_v38 = vld [vmem:[%s11350_s1 + $0x1030] sm:$0xff]  ;;  %v2713_v39 = vld [vmem:[%s11352_s3 + $0x640] sm:$0xff] }
 0x1e7   :  { %5441 = vmatprep.subr.bf16.mxu1 %v5440_v43  ;;  %v584_v43 = vld [vmem:[%s11350_s1 + $0x10d8] sm:$0xff]  ;;  %v5262_v46 = vpack.c.bf16 %v563_v38, %v553_v37  ;;  %v5458_v48 = vpack.c.bf16 %v2717_v40, %v2713_v39  ;;  %v5472_v37 = vpack.c.bf16 %v2750_v27, %v2746_v26  ;;  %v2749_v38 = vld [vmem:[%s11352_s3 + $0x760] sm:$0xff]  ;;  %v654_v39 = vld [vmem:[%s11350_s1 + $0x1308] sm:$0xff] }
 0x1e8   :  { %v5264_v50 = vpack.c.bf16 %v584_v43, %v574_v41  ;;  %v2754_v40 = vld [vmem:[%s11352_s3 + $0x788] sm:$0xff] }
 0x1e9   :  { %5247 = vmatpush1.bf16.msra.mxu0 %v5246_v51  ;;  %v573_v51 = vld [vmem:[%s11350_s1 + $0x1080] sm:$0xff]  ;;  %v2758_v41 = vld [vmem:[%s11352_s3 + $0x7a8] sm:$0xff] }
 0x1ea   :  { %5443 = vmatpush1.bf16.msra.mxu1 %v5442_v53  ;;  %5249 = vmatprep.subr.bf16.mxu0 %v5248_v54  ;;  %v583_v53 = vld [vmem:[%s11350_s1 + $0x10d0] sm:$0xff]  ;;  %v2721_v54 = vld [vmem:[%s11352_s3 + $0x680] sm:$0xff] }
 0x1eb   :  { %5445 = vmatprep.subr.bf16.mxu1 %v5444_v60  ;;  %v604_v60 = vld [vmem:[%s11350_s1 + $0x1178] sm:$0xff]  ;;  %v5266_v1 = vpack.c.bf16 %v583_v53, %v573_v51  ;;  %v5462_v2 = vpack.c.bf16 %v2725_v58, %v2721_v54  ;;  %v1039_v51 = vsub.s32 2, %v8638_v12  ;;  %v5476_v53 = vpack.c.bf16 %v2758_v41, %v2754_v40  ;;  %v2757_v54 = vld [vmem:[%s11352_s3 + $0x7a0] sm:$0xff]  ;;  %v2786_v40 = vld [vmem:[%s11352_s3 + $0x888] sm:$0xff] }
 0x1ec   :  { %v5268_v3 = vpack.c.bf16 %v604_v60, %v594_v59  ;;  %v684_v58 = vld [vmem:[%s11350_s1 + $0x13f8] sm:$0xff]  ;;  %v2762_v59 = vld [vmem:[%s11352_s3 + $0x7c8] sm:$0xff] }
 0x1ed   :  { %5251 = vmatpush1.bf16.msra.mxu0 %v5250_v5  ;;  %v593_v5 = vld [vmem:[%s11350_s1 + $0x1120] sm:$0xff]  ;;  %v2766_v60 = vld [vmem:[%s11352_s3 + $0x7e8] sm:$0xff] }
 0x1ee   :  { %5447 = vmatpush1.bf16.msra.mxu1 %v5446_v6  ;;  %5253 = vmatprep.subr.bf16.mxu0 %v5252_v7  ;;  %v603_v6 = vld [vmem:[%s11350_s1 + $0x1170] sm:$0xff]  ;;  %v2729_v7 = vld [vmem:[%s11352_s3 + $0x6c0] sm:$0xff]  ;;  %v2790_v41 = vld [vmem:[%s11352_s3 + $0x8a8] sm:$0xff] }
 0x1ef   :  { %5449 = vmatprep.subr.bf16.mxu1 %v5448_v11  ;;  %v624_v11 = vld [vmem:[%s11350_s1 + $0x1218] sm:$0xff]  ;;  %v5270_v15 = vpack.c.bf16 %v603_v6, %v593_v5  ;;  %v5466_v16 = vpack.c.bf16 %v2733_v9, %v2729_v7  ;;  %v2761_v5 = vld [vmem:[%s11352_s3 + $0x7c0] sm:$0xff]  ;;  %v1040_v6 = vrot.slane %v8676_v31, %v1039_v51  ;;  %v5480_v7 = vpack.c.bf16 %v2766_v60, %v2762_v59  ;;  %v694_v9 = vld [vmem:[%s11350_s1 + $0x1448] sm:$0xff] }
 0x1f0   :  { %v5272_v17 = vpack.c.bf16 %v624_v11, %v614_v10  ;;  %v704_v10 = vld [vmem:[%s11350_s1 + $0x1498] sm:$0xff]  ;;  %v2770_v11 = vld [vmem:[%s11352_s3 + $0x808] sm:$0xff] }
 0x1f1   :  { %5255 = vmatpush1.bf16.msra.mxu0 %v5254_v18  ;;  %v613_v18 = vld [vmem:[%s11350_s1 + $0x11c0] sm:$0xff]  ;;  %v2774_v31 = vld [vmem:[%s11352_s3 + $0x828] sm:$0xff] }
 0x1f2   :  { %5451 = vmatpush1.bf16.msra.mxu1 %v5450_v19  ;;  %5257 = vmatprep.subr.bf16.mxu0 %v5256_v20  ;;  %v623_v19 = vld [vmem:[%s11350_s1 + $0x1210] sm:$0xff]  ;;  %v2737_v20 = vld [vmem:[%s11352_s3 + $0x700] sm:$0xff]  ;;  %v6109_v59 = vld [vmem:[%s11351_s0 + $0x28] sm:$0xff] }
 0x1f3   :  { %5453 = vmatprep.subr.bf16.mxu1 %v5452_v25  ;;  %v644_v25 = vld [vmem:[%s11350_s1 + $0x12b8] sm:$0xff]  ;;  %v5274_v30 = vpack.c.bf16 %v623_v19, %v613_v18  ;;  %v5470_v32 = vpack.c.bf16 %v2741_v22, %v2737_v20  ;;  %v714_v18 = vld [vmem:[%s11350_s1 + $0x14e8] sm:$0xff]  ;;  %v9425_v19 = vadd.f32 %v8721_v52, %v1040_v6  ;;  %v2769_v22 = vld [vmem:[%s11352_s3 + $0x800] sm:$0xff] }
 0x1f4   :  { %v5276_v33 = vpack.c.bf16 %v644_v25, %v634_v23  ;;  %v724_v20 = vld [vmem:[%s11350_s1 + $0x1538] sm:$0xff]  ;;  %v2773_v23 = vld [vmem:[%s11352_s3 + $0x820] sm:$0xff]  ;;  %v2778_v25 = vld [vmem:[%s11352_s3 + $0x848] sm:$0xff] }
 0x1f5   :  { %5259 = vmatpush1.bf16.msra.mxu0 %v5258_v34  ;;  %v633_v34 = vld [vmem:[%s11350_s1 + $0x1260] sm:$0xff]  ;;  %v2782_v52 = vld [vmem:[%s11352_s3 + $0x868] sm:$0xff]  ;;  %v5292_v27 = vpack.c.bf16 %v724_v20, %v714_v18  ;;  %v804_v20 = vld [vmem:[%s11350_s1 + $0x17b8] sm:$0xff] }
 0x1f6   :  { %5455 = vmatpush1.bf16.msra.mxu1 %v5454_v47  ;;  %5261 = vmatprep.subr.bf16.mxu0 %v5260_v36  ;;  %v643_v47 = vld [vmem:[%s11350_s1 + $0x12b0] sm:$0xff]  ;;  %v2745_v36 = vld [vmem:[%s11352_s3 + $0x740] sm:$0xff]  ;;  %v2794_v60 = vld [vmem:[%s11352_s3 + $0x8c8] sm:$0xff] }
 0x1f7   :  { %5457 = vmatprep.subr.bf16.mxu1 %v5456_v57  ;;  %v664_v57 = vld [vmem:[%s11350_s1 + $0x1358] sm:$0xff]  ;;  %v5278_v43 = vpack.c.bf16 %v643_v47, %v633_v34  ;;  %v5474_v44 = vpack.c.bf16 %v2749_v38, %v2745_v36  ;;  %v5486_v34 = vpack.c.bf16 %v2773_v23, %v2769_v22  ;;  %v2505_v47 = vmax.f32 %v9425_v19, 0.0  ;;  %v2777_v38 = vld [vmem:[%s11352_s3 + $0x840] sm:$0xff] }
 0x1f8   :  { %v5280_v45 = vpack.c.bf16 %v664_v57, %v654_v39  ;;  %v744_v36 = vld [vmem:[%s11350_s1 + $0x15d8] sm:$0xff]  ;;  %v2781_v39 = vld [vmem:[%s11352_s3 + $0x860] sm:$0xff]  ;;  %v6108_v57 = vld [vmem:[%s11351_s0 + $0x10] sm:$0xff] }
 0x1f9   :  { %5263 = vmatpush1.bf16.msra.mxu0 %v5262_v46  ;;  %v653_v46 = vld [vmem:[%s11350_s1 + $0x1300] sm:$0xff]  ;;  %v2796_v19 = vld [vmem:[%s11352_s3 + $0x8d8] sm:$0xff] }
 0x1fa   :  { %5459 = vmatpush1.bf16.msra.mxu1 %v5458_v48  ;;  %5265 = vmatprep.subr.bf16.mxu0 %v5264_v50  ;;  %v663_v48 = vld [vmem:[%s11350_s1 + $0x1350] sm:$0xff]  ;;  %v2753_v50 = vld [vmem:[%s11352_s3 + $0x780] sm:$0xff] }
 0x1fb   :  { %5461 = vmatprep.subr.bf16.mxu1 %v5460_v55  ;;  %v674_v55 = vld [vmem:[%s11350_s1 + $0x13a8] sm:$0xff]  ;;  %v5282_v61 = vpack.c.bf16 %v663_v48, %v653_v46  ;;  %v5478_v63 = vpack.c.bf16 %v2757_v54, %v2753_v50  ;;  %v743_v46 = vld [vmem:[%s11350_s1 + $0x15d0] sm:$0xff]  ;;  %v5490_v50 = vpack.c.bf16 %v2781_v39, %v2777_v38  ;;  %v5492_v54 = vpack.c.bf16 %v2790_v41, %v2786_v40  ;;  %v2801_v22 = vld [vmem:[%s11352_s3 + $0x900] sm:$0xff] }
 0x1fc   :  { %v754_v48 = vld [vmem:[%s11350_s1 + $0x1628] sm:$0xff]  ;;  %v2805_v23 = vld [vmem:[%s11352_s3 + $0x920] sm:$0xff] }
 0x1fd   :  { %5267 = vmatpush1.bf16.msra.mxu0 %v5266_v1  ;;  %v5284_v1 = vpack.c.bf16 %v684_v58, %v674_v55  ;;  %v2785_v55 = vld [vmem:[%s11352_s3 + $0x880] sm:$0xff]  ;;  %v2822_v40 = vld [vmem:[%s11352_s3 + $0x9a8] sm:$0xff] }
 0x1fe   :  { %5463 = vmatpush1.bf16.msra.mxu1 %v5462_v2  ;;  %5269 = vmatprep.subr.bf16.mxu0 %v5268_v3  ;;  %v673_v2 = vld [vmem:[%s11350_s1 + $0x13a0] sm:$0xff]  ;;  %v683_v3 = vld [vmem:[%s11350_s1 + $0x13f0] sm:$0xff] }
 0x1ff   :  { %5465 = vmatprep.subr.bf16.mxu1 %v5464_v8  ;;  %v2765_v8 = vld [vmem:[%s11352_s3 + $0x7e0] sm:$0xff]  ;;  %v5286_v13 = vpack.c.bf16 %v683_v3, %v673_v2  ;;  %v763_v3 = vld [vmem:[%s11350_s1 + $0x1670] sm:$0xff] }
 0x200   :  { %v5482_v14 = vpack.c.bf16 %v2765_v8, %v2761_v5  ;;  %v2789_v58 = vld [vmem:[%s11352_s3 + $0x8a0] sm:$0xff]  ;;  %v774_v5 = vld [vmem:[%s11350_s1 + $0x16c8] sm:$0xff] }
 0x201   :  { %5271 = vmatpush1.bf16.msra.mxu0 %v5270_v15  ;;  %v5288_v15 = vpack.c.bf16 %v704_v10, %v694_v9  ;;  %v753_v2 = vld [vmem:[%s11350_s1 + $0x1620] sm:$0xff]  ;;  %v5494_v6 = vpack.c.bf16 %v2789_v58, %v2785_v55  ;;  %v2826_v58 = vld [vmem:[%s11352_s3 + $0x9c8] sm:$0xff] }
 0x202   :  { %5467 = vmatpush1.bf16.msra.mxu1 %v5466_v16  ;;  %5273 = vmatprep.subr.bf16.mxu0 %v5272_v17  ;;  %v693_v16 = vld [vmem:[%s11350_s1 + $0x1440] sm:$0xff]  ;;  %v703_v17 = vld [vmem:[%s11350_s1 + $0x1490] sm:$0xff] }
 0x203   :  { %5469 = vmatprep.subr.bf16.mxu1 %v5468_v21  ;;  %v5484_v21 = vpack.c.bf16 %v2774_v31, %v2770_v11  ;;  %v5290_v26 = vpack.c.bf16 %v703_v17, %v693_v16  ;;  %v2793_v9 = vld [vmem:[%s11352_s3 + $0x8c0] sm:$0xff]  ;;  %v2802_v11 = vld [vmem:[%s11352_s3 + $0x908] sm:$0xff]  ;;  %v783_v16 = vld [vmem:[%s11350_s1 + $0x1710] sm:$0xff] }
 0x204   :  { %v2797_v10 = vld [vmem:[%s11352_s3 + $0x8e0] sm:$0xff]  ;;  %v2806_v31 = vld [vmem:[%s11352_s3 + $0x928] sm:$0xff] }
 0x205   :  { %5275 = vmatpush1.bf16.msra.mxu0 %v5274_v30  ;;  %v713_v30 = vld [vmem:[%s11350_s1 + $0x14e0] sm:$0xff]  ;;  %v794_v17 = vld [vmem:[%s11350_s1 + $0x1768] sm:$0xff]  ;;  %v5498_v18 = vpack.c.bf16 %v2797_v10, %v2793_v9 }
 0x206   :  { %5471 = vmatpush1.bf16.msra.mxu1 %v5470_v32  ;;  %5277 = vmatprep.subr.bf16.mxu0 %v5276_v33  ;;  %v723_v32 = vld [vmem:[%s11350_s1 + $0x1530] sm:$0xff]  ;;  %v734_v33 = vld [vmem:[%s11350_s1 + $0x1588] sm:$0xff]  ;;  %v2809_v38 = vld [vmem:[%s11352_s3 + $0x940] sm:$0xff] }
 0x207   :  { %5473 = vmatprep.subr.bf16.mxu1 %v5472_v37  ;;  %v5488_v37 = vpack.c.bf16 %v2782_v52, %v2778_v25  ;;  %v2810_v25 = vld [vmem:[%s11352_s3 + $0x948] sm:$0xff]  ;;  %v2813_v39 = vld [vmem:[%s11352_s3 + $0x960] sm:$0xff] }
 0x208   :  { %v2814_v52 = vld [vmem:[%s11352_s3 + $0x968] sm:$0xff]  ;;  %v2821_v55 = vld [vmem:[%s11352_s3 + $0x9a0] sm:$0xff] }
 0x209   :  { %5279 = vmatpush1.bf16.msra.mxu0 %v5278_v43  ;;  %v5294_v43 = vpack.c.bf16 %v723_v32, %v713_v30  ;;  %v793_v30 = vld [vmem:[%s11350_s1 + $0x1760] sm:$0xff]  ;;  %v803_v32 = vld [vmem:[%s11350_s1 + $0x17b0] sm:$0xff]  ;;  %v2834_v9 = vld [vmem:[%s11352_s3 + $0xa08] sm:$0xff] }
 0x20a   :  { %5475 = vmatpush1.bf16.msra.mxu1 %v5474_v44  ;;  %5281 = vmatprep.subr.bf16.mxu0 %v5280_v45  ;;  %v5296_v44 = vpack.c.bf16 %v744_v36, %v734_v33  ;;  %v733_v45 = vld [vmem:[%s11350_s1 + $0x1580] sm:$0xff]  ;;  %v814_v33 = vld [vmem:[%s11350_s1 + $0x1808] sm:$0xff]  ;;  %v824_v36 = vld [vmem:[%s11350_s1 + $0x1858] sm:$0xff]  ;;  %v5310_v41 = vpack.c.bf16 %v803_v32, %v793_v30 }
 0x20b   :  { %5477 = vmatprep.subr.bf16.mxu1 %v5476_v53  ;;  %v764_v53 = vld [vmem:[%s11350_s1 + $0x1678] sm:$0xff]  ;;  %v2838_v10 = vld [vmem:[%s11352_s3 + $0xa28] sm:$0xff] }
 0x20c   :  { %v894_v30 = vld [vmem:[%s11350_s1 + $0x1a88] sm:$0xff] }
 0x20d   :  { %5283 = vmatpush1.bf16.msra.mxu0 %v5282_v61  ;;  %v2798_v61 = vld [vmem:[%s11352_s3 + $0x8e8] sm:$0xff] }
 0x20e   :  { %5479 = vmatpush1.bf16.msra.mxu1 %v5478_v63  ;;  %5285 = vmatprep.subr.bf16.mxu0 %v5284_v1  ;;  %v5298_v63 = vpack.c.bf16 %v743_v46, %v733_v45  ;;  %v5300_v1 = vpack.c.bf16 %v764_v53, %v754_v48  ;;  %v5496_v8 = vpack.c.bf16 %v2798_v61, %v2794_v60  ;;  %v823_v45 = vld [vmem:[%s11350_s1 + $0x1850] sm:$0xff]  ;;  %v834_v46 = vld [vmem:[%s11350_s1 + $0x18a8] sm:$0xff] }
 0x20f   :  { %5481 = vmatprep.subr.bf16.mxu1 %v5480_v7  ;;  %v784_v7 = vld [vmem:[%s11350_s1 + $0x1718] sm:$0xff]  ;;  %v5506_v48 = vpack.c.bf16 %v2813_v39, %v2809_v38  ;;  %v2850_v38 = vld [vmem:[%s11352_s3 + $0xa88] sm:$0xff] }
 0x210   :  { %v2854_v39 = vld [vmem:[%s11352_s3 + $0xaa8] sm:$0xff] }
 0x211   :  { %5287 = vmatpush1.bf16.msra.mxu0 %v5286_v13  ;;  %v5302_v13 = vpack.c.bf16 %v763_v3, %v753_v2  ;;  %v854_v2 = vld [vmem:[%s11350_s1 + $0x1948] sm:$0xff] }
 0x212   :  { %5483 = vmatpush1.bf16.msra.mxu1 %v5482_v14  ;;  %5289 = vmatprep.subr.bf16.mxu0 %v5288_v15  ;;  %v5304_v14 = vpack.c.bf16 %v784_v7, %v774_v5  ;;  %v773_v15 = vld [vmem:[%s11350_s1 + $0x16c0] sm:$0xff]  ;;  %v864_v5 = vld [vmem:[%s11350_s1 + $0x1998] sm:$0xff] }
 0x213   :  { %5485 = vmatprep.subr.bf16.mxu1 %v5484_v21  ;;  %v5500_v21 = vpack.c.bf16 %v2806_v31, %v2802_v11  ;;  %v2825_v7 = vld [vmem:[%s11352_s3 + $0x9c0] sm:$0xff]  ;;  %v5320_v31 = vpack.c.bf16 %v864_v5, %v854_v2  ;;  %v944_v2 = vld [vmem:[%s11350_s1 + $0x1c18] sm:$0xff] }
 0x214   :  { %2355 = vmatmul.mubr.f32.vlgmr.msra.gmra.mrb[4].mxu0 %v6108_v57  ;;  %v2818_v57 = vld [vmem:[%s11352_s3 + $0x988] sm:$0xff]  ;;  %v2857_v5 = vld [vmem:[%s11352_s3 + $0xac0] sm:$0xff] }
 0x215   :  { %3263 = vmatmul.mubr.f32.vlgmr.msra.gmra.mrb[4].mxu1 %v2505_v47  ;;  %5291 = vmatpush1.bf16.msra.mxu0 %v5290_v26  ;;  %v5306_v26 = vpack.c.bf16 %v783_v16, %v773_v15  ;;  %v5508_v53 = vpack.c.bf16 %v2822_v40, %v2818_v57  ;;  %v874_v15 = vld [vmem:[%s11350_s1 + $0x19e8] sm:$0xff] }
 0x216   :  { %5293 = vmatprep.subr.bf16.mxu0 %v5292_v27  ;;  %5487 = vmatpush1.bf16.msra.mxu1 %v5486_v34  ;;  %v5308_v27 = vpack.c.bf16 %v804_v20, %v794_v17  ;;  %v5502_v34 = vpack.c.bf16 %v2805_v23, %v2801_v22  ;;  %v884_v17 = vld [vmem:[%s11350_s1 + $0x1a38] sm:$0xff]  ;;  %v2833_v20 = vld [vmem:[%s11352_s3 + $0xa00] sm:$0xff]  ;;  %v2842_v22 = vld [vmem:[%s11352_s3 + $0xa48] sm:$0xff] }
 0x217   :  { %5489 = vmatprep.subr.bf16.mxu1 %v5488_v37  ;;  %2425 = vmatprep.mubr.f32.mxu0 %v6109_v59  ;;  %v5504_v37 = vpack.c.bf16 %v2814_v52, %v2810_v25  ;;  %v2830_v59 = vld [vmem:[%s11352_s3 + $0x9e8] sm:$0xff]  ;;  %v5324_v52 = vpack.c.bf16 %v884_v17, %v874_v15  ;;  %v964_v15 = vld [vmem:[%s11350_s1 + $0x1cb8] sm:$0xff]  ;;  %v2865_v17 = vld [vmem:[%s11352_s3 + $0xb00] sm:$0xff] }
 0x218   :  { %v2846_v23 = vld [vmem:[%s11352_s3 + $0xa68] sm:$0xff] }
 0x219   :  { %5295 = vmatpush1.bf16.msra.mxu0 %v5294_v43  ;;  %v5312_v43 = vpack.c.bf16 %v824_v36, %v814_v33  ;;  %v904_v33 = vld [vmem:[%s11350_s1 + $0x1ad8] sm:$0xff]  ;;  %v2841_v36 = vld [vmem:[%s11352_s3 + $0xa40] sm:$0xff] }
 0x21a   :  { %5297 = vmatprep.subr.bf16.mxu0 %v5296_v44  ;;  %5491 = vmatpush1.bf16.msra.mxu1 %v5490_v50  ;;  %v813_v44 = vld [vmem:[%s11350_s1 + $0x1800] sm:$0xff]  ;;  %v844_v50 = vld [vmem:[%s11350_s1 + $0x18f8] sm:$0xff]  ;;  %v5328_v40 = vpack.c.bf16 %v904_v33, %v894_v30 }
 0x21b   :  { %5493 = vmatprep.subr.bf16.mxu1 %v5492_v54  ;;  %v2817_v54 = vld [vmem:[%s11352_s3 + $0x980] sm:$0xff]  ;;  %v5314_v60 = vpack.c.bf16 %v823_v45, %v813_v44  ;;  %v5316_v61 = vpack.c.bf16 %v844_v50, %v834_v46  ;;  %v914_v44 = vld [vmem:[%s11350_s1 + $0x1b28] sm:$0xff]  ;;  %v924_v46 = vld [vmem:[%s11350_s1 + $0x1b78] sm:$0xff] }
 0x21c   :  { %v5510_v3 = vpack.c.bf16 %v2821_v55, %v2817_v54  ;;  %v2849_v50 = vld [vmem:[%s11352_s3 + $0xa80] sm:$0xff]  ;;  %v2858_v54 = vld [vmem:[%s11352_s3 + $0xac8] sm:$0xff]  ;;  %v984_v30 = vld [vmem:[%s11350_s1 + $0x1d58] sm:$0xff] }
 0x21d   :  { %5299 = vmatpush1.bf16.msra.mxu0 %v5298_v63  ;;  %v833_v63 = vld [vmem:[%s11350_s1 + $0x18a0] sm:$0xff]  ;;  %v2862_v55 = vld [vmem:[%s11352_s3 + $0xae8] sm:$0xff] }
 0x21e   :  { %5301 = vmatprep.subr.bf16.mxu0 %v5300_v1  ;;  %5495 = vmatpush1.bf16.msra.mxu1 %v5494_v6  ;;  %v843_v1 = vld [vmem:[%s11350_s1 + $0x18f0] sm:$0xff]  ;;  %v5512_v6 = vpack.c.bf16 %v2830_v59, %v2826_v58  ;;  %v5332_v59 = vpack.c.bf16 %v924_v46, %v914_v44  ;;  %v2873_v33 = vld [vmem:[%s11352_s3 + $0xb40] sm:$0xff]  ;;  %v1004_v44 = vld [vmem:[%s11350_s1 + $0x1df8] sm:$0xff] }
 0x21f   :  { %5497 = vmatprep.subr.bf16.mxu1 %v5496_v8  ;;  %v2829_v8 = vld [vmem:[%s11352_s3 + $0x9e0] sm:$0xff]  ;;  %v5318_v11 = vpack.c.bf16 %v843_v1, %v833_v63  ;;  %v934_v63 = vld [vmem:[%s11350_s1 + $0x1bc8] sm:$0xff] }
 0x220   :  { %v5514_v16 = vpack.c.bf16 %v2829_v8, %v2825_v7  ;;  %v2866_v7 = vld [vmem:[%s11352_s3 + $0xb08] sm:$0xff]  ;;  %v2881_v46 = vld [vmem:[%s11352_s3 + $0xb80] sm:$0xff] }
 0x221   :  { %5303 = vmatpush1.bf16.msra.mxu0 %v5302_v13  ;;  %v853_v13 = vld [vmem:[%s11350_s1 + $0x1940] sm:$0xff]  ;;  %v2870_v8 = vld [vmem:[%s11352_s3 + $0xb28] sm:$0xff] }
 0x222   :  { %5305 = vmatprep.subr.bf16.mxu0 %v5304_v14  ;;  %5499 = vmatpush1.bf16.msra.mxu1 %v5498_v18  ;;  %v863_v14 = vld [vmem:[%s11350_s1 + $0x1990] sm:$0xff]  ;;  %v5516_v18 = vpack.c.bf16 %v2838_v10, %v2834_v9  ;;  %v5336_v10 = vpack.c.bf16 %v944_v2, %v934_v63  ;;  %v1024_v63 = vld [vmem:[%s11350_s1 + $0x1e98] sm:$0xff]  ;;  %v2889_v2 = vld [vmem:[%s11352_s3 + $0xbc0] sm:$0xff] }
 0x223   :  { %5501 = vmatprep.subr.bf16.mxu1 %v5500_v21  ;;  %v2837_v21 = vld [vmem:[%s11352_s3 + $0xa20] sm:$0xff]  ;;  %v5322_v25 = vpack.c.bf16 %v863_v14, %v853_v13  ;;  %v954_v13 = vld [vmem:[%s11350_s1 + $0x1c68] sm:$0xff] }
 0x224   :  { %v5518_v32 = vpack.c.bf16 %v2837_v21, %v2833_v20  ;;  %v2874_v20 = vld [vmem:[%s11352_s3 + $0xb48] sm:$0xff] }
 0x225   :  { %5307 = vmatpush1.bf16.msra.mxu0 %v5306_v26  ;;  %v873_v26 = vld [vmem:[%s11350_s1 + $0x19e0] sm:$0xff]  ;;  %v2878_v21 = vld [vmem:[%s11352_s3 + $0xb68] sm:$0xff] }
 0x226   :  { %5309 = vmatprep.subr.bf16.mxu0 %v5308_v27  ;;  %5503 = vmatpush1.bf16.msra.mxu1 %v5502_v34  ;;  %v883_v27 = vld [vmem:[%s11350_s1 + $0x1a30] sm:$0xff]  ;;  %v5520_v34 = vpack.c.bf16 %v2846_v23, %v2842_v22  ;;  %v5340_v23 = vpack.c.bf16 %v964_v15, %v954_v13  ;;  %v2520_v13 = vld [vmem:[%s11352_s3 + $0x38] sm:$0xff] }
 0x227   :  { %5505 = vmatprep.subr.bf16.mxu1 %v5504_v37  ;;  %v2845_v37 = vld [vmem:[%s11352_s3 + $0xa60] sm:$0xff]  ;;  %v5326_v57 = vpack.c.bf16 %v883_v27, %v873_v26  ;;  %v974_v26 = vld [vmem:[%s11350_s1 + $0x1d08] sm:$0xff] }
 0x228   :  { %v5522_v45 = vpack.c.bf16 %v2845_v37, %v2841_v36  ;;  %v2882_v36 = vld [vmem:[%s11352_s3 + $0xb88] sm:$0xff] }
 0x229   :  { %5311 = vmatpush1.bf16.msra.mxu0 %v5310_v41  ;;  %v893_v41 = vld [vmem:[%s11350_s1 + $0x1a80] sm:$0xff]  ;;  %v2886_v37 = vld [vmem:[%s11352_s3 + $0xba8] sm:$0xff] }
 0x22a   :  { %5313 = vmatprep.subr.bf16.mxu0 %v5312_v43  ;;  %5507 = vmatpush1.bf16.msra.mxu1 %v5506_v48  ;;  %v903_v43 = vld [vmem:[%s11350_s1 + $0x1ad0] sm:$0xff]  ;;  %v5524_v48 = vpack.c.bf16 %v2854_v39, %v2850_v38  ;;  %v5344_v39 = vpack.c.bf16 %v984_v30, %v974_v26  ;;  %v2536_v30 = vld [vmem:[%s11352_s3 + $0xb8] sm:$0xff] }
 0x22b   :  { %5509 = vmatprep.subr.bf16.mxu1 %v5508_v53  ;;  %v2853_v53 = vld [vmem:[%s11352_s3 + $0xaa0] sm:$0xff]  ;;  %v5330_v58 = vpack.c.bf16 %v903_v43, %v893_v41  ;;  %v994_v41 = vld [vmem:[%s11350_s1 + $0x1da8] sm:$0xff]  ;;  %v2527_v26 = vld [vmem:[%s11352_s3 + $0x70] sm:$0xff] }
 0x22c   :  { %v5526_v1 = vpack.c.bf16 %v2853_v53, %v2849_v50  ;;  %v2890_v50 = vld [vmem:[%s11352_s3 + $0xbc8] sm:$0xff] }
 0x22d   :  { %5315 = vmatpush1.bf16.msra.mxu0 %v5314_v60  ;;  %v913_v60 = vld [vmem:[%s11350_s1 + $0x1b20] sm:$0xff]  ;;  %v2894_v53 = vld [vmem:[%s11352_s3 + $0xbe8] sm:$0xff] }
 0x22e   :  { %5317 = vmatprep.subr.bf16.mxu0 %v5316_v61  ;;  %5511 = vmatpush1.bf16.msra.mxu1 %v5510_v3  ;;  %v923_v61 = vld [vmem:[%s11350_s1 + $0x1b70] sm:$0xff]  ;;  %v5528_v3 = vpack.c.bf16 %v2862_v55, %v2858_v54  ;;  %v5348_v55 = vpack.c.bf16 %v1004_v44, %v994_v41  ;;  %v1059_v44 = vsub.s32 7, %v8638_v12 }
 0x22f   :  { %5513 = vmatprep.subr.bf16.mxu1 %v5512_v6  ;;  %v2861_v6 = vld [vmem:[%s11352_s3 + $0xae0] sm:$0xff]  ;;  %v5334_v9 = vpack.c.bf16 %v923_v61, %v913_v60  ;;  %v1014_v60 = vld [vmem:[%s11350_s1 + $0x1e48] sm:$0xff]  ;;  %v2539_v41 = vld [vmem:[%s11352_s3 + $0xd0] sm:$0xff] }
 0x230   :  { %v5530_v14 = vpack.c.bf16 %v2861_v6, %v2857_v5  ;;  %v2898_v5 = vld [vmem:[%s11352_s3 + $0xc08] sm:$0xff] }
 0x231   :  { %5319 = vmatpush1.bf16.msra.mxu0 %v5318_v11  ;;  %v933_v11 = vld [vmem:[%s11350_s1 + $0x1bc0] sm:$0xff]  ;;  %v2902_v6 = vld [vmem:[%s11352_s3 + $0xc28] sm:$0xff] }
 0x232   :  { %5321 = vmatprep.subr.bf16.mxu0 %v5320_v31  ;;  %5515 = vmatpush1.bf16.msra.mxu1 %v5514_v16  ;;  %v943_v31 = vld [vmem:[%s11350_s1 + $0x1c10] sm:$0xff]  ;;  %v5532_v16 = vpack.c.bf16 %v2870_v8, %v2866_v7  ;;  %v5352_v8 = vpack.c.bf16 %v1024_v63, %v1014_v60  ;;  %v2556_v63 = vld [vmem:[%s11352_s3 + $0x158] sm:$0xff] }
 0x233   :  { %5517 = vmatprep.subr.bf16.mxu1 %v5516_v18  ;;  %v2869_v18 = vld [vmem:[%s11352_s3 + $0xb20] sm:$0xff]  ;;  %v5338_v22 = vpack.c.bf16 %v943_v31, %v933_v11  ;;  %v2516_v31 = vld [vmem:[%s11352_s3 + $0x18] sm:$0xff]  ;;  %v2551_v60 = vld [vmem:[%s11352_s3 + $0x130] sm:$0xff] }
 0x234   :  { %v5534_v27 = vpack.c.bf16 %v2869_v18, %v2865_v17  ;;  %v6110_v17 = vld [vmem:[%s11351_s0 + $0x20] sm:$0xff]  ;;  %v2515_v18 = vld [vmem:[%s11352_s3 + $0x10] sm:$0xff] }
 0x235   :  { %5323 = vmatpush1.bf16.msra.mxu0 %v5322_v25  ;;  %v953_v25 = vld [vmem:[%s11350_s1 + $0x1c60] sm:$0xff] }
 0x236   :  { %5325 = vmatprep.subr.bf16.mxu0 %v5324_v52  ;;  %5519 = vmatpush1.bf16.msra.mxu1 %v5518_v32  ;;  %v963_v52 = vld [vmem:[%s11350_s1 + $0x1cb0] sm:$0xff]  ;;  %v5536_v32 = vpack.c.bf16 %v2878_v21, %v2874_v20  ;;  %v2524_v21 = vld [vmem:[%s11352_s3 + $0x58] sm:$0xff] }
 0x237   :  { %5521 = vmatprep.subr.bf16.mxu1 %v5520_v34  ;;  %v2877_v34 = vld [vmem:[%s11352_s3 + $0xb60] sm:$0xff]  ;;  %v5342_v38 = vpack.c.bf16 %v963_v52, %v953_v25  ;;  %v2519_v20 = vld [vmem:[%s11352_s3 + $0x30] sm:$0xff] }
 0x238   :  { %v5538_v43 = vpack.c.bf16 %v2877_v34, %v2873_v33  ;;  %v2523_v52 = vld [vmem:[%s11352_s3 + $0x50] sm:$0xff] }
 0x239   :  { %5327 = vmatpush1.bf16.msra.mxu0 %v5326_v57  ;;  %v973_v57 = vld [vmem:[%s11350_s1 + $0x1d00] sm:$0xff]  ;;  %v5654_v33 = vpack.c.bf16 %v2527_v26, %v2523_v52 }
 0x23a   :  { %5329 = vmatprep.subr.bf16.mxu0 %v5328_v40  ;;  %5523 = vmatpush1.bf16.msra.mxu1 %v5522_v45  ;;  %v983_v40 = vld [vmem:[%s11350_s1 + $0x1d50] sm:$0xff]  ;;  %v5540_v45 = vpack.c.bf16 %v2886_v37, %v2882_v36  ;;  %v2909_v52 = vld [vmem:[%s11352_s3 + $0xc60] sm:$0xff] }
 0x23b   :  { %5525 = vmatprep.subr.bf16.mxu1 %v5524_v48  ;;  %v2885_v48 = vld [vmem:[%s11352_s3 + $0xba0] sm:$0xff]  ;;  %v5346_v54 = vpack.c.bf16 %v983_v40, %v973_v57  ;;  %v2531_v36 = vld [vmem:[%s11352_s3 + $0x90] sm:$0xff]  ;;  %v1051_v57 = vsub.s32 5, %v8638_v12 }
 0x23c   :  { %v5542_v61 = vpack.c.bf16 %v2885_v48, %v2881_v46  ;;  %v2535_v37 = vld [vmem:[%s11352_s3 + $0xb0] sm:$0xff]  ;;  %v2552_v46 = vld [vmem:[%s11352_s3 + $0x138] sm:$0xff]  ;;  %v9887_v48 = vld [vmem:[%s11353_s2] sm:$0xff] }
 0x23d   :  { %5331 = vmatpush1.bf16.msra.mxu0 %v5330_v58  ;;  %v993_v58 = vld [vmem:[%s11350_s1 + $0x1da0] sm:$0xff] }
 0x23e   :  { %5333 = vmatprep.subr.bf16.mxu0 %v5332_v59  ;;  %5527 = vmatpush1.bf16.msra.mxu1 %v5526_v1  ;;  %v1003_v59 = vld [vmem:[%s11350_s1 + $0x1df0] sm:$0xff]  ;;  %v5544_v1 = vpack.c.bf16 %v2894_v53, %v2890_v50 }
 0x23f   :  { %5529 = vmatprep.subr.bf16.mxu1 %v5528_v3  ;;  %v2893_v3 = vld [vmem:[%s11352_s3 + $0xbe0] sm:$0xff]  ;;  %v5350_v7 = vpack.c.bf16 %v1003_v59, %v993_v58  ;;  %v2547_v59 = vld [vmem:[%s11352_s3 + $0x110] sm:$0xff] }
 0x240   :  { %v5546_v11 = vpack.c.bf16 %v2893_v3, %v2889_v2 }
 0x241   :  { %5335 = vmatpush1.bf16.msra.mxu0 %v5334_v9  ;;  %v1013_v9 = vld [vmem:[%s11350_s1 + $0x1e40] sm:$0xff] }
 0x242   :  { %5337 = vmatprep.subr.bf16.mxu0 %v5336_v10  ;;  %5531 = vmatpush1.bf16.msra.mxu1 %v5530_v14  ;;  %v1023_v10 = vld [vmem:[%s11350_s1 + $0x1e90] sm:$0xff]  ;;  %v5548_v14 = vpack.c.bf16 %v2902_v6, %v2898_v5  ;;  %v2897_v6 = vld [vmem:[%s11352_s3 + $0xc00] sm:$0xff] }
 0x243   :  { %5533 = vmatprep.subr.bf16.mxu1 %v5532_v16  ;;  %v5354_v15 = vpack.c.bf16 %v1023_v10, %v1013_v9  ;;  %v5648_v16 = vpack.c.bf16 %v2520_v13, %v2516_v31  ;;  %v5666_v10 = vpack.c.bf16 %v2551_v60, %v2547_v59  ;;  %v2910_v31 = vld [vmem:[%s11352_s3 + $0xc68] sm:$0xff]  ;;  %v2925_v59 = vld [vmem:[%s11352_s3 + $0xce0] sm:$0xff] }
 0x245   :  { %5339 = vmatpush1.bf16.msra.mxu0 %v5338_v22  ;;  %v2528_v22 = vld [vmem:[%s11352_s3 + $0x78] sm:$0xff] }
 0x246   :  { %5341 = vmatprep.subr.bf16.mxu0 %v5340_v23  ;;  %5535 = vmatpush1.bf16.msra.mxu1 %v5534_v27  ;;  %v5650_v23 = vpack.c.bf16 %v2519_v20, %v2515_v18  ;;  %v5652_v25 = vpack.c.bf16 %v2528_v22, %v2524_v21  ;;  %v2532_v27 = vld [vmem:[%s11352_s3 + $0x98] sm:$0xff] }
 0x247   :  { %5537 = vmatprep.subr.bf16.mxu1 %v5536_v32  ;;  %v6111_v32 = vld [vmem:[%s11351_s0 + $0x30] sm:$0xff]  ;;  %v5656_v34 = vpack.c.bf16 %v2536_v30, %v2532_v27  ;;  %v2564_v20 = vld [vmem:[%s11352_s3 + $0x198] sm:$0xff]  ;;  %v2914_v30 = vld [vmem:[%s11352_s3 + $0xc88] sm:$0xff] }
 0x248   :  { %v2568_v21 = vld [vmem:[%s11352_s3 + $0x1b8] sm:$0xff] }
 0x249   :  { %5343 = vmatpush1.bf16.msra.mxu0 %v5342_v38  ;;  %v2540_v38 = vld [vmem:[%s11352_s3 + $0xd8] sm:$0xff] }
 0x24a   :  { %5345 = vmatprep.subr.bf16.mxu0 %v5344_v39  ;;  %5539 = vmatpush1.bf16.msra.mxu1 %v5538_v43  ;;  %v5658_v39 = vpack.c.bf16 %v2535_v37, %v2531_v36  ;;  %v5660_v40 = vpack.c.bf16 %v2544_v56, %v2540_v38  ;;  %v2543_v43 = vld [vmem:[%s11352_s3 + $0xf0] sm:$0xff]  ;;  %v2572_v38 = vld [vmem:[%s11352_s3 + $0x1d8] sm:$0xff] }
 0x24b   :  { %5541 = vmatprep.subr.bf16.mxu1 %v5540_v45  ;;  %v2548_v45 = vld [vmem:[%s11352_s3 + $0x118] sm:$0xff]  ;;  %v5662_v53 = vpack.c.bf16 %v2543_v43, %v2539_v41  ;;  %v2567_v36 = vld [vmem:[%s11352_s3 + $0x1b0] sm:$0xff]  ;;  %v2922_v41 = vld [vmem:[%s11352_s3 + $0xcc8] sm:$0xff] }
 0x24c   :  { %v5664_v58 = vpack.c.bf16 %v2552_v46, %v2548_v45  ;;  %v2576_v56 = vld [vmem:[%s11352_s3 + $0x1f8] sm:$0xff]  ;;  %v2926_v43 = vld [vmem:[%s11352_s3 + $0xce8] sm:$0xff]  ;;  %v2571_v45 = vld [vmem:[%s11352_s3 + $0x1d0] sm:$0xff] }
 0x24d   :  { %5347 = vmatpush1.bf16.msra.mxu0 %v5346_v54  ;;  %v1052_v54 = vrot.slane %v9887_v48, %v1051_v57  ;;  %v2917_v57 = vld [vmem:[%s11352_s3 + $0xca0] sm:$0xff]  ;;  %v2575_v46 = vld [vmem:[%s11352_s3 + $0x1f0] sm:$0xff] }
 0x24e   :  { %5349 = vmatprep.subr.bf16.mxu0 %v5348_v55  ;;  %5543 = vmatpush1.bf16.msra.mxu1 %v5542_v61  ;;  %v1060_v55 = vrot.slane %v9887_v48, %v1059_v44  ;;  %v5676_v44 = vpack.c.bf16 %v2576_v56, %v2572_v38  ;;  %v5678_v60 = vpack.c.bf16 %v2575_v46, %v2571_v45  ;;  %v2595_v56 = vld [vmem:[%s11352_s3 + $0x290] sm:$0xff]  ;;  %v2954_v46 = vld [vmem:[%s11352_s3 + $0xdc8] sm:$0xff] }
 0x24f   :  { %5545 = vmatprep.subr.bf16.mxu1 %v5544_v1  ;;  %v2560_v1 = vld [vmem:[%s11352_s3 + $0x178] sm:$0xff] }
 0x251   :  { %5351 = vmatpush1.bf16.msra.mxu0 %v5350_v7  ;;  %v2901_v7 = vld [vmem:[%s11352_s3 + $0xc20] sm:$0xff] }
 0x252   :  { %5353 = vmatprep.subr.bf16.mxu0 %v5352_v8  ;;  %5547 = vmatpush1.bf16.msra.mxu1 %v5546_v11  ;;  %v2906_v11 = vld [vmem:[%s11352_s3 + $0xc48] sm:$0xff]  ;;  %v5550_v18 = vpack.c.bf16 %v2901_v7, %v2897_v6  ;;  %v2583_v6 = vld [vmem:[%s11352_s3 + $0x230] sm:$0xff] }
 0x253   :  { %5549 = vmatprep.subr.bf16.mxu1 %v5548_v14  ;;  %v5668_v14 = vpack.c.bf16 %v2560_v1, %v2556_v63  ;;  %v2934_v63 = vld [vmem:[%s11352_s3 + $0xd28] sm:$0xff] }
 0x254   :  { %2426 = vmatmul.mubr.f32.vlgmr.msra.gmra.mrb[4].mxu0 %v6110_v17 }
 0x255   :  { %5355 = vmatpush1.bf16.msra.mxu0 %v5354_v15  ;;  %2496 = vmatprep.mubr.f32.mxu0 %v6113_v24  ;;  %v2555_v15 = vld [vmem:[%s11352_s3 + $0x150] sm:$0xff] }
 0x256   :  { %5649 = vmatprep.subr.bf16.mxu0 %v5648_v16  ;;  %v2559_v16 = vld [vmem:[%s11352_s3 + $0x170] sm:$0xff] }
 0x257   :  { %v5670_v27 = vpack.c.bf16 %v2559_v16, %v2555_v15  ;;  %v2938_v16 = vld [vmem:[%s11352_s3 + $0xd48] sm:$0xff] }
 0x25c   :  { %4245 = vmatmul.mubr.msk.f32.vlgmr.msra.gmra.mrb[4].mxu0 %vm1079_vm0, %v6111_v32  ;;  %v2918_v32 = vld [vmem:[%s11352_s3 + $0xca8] sm:$0xff] }
 0x25d   :  { %5651 = vmatpush1.bf16.msra.mxu0 %v5650_v23  ;;  %3546 = vmatprep.mubr.f32.mxu0 %v2504_v0  ;;  %v1047_v0 = vsub.s32 4, %v8638_v12  ;;  %v5552_v23 = vpack.c.bf16 %v2910_v31, %v2906_v11  ;;  %v2929_v31 = vld [vmem:[%s11352_s3 + $0xd00] sm:$0xff] }
 0x25e   :  { %5653 = vmatprep.subr.bf16.mxu0 %v5652_v25  ;;  %v2905_v25 = vld [vmem:[%s11352_s3 + $0xc40] sm:$0xff] }
 0x25f   :  { %v1048_v50 = vrot.slane %v9887_v48, %v1047_v0  ;;  %v5554_v37 = vpack.c.bf16 %v2909_v52, %v2905_v25  ;;  %v5556_v0 = vpack.c.bf16 %v2918_v32, %v2914_v30  ;;  %v2596_v52 = vld [vmem:[%s11352_s3 + $0x298] sm:$0xff]  ;;  %v2937_v32 = vld [vmem:[%s11352_s3 + $0xd40] sm:$0xff] }
 0x261   :  { %5655 = vmatpush1.bf16.msra.mxu0 %v5654_v33  ;;  %v5672_v33 = vpack.c.bf16 %v2568_v21, %v2564_v20  ;;  %v2587_v21 = vld [vmem:[%s11352_s3 + $0x250] sm:$0xff] }
 0x262   :  { %5657 = vmatprep.subr.bf16.mxu0 %v5656_v34  ;;  %v2563_v34 = vld [vmem:[%s11352_s3 + $0x190] sm:$0xff] }
 0x265   :  { %5659 = vmatpush1.bf16.msra.mxu0 %v5658_v39  ;;  %v2913_v39 = vld [vmem:[%s11352_s3 + $0xc80] sm:$0xff] }
 0x266   :  { %5661 = vmatprep.subr.bf16.mxu0 %v5660_v40  ;;  %v5674_v40 = vpack.c.bf16 %v2567_v36, %v2563_v34  ;;  %v2946_v36 = vld [vmem:[%s11352_s3 + $0xd88] sm:$0xff] }
 0x267   :  { %v1930_v61 = vpop.f32.mrb[2].mxu0 }
 0x268   :  { %v9904_v2 = vadd.f32 %v1930_v61, %v1048_v50  ;;  %v9906_v3 = vpop.f32.mrb[2].mxu1  ;;  %v1932_v5 = vpop.f32.mrb[3].mxu0  ;;  %v5558_v50 = vpack.c.bf16 %v2917_v57, %v2913_v39  ;;  %v2930_v61 = vld [vmem:[%s11352_s3 + $0xd08] sm:$0xff]  ;;  %v2604_v57 = vld [vmem:[%s11352_s3 + $0x2d8] sm:$0xff] }
 0x269   :  { %5663 = vmatpush1.bf16.msra.mxu0 %v5662_v53  ;;  %v9914_v8 = vadd.f32 %v1932_v5, %v1052_v54  ;;  %v2216_v9 = vpop.f32.mrb[3].mxu1  ;;  %v2580_v53 = vld [vmem:[%s11352_s3 + $0x218] sm:$0xff]  ;;  %v2579_v5 = vld [vmem:[%s11352_s3 + $0x210] sm:$0xff]  ;;  %v5564_v11 = vpack.c.bf16 %v2934_v63, %v2930_v61  ;;  %v2953_v63 = vld [vmem:[%s11352_s3 + $0xdc0] sm:$0xff] }
 0x26a   :  { %v9922_v13 = vadd.f32 %v2216_v9, %v1060_v55  ;;  %5665 = vmatprep.subr.bf16.mxu0 %v5664_v58  ;;  %v2507_v22 = vmax.f32 %v9904_v2, 0.0  ;;  %v2584_v54 = vld [vmem:[%s11352_s3 + $0x238] sm:$0xff]  ;;  %v5560_v55 = vpack.c.bf16 %v2926_v43, %v2922_v41  ;;  %v2921_v58 = vld [vmem:[%s11352_s3 + $0xcc0] sm:$0xff]  ;;  %v5682_v15 = vpack.c.bf16 %v2583_v6, %v2579_v5  ;;  %v2962_v6 = vld [vmem:[%s11352_s3 + $0xe08] sm:$0xff] }
 0x26b   :  { %v2508_v17 = vmax.f32 %v9914_v8, 0.0  ;;  %v5680_v1 = vpack.c.bf16 %v2584_v54, %v2580_v53  ;;  %v5562_v7 = vpack.c.bf16 %v2925_v59, %v2921_v58  ;;  %v2588_v9 = vld [vmem:[%s11352_s3 + $0x258] sm:$0xff]  ;;  %v2945_v43 = vld [vmem:[%s11352_s3 + $0xd80] sm:$0xff]  ;;  %v2603_v54 = vld [vmem:[%s11352_s3 + $0x2d0] sm:$0xff] }
 0x26c   :  { %v2510_v26 = vmax.f32 %v9922_v13, 0.0  ;;  %v2612_v59 = vld [vmem:[%s11352_s3 + $0x318] sm:$0xff] }
 0x26d   :  { %5667 = vmatpush1.bf16.msra.mxu0 %v5666_v10  ;;  %3333 = vmatprep.mubr.f32.mxu1 %v2508_v17  ;;  %v2592_v10 = vld [vmem:[%s11352_s3 + $0x278] sm:$0xff] }
 0x26e   :  { %3334 = vmatmul.mubr.f32.vlgmr.msra.gmra.mrb[4].mxu1 %v2507_v22  ;;  %5669 = vmatprep.subr.bf16.mxu0 %v5668_v14  ;;  %v2933_v14 = vld [vmem:[%s11352_s3 + $0xd20] sm:$0xff]  ;;  %v5684_v20 = vpack.c.bf16 %v2592_v10, %v2588_v9  ;;  %v2611_v10 = vld [vmem:[%s11352_s3 + $0x310] sm:$0xff]  ;;  %v2924_v2 = vld [vmem:[%s11352_s3 + $0xcd8] sm:$0xff] }
 0x26f   :  { %5551 = vmatpush1.bf16.msra.mxu1 %v5550_v18  ;;  %3404 = vmatprep.mubr.f32.mxu1 %v2510_v26  ;;  %v2942_v18 = vld [vmem:[%s11352_s3 + $0xd68] sm:$0xff]  ;;  %v5566_v25 = vpack.c.bf16 %v2933_v14, %v2929_v31  ;;  %v2620_v14 = vld [vmem:[%s11352_s3 + $0x358] sm:$0xff] }
 0x270   :  { %5553 = vmatprep.subr.bf16.mxu1 %v5552_v23  ;;  %v2591_v23 = vld [vmem:[%s11352_s3 + $0x270] sm:$0xff]  ;;  %v5568_v30 = vpack.c.bf16 %v2942_v18, %v2938_v16  ;;  %v2961_v18 = vld [vmem:[%s11352_s3 + $0xe00] sm:$0xff]  ;;  %v2928_v13 = vld [vmem:[%s11352_s3 + $0xcf8] sm:$0xff] }
 0x271   :  { %5671 = vmatpush1.bf16.msra.mxu0 %v5670_v27  ;;  %v2600_v27 = vld [vmem:[%s11352_s3 + $0x2b8] sm:$0xff]  ;;  %v5686_v34 = vpack.c.bf16 %v2591_v23, %v2587_v21  ;;  %v2970_v23 = vld [vmem:[%s11352_s3 + $0xe48] sm:$0xff] }
 0x272   :  { %5673 = vmatprep.subr.bf16.mxu0 %v5672_v33  ;;  %v2941_v33 = vld [vmem:[%s11352_s3 + $0xd60] sm:$0xff]  ;;  %v5688_v38 = vpack.c.bf16 %v2600_v27, %v2596_v52  ;;  %v2619_v27 = vld [vmem:[%s11352_s3 + $0x350] sm:$0xff] }
 0x273   :  { %5555 = vmatpush1.bf16.msra.mxu1 %v5554_v37  ;;  %v2950_v37 = vld [vmem:[%s11352_s3 + $0xda8] sm:$0xff]  ;;  %v5570_v39 = vpack.c.bf16 %v2941_v33, %v2937_v32  ;;  %v2628_v33 = vld [vmem:[%s11352_s3 + $0x398] sm:$0xff] }
 0x274   :  { %5557 = vmatprep.subr.bf16.mxu1 %v5556_v0  ;;  %v2599_v0 = vld [vmem:[%s11352_s3 + $0x2b0] sm:$0xff]  ;;  %v5572_v41 = vpack.c.bf16 %v2950_v37, %v2946_v36  ;;  %v2969_v37 = vld [vmem:[%s11352_s3 + $0xe40] sm:$0xff] }
 0x275   :  { %5675 = vmatpush1.bf16.msra.mxu0 %v5674_v40  ;;  %v2608_v40 = vld [vmem:[%s11352_s3 + $0x2f8] sm:$0xff]  ;;  %v5690_v45 = vpack.c.bf16 %v2599_v0, %v2595_v56  ;;  %v2978_v0 = vld [vmem:[%s11352_s3 + $0xe88] sm:$0xff] }
 0x276   :  { %5677 = vmatprep.subr.bf16.mxu0 %v5676_v44  ;;  %v2949_v44 = vld [vmem:[%s11352_s3 + $0xda0] sm:$0xff]  ;;  %v5692_v53 = vpack.c.bf16 %v2608_v40, %v2604_v57  ;;  %v2627_v40 = vld [vmem:[%s11352_s3 + $0x390] sm:$0xff] }
 0x277   :  { %5559 = vmatpush1.bf16.msra.mxu1 %v5558_v50  ;;  %v2958_v50 = vld [vmem:[%s11352_s3 + $0xde8] sm:$0xff]  ;;  %v5574_v58 = vpack.c.bf16 %v2949_v44, %v2945_v43  ;;  %v2636_v44 = vld [vmem:[%s11352_s3 + $0x3d8] sm:$0xff] }
 0x278   :  { %5561 = vmatprep.subr.bf16.mxu1 %v5560_v55  ;;  %v2607_v55 = vld [vmem:[%s11352_s3 + $0x2f0] sm:$0xff]  ;;  %v5576_v61 = vpack.c.bf16 %v2958_v50, %v2954_v46  ;;  %v2977_v50 = vld [vmem:[%s11352_s3 + $0xe80] sm:$0xff] }
 0x279   :  { %5679 = vmatpush1.bf16.msra.mxu0 %v5678_v60  ;;  %v2616_v60 = vld [vmem:[%s11352_s3 + $0x338] sm:$0xff]  ;;  %v5694_v5 = vpack.c.bf16 %v2607_v55, %v2603_v54  ;;  %v2986_v55 = vld [vmem:[%s11352_s3 + $0xec8] sm:$0xff] }
 0x27a   :  { %5681 = vmatprep.subr.bf16.mxu0 %v5680_v1  ;;  %v2957_v1 = vld [vmem:[%s11352_s3 + $0xde0] sm:$0xff]  ;;  %v5696_v9 = vpack.c.bf16 %v2616_v60, %v2612_v59  ;;  %v2635_v60 = vld [vmem:[%s11352_s3 + $0x3d0] sm:$0xff] }
 0x27b   :  { %5563 = vmatpush1.bf16.msra.mxu1 %v5562_v7  ;;  %v2966_v7 = vld [vmem:[%s11352_s3 + $0xe28] sm:$0xff]  ;;  %v5578_v31 = vpack.c.bf16 %v2957_v1, %v2953_v63  ;;  %v2644_v1 = vld [vmem:[%s11352_s3 + $0x418] sm:$0xff] }
 0x27c   :  { %5565 = vmatprep.subr.bf16.mxu1 %v5564_v11  ;;  %v2615_v11 = vld [vmem:[%s11352_s3 + $0x330] sm:$0xff]  ;;  %v5580_v16 = vpack.c.bf16 %v2966_v7, %v2962_v6  ;;  %v2985_v7 = vld [vmem:[%s11352_s3 + $0xec0] sm:$0xff] }
 0x27d   :  { %5683 = vmatpush1.bf16.msra.mxu0 %v5682_v15  ;;  %v2624_v15 = vld [vmem:[%s11352_s3 + $0x378] sm:$0xff]  ;;  %v5698_v21 = vpack.c.bf16 %v2615_v11, %v2611_v10  ;;  %v2994_v11 = vld [vmem:[%s11352_s3 + $0xf08] sm:$0xff] }
 0x27e   :  { %5685 = vmatprep.subr.bf16.mxu0 %v5684_v20  ;;  %v2965_v20 = vld [vmem:[%s11352_s3 + $0xe20] sm:$0xff]  ;;  %v5700_v52 = vpack.c.bf16 %v2624_v15, %v2620_v14  ;;  %v2643_v15 = vld [vmem:[%s11352_s3 + $0x410] sm:$0xff] }
 0x27f   :  { %5567 = vmatpush1.bf16.msra.mxu1 %v5566_v25  ;;  %v2974_v25 = vld [vmem:[%s11352_s3 + $0xe68] sm:$0xff]  ;;  %v5582_v32 = vpack.c.bf16 %v2965_v20, %v2961_v18  ;;  %v2652_v20 = vld [vmem:[%s11352_s3 + $0x458] sm:$0xff] }
 0x280   :  { %5569 = vmatprep.subr.bf16.mxu1 %v5568_v30  ;;  %v2623_v30 = vld [vmem:[%s11352_s3 + $0x370] sm:$0xff]  ;;  %v5584_v36 = vpack.c.bf16 %v2974_v25, %v2970_v23  ;;  %v2993_v25 = vld [vmem:[%s11352_s3 + $0xf00] sm:$0xff] }
 0x281   :  { %5687 = vmatpush1.bf16.msra.mxu0 %v5686_v34  ;;  %v2632_v34 = vld [vmem:[%s11352_s3 + $0x3b8] sm:$0xff]  ;;  %v5702_v56 = vpack.c.bf16 %v2623_v30, %v2619_v27  ;;  %v3002_v30 = vld [vmem:[%s11352_s3 + $0xf48] sm:$0xff] }
 0x282   :  { %5689 = vmatprep.subr.bf16.mxu0 %v5688_v38  ;;  %v2973_v38 = vld [vmem:[%s11352_s3 + $0xe60] sm:$0xff]  ;;  %v5704_v57 = vpack.c.bf16 %v2632_v34, %v2628_v33  ;;  %v2651_v34 = vld [vmem:[%s11352_s3 + $0x450] sm:$0xff] }
 0x283   :  { %5571 = vmatpush1.bf16.msra.mxu1 %v5570_v39  ;;  %v2982_v39 = vld [vmem:[%s11352_s3 + $0xea8] sm:$0xff]  ;;  %v5586_v43 = vpack.c.bf16 %v2973_v38, %v2969_v37  ;;  %v2660_v38 = vld [vmem:[%s11352_s3 + $0x498] sm:$0xff] }
 0x284   :  { %5573 = vmatprep.subr.bf16.mxu1 %v5572_v41  ;;  %v2631_v41 = vld [vmem:[%s11352_s3 + $0x3b0] sm:$0xff]  ;;  %v5588_v46 = vpack.c.bf16 %v2982_v39, %v2978_v0  ;;  %v3001_v39 = vld [vmem:[%s11352_s3 + $0xf40] sm:$0xff] }
 0x285   :  { %5691 = vmatpush1.bf16.msra.mxu0 %v5690_v45  ;;  %v2640_v45 = vld [vmem:[%s11352_s3 + $0x3f8] sm:$0xff]  ;;  %v5706_v54 = vpack.c.bf16 %v2631_v41, %v2627_v40 }
 0x286   :  { %5693 = vmatprep.subr.bf16.mxu0 %v5692_v53  ;;  %v2981_v53 = vld [vmem:[%s11352_s3 + $0xea0] sm:$0xff]  ;;  %v5708_v59 = vpack.c.bf16 %v2640_v45, %v2636_v44  ;;  %v2668_v44 = vld [vmem:[%s11352_s3 + $0x4d8] sm:$0xff] }
 0x287   :  { %5575 = vmatpush1.bf16.msra.mxu1 %v5574_v58  ;;  %v2990_v58 = vld [vmem:[%s11352_s3 + $0xee8] sm:$0xff]  ;;  %v5590_v63 = vpack.c.bf16 %v2981_v53, %v2977_v50  ;;  %v2672_v45 = vld [vmem:[%s11352_s3 + $0x4f8] sm:$0xff]  ;;  %v3009_v53 = vld [vmem:[%s11352_s3 + $0xf80] sm:$0xff] }
 0x288   :  { %5577 = vmatprep.subr.bf16.mxu1 %v5576_v61  ;;  %v2639_v61 = vld [vmem:[%s11352_s3 + $0x3f0] sm:$0xff]  ;;  %v5592_v6 = vpack.c.bf16 %v2990_v58, %v2986_v55  ;;  %v3018_v58 = vld [vmem:[%s11352_s3 + $0xfc8] sm:$0xff] }
 0x289   :  { %5695 = vmatpush1.bf16.msra.mxu0 %v5694_v5  ;;  %v2648_v5 = vld [vmem:[%s11352_s3 + $0x438] sm:$0xff]  ;;  %v5710_v10 = vpack.c.bf16 %v2639_v61, %v2635_v60  ;;  %v5724_v60 = vpack.c.bf16 %v2672_v45, %v2668_v44  ;;  %v2667_v61 = vld [vmem:[%s11352_s3 + $0x4d0] sm:$0xff] }
 0x28a   :  { %5697 = vmatprep.subr.bf16.mxu0 %v5696_v9  ;;  %v2989_v9 = vld [vmem:[%s11352_s3 + $0xee0] sm:$0xff]  ;;  %v5712_v14 = vpack.c.bf16 %v2648_v5, %v2644_v1  ;;  %v2676_v5 = vld [vmem:[%s11352_s3 + $0x518] sm:$0xff]  ;;  %v2695_v44 = vld [vmem:[%s11352_s3 + $0x5b0] sm:$0xff] }
 0x28b   :  { %5579 = vmatpush1.bf16.msra.mxu1 %v5578_v31  ;;  %v2998_v31 = vld [vmem:[%s11352_s3 + $0xf28] sm:$0xff]  ;;  %v5594_v18 = vpack.c.bf16 %v2989_v9, %v2985_v7  ;;  %v2700_v45 = vld [vmem:[%s11352_s3 + $0x5d8] sm:$0xff] }
 0x28c   :  { %5581 = vmatprep.subr.bf16.mxu1 %v5580_v16  ;;  %v2647_v16 = vld [vmem:[%s11352_s3 + $0x430] sm:$0xff]  ;;  %v5596_v23 = vpack.c.bf16 %v2998_v31, %v2994_v11  ;;  %v3021_v11 = vld [vmem:[%s11352_s3 + $0xfe0] sm:$0xff] }
 0x28d   :  { %5699 = vmatpush1.bf16.msra.mxu0 %v5698_v21  ;;  %v2656_v21 = vld [vmem:[%s11352_s3 + $0x478] sm:$0xff]  ;;  %v5714_v27 = vpack.c.bf16 %v2647_v16, %v2643_v15  ;;  %v2675_v16 = vld [vmem:[%s11352_s3 + $0x510] sm:$0xff] }
 0x28e   :  { %5701 = vmatprep.subr.bf16.mxu0 %v5700_v52  ;;  %v2997_v52 = vld [vmem:[%s11352_s3 + $0xf20] sm:$0xff]  ;;  %v5716_v33 = vpack.c.bf16 %v2656_v21, %v2652_v20  ;;  %v2684_v21 = vld [vmem:[%s11352_s3 + $0x558] sm:$0xff] }
 0x28f   :  { %5583 = vmatpush1.bf16.msra.mxu1 %v5582_v32  ;;  %v3006_v32 = vld [vmem:[%s11352_s3 + $0xf68] sm:$0xff]  ;;  %v5598_v37 = vpack.c.bf16 %v2997_v52, %v2993_v25 }
 0x290   :  { %5585 = vmatprep.subr.bf16.mxu1 %v5584_v36  ;;  %v2655_v36 = vld [vmem:[%s11352_s3 + $0x470] sm:$0xff]  ;;  %v5600_v0 = vpack.c.bf16 %v3006_v32, %v3002_v30  ;;  %v3029_v30 = vld [vmem:[%s11352_s3 + $0x1020] sm:$0xff] }
 0x291   :  { %5703 = vmatpush1.bf16.msra.mxu0 %v5702_v56  ;;  %v2664_v56 = vld [vmem:[%s11352_s3 + $0x4b8] sm:$0xff]  ;;  %v5718_v40 = vpack.c.bf16 %v2655_v36, %v2651_v34  ;;  %v2683_v36 = vld [vmem:[%s11352_s3 + $0x550] sm:$0xff] }
 0x292   :  { %5705 = vmatprep.subr.bf16.mxu0 %v5704_v57  ;;  %v3005_v57 = vld [vmem:[%s11352_s3 + $0xf60] sm:$0xff]  ;;  %v5720_v41 = vpack.c.bf16 %v2664_v56, %v2660_v38  ;;  %v2692_v38 = vld [vmem:[%s11352_s3 + $0x598] sm:$0xff] }
 0x293   :  { %5587 = vmatpush1.bf16.msra.mxu1 %v5586_v43  ;;  %v2659_v43 = vld [vmem:[%s11352_s3 + $0x490] sm:$0xff]  ;;  %v2696_v56 = vld [vmem:[%s11352_s3 + $0x5b8] sm:$0xff] }
 0x294   :  { %5589 = vmatprep.subr.bf16.mxu1 %v5588_v46  ;;  %v1055_v46 = vsub.s32 6, %v8638_v12  ;;  %v5722_v55 = vpack.c.bf16 %v2663_v35, %v2659_v43  ;;  %v3046_v43 = vld [vmem:[%s11352_s3 + $0x10a8] sm:$0xff]  ;;  %v5736_v35 = vpack.c.bf16 %v2696_v56, %v2692_v38  ;;  %v2724_v38 = vld [vmem:[%s11352_s3 + $0x698] sm:$0xff]  ;;  %v4042_v12 = vld [vmem:[%s11356_s7] sm:$0xff] }
 0x295   :  { %5707 = vmatpush1.bf16.msra.mxu0 %v5706_v54  ;;  %v3013_v54 = vld [vmem:[%s11352_s3 + $0xfa0] sm:$0xff]  ;;  %v2728_v56 = vld [vmem:[%s11352_s3 + $0x6b8] sm:$0xff] }
 0x296   :  { %5709 = vmatprep.subr.bf16.mxu0 %v5708_v59  ;;  %v3022_v59 = vld [vmem:[%s11352_s3 + $0xfe8] sm:$0xff]  ;;  %v5606_v1 = vpack.c.bf16 %v3013_v54, %v3009_v53  ;;  %v1056_v7 = vrot.slane %v9887_v48, %v1055_v46  ;;  %v2704_v46 = vld [vmem:[%s11352_s3 + $0x5f8] sm:$0xff]  ;;  %v3041_v54 = vld [vmem:[%s11352_s3 + $0x1080] sm:$0xff] }
 0x297   :  { %5591 = vmatpush1.bf16.msra.mxu1 %v5590_v63  ;;  %v2671_v63 = vld [vmem:[%s11352_s3 + $0x4f0] sm:$0xff]  ;;  %v5608_v9 = vpack.c.bf16 %v3022_v59, %v3018_v58  ;;  %v3030_v48 = vld [vmem:[%s11352_s3 + $0x1028] sm:$0xff] }
 0x298   :  { %5593 = vmatprep.subr.bf16.mxu1 %v5592_v6  ;;  %v2680_v6 = vld [vmem:[%s11352_s3 + $0x538] sm:$0xff]  ;;  %v5726_v31 = vpack.c.bf16 %v2671_v63, %v2667_v61  ;;  %v10312_v25 = vadd.f32 %v9906_v3, %v1056_v7  ;;  %v3038_v3 = vld [vmem:[%s11352_s3 + $0x1068] sm:$0xff]  ;;  %v5740_v61 = vpack.c.bf16 %v2704_v46, %v2700_v45  ;;  %v2699_v63 = vld [vmem:[%s11352_s3 + $0x5d0] sm:$0xff] }
 0x299   :  { %5711 = vmatpush1.bf16.msra.mxu0 %v5710_v10  ;;  %v3017_v10 = vld [vmem:[%s11352_s3 + $0xfc0] sm:$0xff]  ;;  %v5728_v15 = vpack.c.bf16 %v2680_v6, %v2676_v5  ;;  %v3050_v59 = vld [vmem:[%s11352_s3 + $0x10c8] sm:$0xff]  ;;  %v2708_v5 = vld [vmem:[%s11352_s3 + $0x618] sm:$0xff] }
 0x29a   :  { %5713 = vmatprep.subr.bf16.mxu0 %v5712_v14  ;;  %v3026_v14 = vld [vmem:[%s11352_s3 + $0x1008] sm:$0xff]  ;;  %v5610_v20 = vpack.c.bf16 %v3021_v11, %v3017_v10  ;;  %v2712_v6 = vld [vmem:[%s11352_s3 + $0x638] sm:$0xff]  ;;  %v3049_v10 = vld [vmem:[%s11352_s3 + $0x10c0] sm:$0xff] }
 0x29b   :  { %5595 = vmatpush1.bf16.msra.mxu1 %v5594_v18  ;;  %v2679_v18 = vld [vmem:[%s11352_s3 + $0x530] sm:$0xff]  ;;  %v5612_v52 = vpack.c.bf16 %v3030_v48, %v3026_v14  ;;  %v3053_v11 = vld [vmem:[%s11352_s3 + $0x10e0] sm:$0xff]  ;;  %v3058_v14 = vld [vmem:[%s11352_s3 + $0x1108] sm:$0xff] }
 0x29c   :  { %3547 = vmatmul.mubr.f32.vlgmr.msra.gmra.mrb[6].mxu0 %v2503_v42  ;;  %5597 = vmatprep.subr.bf16.mxu1 %v5596_v23  ;;  %v3014_v42 = vld [vmem:[%s11352_s3 + $0xfa8] sm:$0xff]  ;;  %v2688_v23 = vld [vmem:[%s11352_s3 + $0x578] sm:$0xff]  ;;  %v5730_v32 = vpack.c.bf16 %v2679_v18, %v2675_v16  ;;  %v2707_v16 = vld [vmem:[%s11352_s3 + $0x610] sm:$0xff] }
 0x29d   :  { %5715 = vmatpush1.bf16.msra.mxu0 %v5714_v27  ;;  %3617 = vmatprep.mubr.f32.mxu0 %v2506_v49  ;;  %v5602_v49 = vpack.c.bf16 %v3005_v57, %v3001_v39  ;;  %v5604_v50 = vpack.c.bf16 %v3014_v42, %v3010_v29  ;;  %v3025_v27 = vld [vmem:[%s11352_s3 + $0x1000] sm:$0xff]  ;;  %v5732_v34 = vpack.c.bf16 %v2688_v23, %v2684_v21  ;;  %v2509_v39 = vmax.f32 %v10312_v25, 0.0  ;;  %v3062_v48 = vld [vmem:[%s11352_s3 + $0x1128] sm:$0xff]  ;;  %v2711_v18 = vld [vmem:[%s11352_s3 + $0x630] sm:$0xff] }
 0x29e   :  { %5717 = vmatprep.subr.bf16.mxu0 %v5716_v33  ;;  %v3034_v33 = vld [vmem:[%s11352_s3 + $0x1048] sm:$0xff]  ;;  %v3037_v29 = vld [vmem:[%s11352_s3 + $0x1060] sm:$0xff]  ;;  %v2720_v21 = vld [vmem:[%s11352_s3 + $0x678] sm:$0xff]  ;;  %v5626_v23 = vpack.c.bf16 %v3053_v11, %v3049_v10 }
 0x29f   :  { %5599 = vmatpush1.bf16.msra.mxu1 %v5598_v37  ;;  %v2687_v37 = vld [vmem:[%s11352_s3 + $0x570] sm:$0xff]  ;;  %v5616_v57 = vpack.c.bf16 %v3038_v3, %v3034_v33  ;;  %v3066_v33 = vld [vmem:[%s11352_s3 + $0x1148] sm:$0xff]  ;;  %v2732_v45 = vld [vmem:[%s11352_s3 + $0x6d8] sm:$0xff] }
 0x2a0   :  { %5601 = vmatprep.subr.bf16.mxu1 %v5600_v0  ;;  %v5614_v0 = vpack.c.bf16 %v3029_v30, %v3025_v27  ;;  %v5734_v42 = vpack.c.bf16 %v2687_v37, %v2683_v36  ;;  %v3057_v27 = vld [vmem:[%s11352_s3 + $0x1100] sm:$0xff]  ;;  %v3070_v3 = vld [vmem:[%s11352_s3 + $0x1168] sm:$0xff]  ;;  %v2715_v36 = vld [vmem:[%s11352_s3 + $0x650] sm:$0xff] }
 0x2a1   :  { %5719 = vmatpush1.bf16.msra.mxu0 %v5718_v40  ;;  %v3033_v40 = vld [vmem:[%s11352_s3 + $0x1040] sm:$0xff]  ;;  %v2719_v37 = vld [vmem:[%s11352_s3 + $0x670] sm:$0xff]  ;;  %v2736_v46 = vld [vmem:[%s11352_s3 + $0x6f8] sm:$0xff] }
 0x2a2   :  { %5721 = vmatprep.subr.bf16.mxu0 %v5720_v41  ;;  %v3042_v41 = vld [vmem:[%s11352_s3 + $0x1088] sm:$0xff]  ;;  %v3061_v30 = vld [vmem:[%s11352_s3 + $0x1120] sm:$0xff] }
 0x2a3   :  { %5603 = vmatpush1.bf16.msra.mxu1 %v5602_v49  ;;  %v2691_v49 = vld [vmem:[%s11352_s3 + $0x590] sm:$0xff]  ;;  %v5620_v53 = vpack.c.bf16 %v3046_v43, %v3042_v41  ;;  %v3074_v41 = vld [vmem:[%s11352_s3 + $0x1188] sm:$0xff]  ;;  %v3081_v10 = vld [vmem:[%s11352_s3 + $0x11c0] sm:$0xff] }
 0x2a4   :  { %5605 = vmatprep.subr.bf16.mxu1 %v5604_v50  ;;  %v5618_v50 = vpack.c.bf16 %v3037_v29, %v3033_v40  ;;  %v5738_v58 = vpack.c.bf16 %v2695_v44, %v2691_v49  ;;  %v3065_v40 = vld [vmem:[%s11352_s3 + $0x1140] sm:$0xff]  ;;  %v3078_v43 = vld [vmem:[%s11352_s3 + $0x11a8] sm:$0xff]  ;;  %v2723_v49 = vld [vmem:[%s11352_s3 + $0x690] sm:$0xff] }
 0x2a5   :  { %5723 = vmatpush1.bf16.msra.mxu0 %v5722_v55  ;;  %v3045_v55 = vld [vmem:[%s11352_s3 + $0x10a0] sm:$0xff]  ;;  %v2727_v44 = vld [vmem:[%s11352_s3 + $0x6b0] sm:$0xff] }
 0x2a6   :  { %5725 = vmatprep.subr.bf16.mxu0 %v5724_v60  ;;  %v3054_v60 = vld [vmem:[%s11352_s3 + $0x10e8] sm:$0xff]  ;;  %v5622_v7 = vpack.c.bf16 %v3045_v55, %v3041_v54  ;;  %v3069_v29 = vld [vmem:[%s11352_s3 + $0x1160] sm:$0xff] }
 0x2a7   :  { %5607 = vmatpush1.bf16.msra.mxu1 %v5606_v1  ;;  %v2703_v1 = vld [vmem:[%s11352_s3 + $0x5f0] sm:$0xff]  ;;  %v3073_v54 = vld [vmem:[%s11352_s3 + $0x1180] sm:$0xff] }
 0x2a8   :  { %5609 = vmatprep.subr.bf16.mxu1 %v5608_v9  ;;  %v5624_v9 = vpack.c.bf16 %v3054_v60, %v3050_v59  ;;  %v3077_v55 = vld [vmem:[%s11352_s3 + $0x11a0] sm:$0xff]  ;;  %v3082_v59 = vld [vmem:[%s11352_s3 + $0x11c8] sm:$0xff] }
 0x2a9   :  { %5727 = vmatpush1.bf16.msra.mxu0 %v5726_v31  ;;  %v5742_v31 = vpack.c.bf16 %v2703_v1, %v2699_v63  ;;  %v3086_v60 = vld [vmem:[%s11352_s3 + $0x11e8] sm:$0xff]  ;;  %v2731_v63 = vld [vmem:[%s11352_s3 + $0x6d0] sm:$0xff]  ;;  %v3085_v11 = vld [vmem:[%s11352_s3 + $0x11e0] sm:$0xff] }
 0x2aa   :  { %5729 = vmatprep.subr.bf16.mxu0 %v5728_v15  ;;  %v5744_v15 = vpack.c.bf16 %v2712_v6, %v2708_v5  ;;  %v2735_v1 = vld [vmem:[%s11352_s3 + $0x6f0] sm:$0xff]  ;;  %v2740_v5 = vld [vmem:[%s11352_s3 + $0x718] sm:$0xff]  ;;  %v3845_v25 = vld [vmem:[%s11354_s5 + $0x20] sm:$0xff] }
 0x2ab   :  { %5611 = vmatpush1.bf16.msra.mxu1 %v5610_v20  ;;  %v2716_v20 = vld [vmem:[%s11352_s3 + $0x658] sm:$0xff] }
 0x2ac   :  { %5613 = vmatprep.subr.bf16.mxu1 %v5612_v52  ;;  %v5628_v52 = vpack.c.bf16 %v3062_v48, %v3058_v14  ;;  %v2744_v6 = vld [vmem:[%s11352_s3 + $0x738] sm:$0xff]  ;;  %v3090_v14 = vld [vmem:[%s11352_s3 + $0x1208] sm:$0xff] }
 0x2ad   :  { %5731 = vmatpush1.bf16.msra.mxu0 %v5730_v32  ;;  %v5746_v32 = vpack.c.bf16 %v2711_v18, %v2707_v16  ;;  %v3094_v48 = vld [vmem:[%s11352_s3 + $0x1228] sm:$0xff]  ;;  %v2739_v16 = vld [vmem:[%s11352_s3 + $0x710] sm:$0xff] }
 0x2ae   :  { %3405 = vmatmul.mubr.f32.vlgmr.msra.gmra.mrb[4].mxu1 %v2509_v39  ;;  %5733 = vmatprep.subr.bf16.mxu0 %v5732_v34  ;;  %v5748_v34 = vpack.c.bf16 %v2720_v21, %v2716_v20  ;;  %v2743_v18 = vld [vmem:[%s11352_s3 + $0x730] sm:$0xff]  ;;  %v2748_v20 = vld [vmem:[%s11352_s3 + $0x758] sm:$0xff] }
 0x2af   :  { %5615 = vmatpush1.bf16.msra.mxu1 %v5614_v0  ;;  %v5630_v0 = vpack.c.bf16 %v3061_v30, %v3057_v27  ;;  %v2752_v21 = vld [vmem:[%s11352_s3 + $0x778] sm:$0xff]  ;;  %v3089_v27 = vld [vmem:[%s11352_s3 + $0x1200] sm:$0xff] }
 0x2b0   :  { %5617 = vmatprep.subr.bf16.mxu1 %v5616_v57  ;;  %v5632_v57 = vpack.c.bf16 %v3070_v3, %v3066_v33  ;;  %v3093_v30 = vld [vmem:[%s11352_s3 + $0x1220] sm:$0xff]  ;;  %v5764_v33 = vpack.c.bf16 %v2752_v21, %v2748_v20  ;;  %v2747_v3 = vld [vmem:[%s11352_s3 + $0x750] sm:$0xff]  ;;  %v2804_v20 = vld [vmem:[%s11352_s3 + $0x918] sm:$0xff] }
 0x2b1   :  { %5735 = vmatpush1.bf16.msra.mxu0 %v5734_v42  ;;  %v5750_v42 = vpack.c.bf16 %v2719_v37, %v2715_v36  ;;  %v2756_v36 = vld [vmem:[%s11352_s3 + $0x798] sm:$0xff] }
 0x2b2   :  { %5737 = vmatprep.subr.bf16.mxu0 %v5736_v35  ;;  %v5752_v35 = vpack.c.bf16 %v2728_v56, %v2724_v38  ;;  %v2760_v37 = vld [vmem:[%s11352_s3 + $0x7b8] sm:$0xff]  ;;  %v5646_v38 = vpack.c.bf16 %v3093_v30, %v3089_v27  ;;  %v2803_v27 = vld [vmem:[%s11352_s3 + $0x910] sm:$0xff] }
 0x2b3   :  { %5619 = vmatpush1.bf16.msra.mxu1 %v5618_v50  ;;  %v5634_v50 = vpack.c.bf16 %v3069_v29, %v3065_v40  ;;  %v3032_v40 = vld [vmem:[%s11352_s3 + $0x1038] sm:$0xff]  ;;  %v5768_v29 = vpack.c.bf16 %v2760_v37, %v2756_v36  ;;  %v2807_v30 = vld [vmem:[%s11352_s3 + $0x930] sm:$0xff] }
 0x2b4   :  { %5621 = vmatprep.subr.bf16.mxu1 %v5620_v53  ;;  %v5636_v53 = vpack.c.bf16 %v3078_v43, %v3074_v41  ;;  %v2759_v41 = vld [vmem:[%s11352_s3 + $0x7b0] sm:$0xff]  ;;  %v2764_v43 = vld [vmem:[%s11352_s3 + $0x7d8] sm:$0xff] }
 0x2b5   :  { %5739 = vmatpush1.bf16.msra.mxu0 %v5738_v58  ;;  %v5754_v58 = vpack.c.bf16 %v2727_v44, %v2723_v49  ;;  %v3097_v49 = vld [vmem:[%s11352_s3 + $0x1240] sm:$0xff]  ;;  %v2808_v21 = vld [vmem:[%s11352_s3 + $0x938] sm:$0xff]  ;;  %v2811_v36 = vld [vmem:[%s11352_s3 + $0x950] sm:$0xff] }
 0x2b6   :  { %5741 = vmatprep.subr.bf16.mxu0 %v5740_v61  ;;  %v5756_v61 = vpack.c.bf16 %v2736_v46, %v2732_v45  ;;  %v2815_v37 = vld [vmem:[%s11352_s3 + $0x970] sm:$0xff] }
 0x2b7   :  { %5623 = vmatpush1.bf16.msra.mxu1 %v5622_v7  ;;  %v5638_v7 = vpack.c.bf16 %v3077_v55, %v3073_v54  ;;  %v2772_v54 = vld [vmem:[%s11352_s3 + $0x818] sm:$0xff] }
 0x2b8   :  { %5625 = vmatprep.subr.bf16.mxu1 %v5624_v9  ;;  %v5640_v9 = vpack.c.bf16 %v3086_v60, %v3082_v59  ;;  %v2776_v55 = vld [vmem:[%s11352_s3 + $0x838] sm:$0xff]  ;;  %v2771_v60 = vld [vmem:[%s11352_s3 + $0x810] sm:$0xff] }
 0x2b9   :  { %5743 = vmatpush1.bf16.msra.mxu0 %v5742_v31  ;;  %v5758_v31 = vpack.c.bf16 %v2735_v1, %v2731_v63  ;;  %v5776_v59 = vpack.c.bf16 %v2776_v55, %v2772_v54  ;;  %v2780_v63 = vld [vmem:[%s11352_s3 + $0x858] sm:$0xff]  ;;  %v2835_v54 = vld [vmem:[%s11352_s3 + $0xa10] sm:$0xff] }
 0x2ba   :  { %5745 = vmatprep.subr.bf16.mxu0 %v5744_v15  ;;  %v5760_v15 = vpack.c.bf16 %v2744_v6, %v2740_v5  ;;  %v2784_v1 = vld [vmem:[%s11352_s3 + $0x878] sm:$0xff]  ;;  %v2839_v55 = vld [vmem:[%s11352_s3 + $0xa30] sm:$0xff] }
 0x2bb   :  { %5627 = vmatpush1.bf16.msra.mxu1 %v5626_v23  ;;  %v5642_v23 = vpack.c.bf16 %v3085_v11, %v3081_v10  ;;  %v5780_v6 = vpack.c.bf16 %v2784_v1, %v2780_v63  ;;  %v2788_v10 = vld [vmem:[%s11352_s3 + $0x898] sm:$0xff]  ;;  %v2843_v63 = vld [vmem:[%s11352_s3 + $0xa50] sm:$0xff] }
 0x2bc   :  { %5629 = vmatprep.subr.bf16.mxu1 %v5628_v52  ;;  %v5644_v52 = vpack.c.bf16 %v3094_v48, %v3090_v14  ;;  %v2792_v11 = vld [vmem:[%s11352_s3 + $0x8b8] sm:$0xff]  ;;  %v2787_v48 = vld [vmem:[%s11352_s3 + $0x890] sm:$0xff] }
 0x2bd   :  { %5747 = vmatpush1.bf16.msra.mxu0 %v5746_v32  ;;  %v5762_v32 = vpack.c.bf16 %v2743_v18, %v2739_v16  ;;  %v5784_v14 = vpack.c.bf16 %v2792_v11, %v2788_v10  ;;  %v2795_v16 = vld [vmem:[%s11352_s3 + $0x8d0] sm:$0xff] }
 0x2be   :  { %5749 = vmatprep.subr.bf16.mxu0 %v5748_v34  ;;  %v2751_v34 = vld [vmem:[%s11352_s3 + $0x770] sm:$0xff] }
 0x2bf   :  { %5631 = vmatpush1.bf16.msra.mxu1 %v5630_v0  ;;  %v5766_v56 = vpack.c.bf16 %v2751_v34, %v2747_v3  ;;  %v3098_v0 = vld [vmem:[%s11352_s3 + $0x1248] sm:$0xff]  ;;  %v2799_v18 = vld [vmem:[%s11352_s3 + $0x8f0] sm:$0xff]  ;;  %v5794_v3 = vpack.c.bf16 %v2807_v30, %v2803_v27 }
 0x2c0   :  { %5633 = vmatprep.subr.bf16.mxu1 %v5632_v57  ;;  %v3028_v57 = vld [vmem:[%s11352_s3 + $0x1018] sm:$0xff]  ;;  %v2847_v1 = vld [vmem:[%s11352_s3 + $0xa70] sm:$0xff] }
 0x2c1   :  { %5751 = vmatpush1.bf16.msra.mxu0 %v5750_v42  ;;  %v2755_v42 = vld [vmem:[%s11352_s3 + $0x790] sm:$0xff]  ;;  %v5904_v44 = vpack.c.bf16 %v3032_v40, %v3028_v57 }
 0x2c2   :  { %5753 = vmatprep.subr.bf16.mxu0 %v5752_v35  ;;  %v2768_v35 = vld [vmem:[%s11352_s3 + $0x7f8] sm:$0xff]  ;;  %v5770_v45 = vpack.c.bf16 %v2759_v41, %v2755_v42  ;;  %v2819_v40 = vld [vmem:[%s11352_s3 + $0x990] sm:$0xff] }
 0x2c3   :  { %5635 = vmatpush1.bf16.msra.mxu1 %v5634_v50  ;;  %v5772_v46 = vpack.c.bf16 %v2768_v35, %v2764_v43  ;;  %v2763_v50 = vld [vmem:[%s11352_s3 + $0x7d0] sm:$0xff]  ;;  %v2828_v42 = vld [vmem:[%s11352_s3 + $0x9d8] sm:$0xff] }
 0x2c4   :  { %5637 = vmatprep.subr.bf16.mxu1 %v5636_v53  ;;  %v2767_v53 = vld [vmem:[%s11352_s3 + $0x7f0] sm:$0xff]  ;;  %v2832_v41 = vld [vmem:[%s11352_s3 + $0x9f8] sm:$0xff] }
 0x2c5   :  { %5755 = vmatpush1.bf16.msra.mxu0 %v5754_v58  ;;  %v5774_v58 = vpack.c.bf16 %v2767_v53, %v2763_v50  ;;  %v5804_v35 = vpack.c.bf16 %v2832_v41, %v2828_v42  ;;  %v2851_v10 = vld [vmem:[%s11352_s3 + $0xa90] sm:$0xff] }
 0x2c6   :  { %5757 = vmatprep.subr.bf16.mxu0 %v5756_v61  ;;  %v2775_v61 = vld [vmem:[%s11352_s3 + $0x830] sm:$0xff] }
 0x2c7   :  { %5639 = vmatpush1.bf16.msra.mxu1 %v5638_v7  ;;  %v5778_v5 = vpack.c.bf16 %v2775_v61, %v2771_v60  ;;  %v2779_v7 = vld [vmem:[%s11352_s3 + $0x850] sm:$0xff]  ;;  %v5810_v60 = vpack.c.bf16 %v2839_v55, %v2835_v54 }
 0x2c8   :  { %5641 = vmatprep.subr.bf16.mxu1 %v5640_v9  ;;  %v2783_v9 = vld [vmem:[%s11352_s3 + $0x870] sm:$0xff] }
 0x2c9   :  { %5759 = vmatpush1.bf16.msra.mxu0 %v5758_v31  ;;  %v5782_v31 = vpack.c.bf16 %v2783_v9, %v2779_v7  ;;  %v5814_v7 = vpack.c.bf16 %v2847_v1, %v2843_v63  ;;  %v2855_v11 = vld [vmem:[%s11352_s3 + $0xab0] sm:$0xff] }
 0x2ca   :  { %5761 = vmatprep.subr.bf16.mxu0 %v5760_v15  ;;  %v2791_v15 = vld [vmem:[%s11352_s3 + $0x8b0] sm:$0xff] }
 0x2cb   :  { %5643 = vmatpush1.bf16.msra.mxu1 %v5642_v23  ;;  %v5786_v8 = vpack.c.bf16 %v2791_v15, %v2787_v48  ;;  %v5790_v23 = vpack.c.bf16 %v2799_v18, %v2795_v16  ;;  %v5818_v48 = vpack.c.bf16 %v2855_v11, %v2851_v10  ;;  %v2891_v42 = vld [vmem:[%s11352_s3 + $0xbd0] sm:$0xff]  ;;  %v2932_v10 = vld [vmem:[%s11352_s3 + $0xd18] sm:$0xff] }
 0x2cc   :  { %5645 = vmatprep.subr.bf16.mxu1 %v5644_v52  ;;  %v5792_v52 = vpack.c.bf16 %v2808_v21, %v2804_v20  ;;  %v2867_v20 = vld [vmem:[%s11352_s3 + $0xb10] sm:$0xff]  ;;  %v2936_v11 = vld [vmem:[%s11352_s3 + $0xd38] sm:$0xff] }
 0x2cd   :  { %5763 = vmatpush1.bf16.msra.mxu0 %v5762_v32  ;;  %v2812_v32 = vld [vmem:[%s11352_s3 + $0x958] sm:$0xff]  ;;  %v2871_v21 = vld [vmem:[%s11352_s3 + $0xb30] sm:$0xff] }
 0x2ce   :  { %5765 = vmatprep.subr.bf16.mxu0 %v5764_v33  ;;  %v2816_v33 = vld [vmem:[%s11352_s3 + $0x978] sm:$0xff]  ;;  %v5826_v27 = vpack.c.bf16 %v2871_v21, %v2867_v20  ;;  %v2895_v41 = vld [vmem:[%s11352_s3 + $0xbf0] sm:$0xff] }
 0x2cf   :  { %5647 = vmatpush1.bf16.msra.mxu1 %v5646_v38  ;;  %v5796_v34 = vpack.c.bf16 %v2816_v33, %v2812_v32  ;;  %v2820_v38 = vld [vmem:[%s11352_s3 + $0x998] sm:$0xff]  ;;  %v2875_v32 = vld [vmem:[%s11352_s3 + $0xb50] sm:$0xff] }
 0x2d0   :  { %3447 = vmatprep.subr.mxu1 %v3098_v0  ;;  %v5798_v0 = vpack.c.bf16 %v2815_v37, %v2811_v36  ;;  %v2879_v33 = vld [vmem:[%s11352_s3 + $0xb70] sm:$0xff]  ;;  %v2948_v21 = vld [vmem:[%s11352_s3 + $0xd98] sm:$0xff] }
 0x2d1   :  { %5767 = vmatpush1.bf16.msra.mxu0 %v5766_v56  ;;  %v2824_v56 = vld [vmem:[%s11352_s3 + $0x9b8] sm:$0xff]  ;;  %v5830_v36 = vpack.c.bf16 %v2879_v33, %v2875_v32  ;;  %v2943_v20 = vld [vmem:[%s11352_s3 + $0xd70] sm:$0xff] }
 0x2d2   :  { %5769 = vmatprep.subr.bf16.mxu0 %v5768_v29  ;;  %v5800_v57 = vpack.c.bf16 %v2824_v56, %v2820_v38  ;;  %v2823_v29 = vld [vmem:[%s11352_s3 + $0x9b0] sm:$0xff] }
 0x2d3   :  { %3448 = vmatpush1.msra.mxu1 %v3097_v49  ;;  %v5802_v43 = vpack.c.bf16 %v2823_v29, %v2819_v40  ;;  %v2827_v49 = vld [vmem:[%s11352_s3 + $0x9d0] sm:$0xff] }
 0x2d4   :  { %5905 = vmatprep.subr.bf16.mxu1 %v5904_v44  ;;  %v2831_v44 = vld [vmem:[%s11352_s3 + $0x9f0] sm:$0xff] }
 0x2d5   :  { %5771 = vmatpush1.bf16.msra.mxu0 %v5770_v45  ;;  %v2836_v45 = vld [vmem:[%s11352_s3 + $0xa18] sm:$0xff]  ;;  %v5806_v50 = vpack.c.bf16 %v2831_v44, %v2827_v49  ;;  %v2883_v38 = vld [vmem:[%s11352_s3 + $0xb90] sm:$0xff]  ;;  %v5838_v49 = vpack.c.bf16 %v2895_v41, %v2891_v42 }
 0x2d6   :  { %5773 = vmatprep.subr.bf16.mxu0 %v5772_v46  ;;  %v2840_v46 = vld [vmem:[%s11352_s3 + $0xa38] sm:$0xff]  ;;  %v2887_v56 = vld [vmem:[%s11352_s3 + $0xbb0] sm:$0xff] }
 0x2d7   :  { %v5808_v53 = vpack.c.bf16 %v2840_v46, %v2836_v45  ;;  %v5834_v40 = vpack.c.bf16 %v2887_v56, %v2883_v38  ;;  %v2899_v45 = vld [vmem:[%s11352_s3 + $0xc10] sm:$0xff]  ;;  %v3036_v42 = vld [vmem:[%s11352_s3 + $0x1058] sm:$0xff] }
 0x2d8   :  { %v2903_v46 = vld [vmem:[%s11352_s3 + $0xc30] sm:$0xff]  ;;  %v3040_v41 = vld [vmem:[%s11352_s3 + $0x1078] sm:$0xff] }
 0x2d9   :  { %5775 = vmatpush1.bf16.msra.mxu0 %v5774_v58  ;;  %v2844_v58 = vld [vmem:[%s11352_s3 + $0xa58] sm:$0xff]  ;;  %v5842_v54 = vpack.c.bf16 %v2903_v46, %v2899_v45  ;;  %v2947_v33 = vld [vmem:[%s11352_s3 + $0xd90] sm:$0xff] }
 0x2da   :  { %5777 = vmatprep.subr.bf16.mxu0 %v5776_v59  ;;  %v2848_v59 = vld [vmem:[%s11352_s3 + $0xa78] sm:$0xff] }
 0x2db   :  { %v5812_v61 = vpack.c.bf16 %v2848_v59, %v2844_v58  ;;  %v2907_v58 = vld [vmem:[%s11352_s3 + $0xc50] sm:$0xff]  ;;  %v2964_v46 = vld [vmem:[%s11352_s3 + $0xe18] sm:$0xff] }
 0x2dc   :  { %3618 = vmatmul.mubr.f32.vlgmr.msra.gmra.mrb[6].mxu0 %v2505_v47  ;;  %v2800_v47 = vld [vmem:[%s11352_s3 + $0x8f8] sm:$0xff]  ;;  %v2911_v59 = vld [vmem:[%s11352_s3 + $0xc70] sm:$0xff] }
 0x2dd   :  { %5779 = vmatpush1.bf16.msra.mxu0 %v5778_v5  ;;  %3688 = vmatprep.mubr.f32.mxu0 %v2508_v17  ;;  %v5788_v17 = vpack.c.bf16 %v2800_v47, %v2796_v19  ;;  %v2852_v5 = vld [vmem:[%s11352_s3 + $0xa98] sm:$0xff]  ;;  %v2859_v19 = vld [vmem:[%s11352_s3 + $0xad0] sm:$0xff]  ;;  %v5846_v63 = vpack.c.bf16 %v2911_v59, %v2907_v58 }
 0x2de   :  { %5781 = vmatprep.subr.bf16.mxu0 %v5780_v6  ;;  %v2856_v6 = vld [vmem:[%s11352_s3 + $0xab8] sm:$0xff]  ;;  %v2863_v47 = vld [vmem:[%s11352_s3 + $0xaf0] sm:$0xff] }
 0x2df   :  { %v5816_v9 = vpack.c.bf16 %v2856_v6, %v2852_v5  ;;  %v5822_v16 = vpack.c.bf16 %v2863_v47, %v2859_v19  ;;  %v2915_v5 = vld [vmem:[%s11352_s3 + $0xc90] sm:$0xff]  ;;  %v2940_v19 = vld [vmem:[%s11352_s3 + $0xd58] sm:$0xff] }
 0x2e0   :  { %v2919_v6 = vld [vmem:[%s11352_s3 + $0xcb0] sm:$0xff]  ;;  %v2944_v47 = vld [vmem:[%s11352_s3 + $0xd78] sm:$0xff] }
 0x2e1   :  { %5783 = vmatpush1.bf16.msra.mxu0 %v5782_v31  ;;  %v2860_v31 = vld [vmem:[%s11352_s3 + $0xad8] sm:$0xff]  ;;  %v3039_v58 = vld [vmem:[%s11352_s3 + $0x1070] sm:$0xff] }
 0x2e2   :  { %5785 = vmatprep.subr.bf16.mxu0 %v5784_v14  ;;  %v2864_v14 = vld [vmem:[%s11352_s3 + $0xaf8] sm:$0xff] }
 0x2e3   :  { %v5820_v15 = vpack.c.bf16 %v2864_v14, %v2860_v31  ;;  %v5856_v14 = vpack.c.bf16 %v2936_v11, %v2932_v10  ;;  %v3052_v10 = vld [vmem:[%s11352_s3 + $0x10d8] sm:$0xff] }
 0x2e4   :  { %v3056_v11 = vld [vmem:[%s11352_s3 + $0x10f8] sm:$0xff] }
 0x2e5   :  { %5787 = vmatpush1.bf16.msra.mxu0 %v5786_v8  ;;  %v2868_v8 = vld [vmem:[%s11352_s3 + $0xb18] sm:$0xff] }
 0x2e6   :  { %5789 = vmatprep.subr.bf16.mxu0 %v5788_v17  ;;  %v2872_v17 = vld [vmem:[%s11352_s3 + $0xb38] sm:$0xff] }
 0x2e7   :  { %v5824_v18 = vpack.c.bf16 %v2872_v17, %v2868_v8  ;;  %v1026_v17 = vld [vmem:[%s11353_s2 + $0x8] sm:$0x3] }
 0x2e9   :  { %5791 = vmatpush1.bf16.msra.mxu0 %v5790_v23  ;;  %v2876_v23 = vld [vmem:[%s11352_s3 + $0xb58] sm:$0xff] }
 0x2ea   :  { %5793 = vmatprep.subr.bf16.mxu0 %v5792_v52  ;;  %v2880_v52 = vld [vmem:[%s11352_s3 + $0xb78] sm:$0xff] }
 0x2eb   :  { %v5828_v30 = vpack.c.bf16 %v2880_v52, %v2876_v23  ;;  %v2952_v23 = vld [vmem:[%s11352_s3 + $0xdb8] sm:$0xff]  ;;  %v1064_v52 = vrot.slane %v1026_v17, %v8962_v62 }
 0x2ec   :  { %v5864_v32 = vpack.c.bf16 %v2952_v23, %v2948_v21  ;;  %v3064_v21 = vld [vmem:[%s11352_s3 + $0x1138] sm:$0xff] }
 0x2ed   :  { %5795 = vmatpush1.bf16.msra.mxu0 %v5794_v3  ;;  %v2884_v3 = vld [vmem:[%s11352_s3 + $0xb98] sm:$0xff] }
 0x2ee   :  { %5797 = vmatprep.subr.bf16.mxu0 %v5796_v34  ;;  %v2888_v34 = vld [vmem:[%s11352_s3 + $0xbb8] sm:$0xff] }
 0x2ef   :  { %v5832_v37 = vpack.c.bf16 %v2888_v34, %v2884_v3  ;;  %v2951_v3 = vld [vmem:[%s11352_s3 + $0xdb0] sm:$0xff] }
 0x2f1   :  { %5799 = vmatpush1.bf16.msra.mxu0 %v5798_v0  ;;  %v2892_v0 = vld [vmem:[%s11352_s3 + $0xbd8] sm:$0xff] }
 0x2f2   :  { %5801 = vmatprep.subr.bf16.mxu0 %v5800_v57  ;;  %v2896_v57 = vld [vmem:[%s11352_s3 + $0xbf8] sm:$0xff] }
 0x2f3   :  { %v5836_v29 = vpack.c.bf16 %v2896_v57, %v2892_v0  ;;  %v3027_v0 = vld [vmem:[%s11352_s3 + $0x1010] sm:$0xff] }
 0x2f4   :  { %v3031_v57 = vld [vmem:[%s11352_s3 + $0x1030] sm:$0xff] }
 0x2f5   :  { %5803 = vmatpush1.bf16.msra.mxu0 %v5802_v43  ;;  %v2900_v43 = vld [vmem:[%s11352_s3 + $0xc18] sm:$0xff]  ;;  %v5906_v45 = vpack.c.bf16 %v3031_v57, %v3027_v0 }
 0x2f6   :  { %5805 = vmatprep.subr.bf16.mxu0 %v5804_v35  ;;  %v2904_v35 = vld [vmem:[%s11352_s3 + $0xc38] sm:$0xff] }
 0x2f7   :  { %v5840_v44 = vpack.c.bf16 %v2904_v35, %v2900_v43  ;;  %v2955_v35 = vld [vmem:[%s11352_s3 + $0xdd0] sm:$0xff]  ;;  %v3072_v0 = vld [vmem:[%s11352_s3 + $0x1178] sm:$0xff] }
 0x2f9   :  { %5807 = vmatpush1.bf16.msra.mxu0 %v5806_v50  ;;  %v2908_v50 = vld [vmem:[%s11352_s3 + $0xc58] sm:$0xff] }
 0x2fa   :  { %5809 = vmatprep.subr.bf16.mxu0 %v5808_v53  ;;  %v2912_v53 = vld [vmem:[%s11352_s3 + $0xc78] sm:$0xff] }
 0x2fb   :  { %v5844_v55 = vpack.c.bf16 %v2912_v53, %v2908_v50  ;;  %v2968_v50 = vld [vmem:[%s11352_s3 + $0xe38] sm:$0xff] }
 0x2fd   :  { %5811 = vmatpush1.bf16.msra.mxu0 %v5810_v60  ;;  %v2916_v60 = vld [vmem:[%s11352_s3 + $0xc98] sm:$0xff] }
 0x2fe   :  { %5813 = vmatprep.subr.bf16.mxu0 %v5812_v61  ;;  %v2920_v61 = vld [vmem:[%s11352_s3 + $0xcb8] sm:$0xff] }
 0x2ff   :  { %v5848_v1 = vpack.c.bf16 %v2920_v61, %v2916_v60  ;;  %v3044_v60 = vld [vmem:[%s11352_s3 + $0x1098] sm:$0xff] }
 0x300   :  { %v3048_v61 = vld [vmem:[%s11352_s3 + $0x10b8] sm:$0xff] }
 0x301   :  { %5815 = vmatpush1.bf16.msra.mxu0 %v5814_v7  ;;  %v2923_v7 = vld [vmem:[%s11352_s3 + $0xcd0] sm:$0xff] }
 0x302   :  { %5817 = vmatprep.subr.bf16.mxu0 %v5816_v9  ;;  %v2927_v9 = vld [vmem:[%s11352_s3 + $0xcf0] sm:$0xff] }
 0x303   :  { %v5854_v31 = vpack.c.bf16 %v2927_v9, %v2923_v7  ;;  %v3047_v7 = vld [vmem:[%s11352_s3 + $0x10b0] sm:$0xff] }
 0x305   :  { %5819 = vmatpush1.bf16.msra.mxu0 %v5818_v48  ;;  %v2931_v48 = vld [vmem:[%s11352_s3 + $0xd10] sm:$0xff] }
 0x306   :  { %5821 = vmatprep.subr.bf16.mxu0 %v5820_v15  ;;  %v2935_v15 = vld [vmem:[%s11352_s3 + $0xd30] sm:$0xff] }
 0x307   :  { %v5858_v8 = vpack.c.bf16 %v2935_v15, %v2931_v48  ;;  %v2975_v48 = vld [vmem:[%s11352_s3 + $0xe70] sm:$0xff] }
 0x309   :  { %5823 = vmatpush1.bf16.msra.mxu0 %v5822_v16  ;;  %v5860_v16 = vpack.c.bf16 %v2944_v47, %v2940_v19  ;;  %v2980_v19 = vld [vmem:[%s11352_s3 + $0xe98] sm:$0xff] }
 0x30a   :  { %5825 = vmatprep.subr.bf16.mxu0 %v5824_v18  ;;  %v2939_v18 = vld [vmem:[%s11352_s3 + $0xd50] sm:$0xff]  ;;  %v2984_v47 = vld [vmem:[%s11352_s3 + $0xeb8] sm:$0xff] }
 0x30b   :  { %v5880_v23 = vpack.c.bf16 %v2984_v47, %v2980_v19  ;;  %v3092_v19 = vld [vmem:[%s11352_s3 + $0x1218] sm:$0xff] }
 0x30c   :  { %v3096_v47 = vld [vmem:[%s11352_s3 + $0x1238] sm:$0xff] }
 0x30d   :  { %5827 = vmatpush1.bf16.msra.mxu0 %v5826_v27  ;;  %v1068_v27 = vrot.slane %v1026_v17, %v8671_v28  ;;  %v3051_v17 = vld [vmem:[%s11352_s3 + $0x10d0] sm:$0xff] }
 0x30e   :  { %5829 = vmatprep.subr.bf16.mxu0 %v5828_v30  ;;  %v5862_v30 = vpack.c.bf16 %v2943_v20, %v2939_v18  ;;  %v3060_v20 = vld [vmem:[%s11352_s3 + $0x1118] sm:$0xff] }
 0x311   :  { %5831 = vmatpush1.bf16.msra.mxu0 %v5830_v36  ;;  %v2956_v36 = vld [vmem:[%s11352_s3 + $0xdd8] sm:$0xff] }
 0x312   :  { %5833 = vmatprep.subr.bf16.mxu0 %v5832_v37  ;;  %v2960_v37 = vld [vmem:[%s11352_s3 + $0xdf8] sm:$0xff] }
 0x313   :  { %v5868_v43 = vpack.c.bf16 %v2960_v37, %v2956_v36  ;;  %v3063_v36 = vld [vmem:[%s11352_s3 + $0x1130] sm:$0xff] }
 0x315   :  { %5835 = vmatpush1.bf16.msra.mxu0 %v5834_v40 }
 0x316   :  { %5837 = vmatprep.subr.bf16.mxu0 %v5836_v29  ;;  %v5866_v29 = vpack.c.bf16 %v2951_v3, %v2947_v33  ;;  %v2992_v33 = vld [vmem:[%s11352_s3 + $0xef8] sm:$0xff]  ;;  %v5920_v3 = vpack.c.bf16 %v3064_v21, %v3060_v20 }
 0x317   :  { %v3020_v20 = vld [vmem:[%s11352_s3 + $0xfd8] sm:$0xff] }
 0x318   :  { %v3024_v21 = vld [vmem:[%s11352_s3 + $0xff8] sm:$0xff] }
 0x319   :  { %5839 = vmatpush1.bf16.msra.mxu0 %v5838_v49  ;;  %v2959_v49 = vld [vmem:[%s11352_s3 + $0xdf0] sm:$0xff] }
 0x31a   :  { %5841 = vmatprep.subr.bf16.mxu0 %v5840_v44  ;;  %v5870_v59 = vpack.c.bf16 %v2959_v49, %v2955_v35  ;;  %v3067_v49 = vld [vmem:[%s11352_s3 + $0x1150] sm:$0xff] }
 0x31c   :  { %3689 = vmatmul.mubr.f32.vlgmr.msra.gmra.mrb[6].mxu0 %v2507_v22  ;;  %v5850_v22 = vpack.c.bf16 %v2919_v6, %v2915_v5  ;;  %v2967_v5 = vld [vmem:[%s11352_s3 + $0xe30] sm:$0xff] }
 0x31d   :  { %5843 = vmatpush1.bf16.msra.mxu0 %v5842_v54  ;;  %3759 = vmatprep.mubr.f32.mxu0 %v2510_v26  ;;  %v5852_v26 = vpack.c.bf16 %v2928_v13, %v2924_v2  ;;  %v5908_v54 = vpack.c.bf16 %v3040_v41, %v3036_v42  ;;  %v2972_v2 = vld [vmem:[%s11352_s3 + $0xe58] sm:$0xff] }
 0x31e   :  { %5845 = vmatprep.subr.bf16.mxu0 %v5844_v55  ;;  %v3035_v55 = vld [vmem:[%s11352_s3 + $0x1050] sm:$0xff]  ;;  %v2976_v13 = vld [vmem:[%s11352_s3 + $0xe78] sm:$0xff] }
 0x31f   :  { %v5910_v6 = vpack.c.bf16 %v3039_v58, %v3035_v55  ;;  %v2996_v41 = vld [vmem:[%s11352_s3 + $0xf18] sm:$0xff]  ;;  %v2995_v55 = vld [vmem:[%s11352_s3 + $0xf10] sm:$0xff] }
 0x320   :  { %v2999_v58 = vld [vmem:[%s11352_s3 + $0xf30] sm:$0xff] }
 0x321   :  { %5847 = vmatpush1.bf16.msra.mxu0 %v5846_v63  ;;  %v5872_v63 = vpack.c.bf16 %v2968_v50, %v2964_v46  ;;  %v3076_v46 = vld [vmem:[%s11352_s3 + $0x1198] sm:$0xff] }
 0x322   :  { %5849 = vmatprep.subr.bf16.mxu0 %v5848_v1  ;;  %v2963_v1 = vld [vmem:[%s11352_s3 + $0xe10] sm:$0xff]  ;;  %v3080_v50 = vld [vmem:[%s11352_s3 + $0x11b8] sm:$0xff] }
 0x323   :  { %v5874_v9 = vpack.c.bf16 %v2967_v5, %v2963_v1  ;;  %v3075_v1 = vld [vmem:[%s11352_s3 + $0x1190] sm:$0xff] }
 0x324   :  { %v3079_v5 = vld [vmem:[%s11352_s3 + $0x11b0] sm:$0xff] }
 0x325   :  { %5851 = vmatpush1.bf16.msra.mxu0 %v5850_v22  ;;  %v5912_v22 = vpack.c.bf16 %v3048_v61, %v3044_v60  ;;  %v3004_v60 = vld [vmem:[%s11352_s3 + $0xf58] sm:$0xff] }
 0x326   :  { %5853 = vmatprep.subr.bf16.mxu0 %v5852_v26  ;;  %v3043_v26 = vld [vmem:[%s11352_s3 + $0x1090] sm:$0xff]  ;;  %v3008_v61 = vld [vmem:[%s11352_s3 + $0xf78] sm:$0xff] }
 0x327   :  { %v5914_v15 = vpack.c.bf16 %v3047_v7, %v3043_v26  ;;  %v3003_v26 = vld [vmem:[%s11352_s3 + $0xf50] sm:$0xff] }
 0x328   :  { %v3007_v7 = vld [vmem:[%s11352_s3 + $0xf70] sm:$0xff] }
 0x329   :  { %5855 = vmatpush1.bf16.msra.mxu0 %v5854_v31  ;;  %v5876_v31 = vpack.c.bf16 %v2976_v13, %v2972_v2  ;;  %v3084_v2 = vld [vmem:[%s11352_s3 + $0x11d8] sm:$0xff] }
 0x32a   :  { %5857 = vmatprep.subr.bf16.mxu0 %v5856_v14  ;;  %v2971_v14 = vld [vmem:[%s11352_s3 + $0xe50] sm:$0xff]  ;;  %v3088_v13 = vld [vmem:[%s11352_s3 + $0x11f8] sm:$0xff] }
 0x32b   :  { %v5878_v18 = vpack.c.bf16 %v2975_v48, %v2971_v14  ;;  %v3083_v14 = vld [vmem:[%s11352_s3 + $0x11d0] sm:$0xff] }
 0x32c   :  { %v3087_v48 = vld [vmem:[%s11352_s3 + $0x11f0] sm:$0xff] }
 0x32d   :  { %5859 = vmatpush1.bf16.msra.mxu0 %v5858_v8  ;;  %v5916_v8 = vpack.c.bf16 %v3056_v11, %v3052_v10  ;;  %v3012_v10 = vld [vmem:[%s11352_s3 + $0xf98] sm:$0xff] }
 0x32e   :  { %5861 = vmatprep.subr.bf16.mxu0 %v5860_v16  ;;  %v3055_v16 = vld [vmem:[%s11352_s3 + $0x10f0] sm:$0xff]  ;;  %v3016_v11 = vld [vmem:[%s11352_s3 + $0xfb8] sm:$0xff] }
 0x32f   :  { %v2498_v34 = vpop.f32.mrb[4].mxu0 }
 0x330   :  { %v10852_v38 = vadd.f32 %v2498_v34, %v1064_v52  ;;  %v2500_v56 = vpop.f32.mrb[5].mxu0  ;;  %v2979_v52 = vld [vmem:[%s11352_s3 + $0xe90] sm:$0xff] }
 0x331   :  { %v6044_v40 = vadd.f32 %v2500_v56, %v1068_v27  ;;  %5863 = vmatpush1.bf16.msra.mxu0 %v5862_v30  ;;  %v2983_v27 = vld [vmem:[%s11352_s3 + $0xeb0] sm:$0xff]  ;;  %v5918_v30 = vpack.c.bf16 %v3055_v16, %v3051_v17  ;;  %v3068_v56 = vld [vmem:[%s11352_s3 + $0x1158] sm:$0xff] }
 0x332   :  { %5865 = vmatprep.subr.bf16.mxu0 %v5864_v32  ;;  %v2511_v53 = vmax.f32 %v10852_v38, 0.0  ;;  %v2988_v32 = vld [vmem:[%s11352_s3 + $0xed8] sm:$0xff]  ;;  %v3059_v34 = vld [vmem:[%s11352_s3 + $0x1110] sm:$0xff]  ;;  %v5882_v37 = vpack.c.bf16 %v2983_v27, %v2979_v52  ;;  %v5924_v35 = vpack.c.bf16 %v3072_v0, %v3068_v56  ;;  %v3857_v56 = vld [vmem:[%s11354_s5 + $0x80] sm:$0xff] }
 0x333   :  { %v2512_v44 = vmax.f32 %v6044_v40, 0.0  ;;  %v5884_v57 = vpack.c.bf16 %v2992_v33, %v2988_v32  ;;  %v2987_v40 = vld [vmem:[%s11352_s3 + $0xed0] sm:$0xff]  ;;  %v5922_v42 = vpack.c.bf16 %v3063_v36, %v3059_v34  ;;  %v5900_v32 = vpack.c.bf16 %v3024_v21, %v3020_v20  ;;  %v3858_v0 = vld [vmem:[%s11354_s5 + $0x88] sm:$0xff]  ;;  %v3856_v21 = vld [vmem:[%s11354_s5 + $0x78] sm:$0xff] }
 0x334   :  { %v3011_v17 = vld [vmem:[%s11352_s3 + $0xf90] sm:$0xff] }
 0x335   :  { %5867 = vmatpush1.bf16.msra.mxu0 %v5866_v29  ;;  %4246 = vmatprep.mubr.msk.f32.mxu1 %vm3123_vm1, %v2512_v44  ;;  %v2991_v29 = vld [vmem:[%s11352_s3 + $0xef0] sm:$0xff] }
 0x336   :  { %3476 = vmatmul.mubr.f32.vlgmr.msra.gmra.mrb[4].mxu1 %v2511_v53  ;;  %5869 = vmatprep.subr.bf16.mxu0 %v5868_v43  ;;  %v3000_v43 = vld [vmem:[%s11352_s3 + $0xf38] sm:$0xff]  ;;  %v3015_v16 = vld [vmem:[%s11352_s3 + $0xfb0] sm:$0xff] }
 0x337   :  { %5907 = vmatpush1.bf16.msra.mxu1 %v5906_v45  ;;  %4247 = vmatprep.mubr.msk.f32.mxu1 %vm3123_vm1, %v2512_v44  ;;  %v3071_v44 = vld [vmem:[%s11352_s3 + $0x1170] sm:$0xff]  ;;  %v5886_v45 = vpack.c.bf16 %v2991_v29, %v2987_v40  ;;  %v3842_v40 = vld [vmem:[%s11354_s5 + $0x8] sm:$0xff] }
 0x338   :  { %5909 = vmatprep.subr.bf16.mxu1 %v5908_v54  ;;  %v5888_v54 = vpack.c.bf16 %v3000_v43, %v2996_v41  ;;  %v3091_v52 = vld [vmem:[%s11352_s3 + $0x1210] sm:$0xff]  ;;  %v3860_v41 = vld [vmem:[%s11354_s5 + $0x98] sm:$0xff]  ;;  %v5940_v43 = vpack.c.bf16 %v3858_v0, %v3857_v56 }
 0x339   :  { %5871 = vmatpush1.bf16.msra.mxu0 %v5870_v59  ;;  %v5926_v59 = vpack.c.bf16 %v3071_v44, %v3067_v49  ;;  %v3095_v27 = vld [vmem:[%s11352_s3 + $0x1230] sm:$0xff] }
 0x33a   :  { %5873 = vmatprep.subr.bf16.mxu0 %v5872_v63  ;;  %v5928_v63 = vpack.c.bf16 %v3080_v50, %v3076_v46  ;;  %v3019_v33 = vld [vmem:[%s11352_s3 + $0xfd0] sm:$0xff]  ;;  %v5938_v34 = vpack.c.bf16 %v3095_v27, %v3091_v52  ;;  %v3861_v46 = vld [vmem:[%s11354_s5 + $0xa0] sm:$0xff]  ;;  %v3862_v50 = vld [vmem:[%s11354_s5 + $0xa8] sm:$0xff]  ;;  %v6114_v52 = vmov 0.0|0.0  }
 0x33b   :  { %5911 = vmatpush1.bf16.msra.mxu1 %v5910_v6  ;;  %v5890_v6 = vpack.c.bf16 %v2999_v58, %v2995_v55  ;;  %v3099_v29 = vld [vmem:[%s11352_s3 + $0x1250] sm:$0xff]  ;;  %v5948_v55 = vpack.c.bf16 %v3862_v50, %v3861_v46  ;;  %v3101_v27 = vld [vmem:[%s11355_s4] sm:$0xf]  ;;  %v3882_v46 = vld [vmem:[%s11354_s5 + $0x148] sm:$0xff] }
 0x33c   :  { %5913 = vmatprep.subr.bf16.mxu1 %v5912_v22  ;;  %v5892_v22 = vpack.c.bf16 %v3008_v61, %v3004_v60  ;;  %v3843_v44 = vld [vmem:[%s11354_s5 + $0x10] sm:$0xff]  ;;  %v3848_v61 = vld [vmem:[%s11354_s5 + $0x38] sm:$0xff] }
 0x33d   :  { %5875 = vmatpush1.bf16.msra.mxu0 %v5874_v9  ;;  %v5930_v9 = vpack.c.bf16 %v3079_v5, %v3075_v1  ;;  %v3863_v38 = vld [vmem:[%s11354_s5 + $0xb0] sm:$0xff]  ;;  %v3866_v1 = vld [vmem:[%s11354_s5 + $0xc8] sm:$0xff] }
 0x33e   :  { %5877 = vmatprep.subr.bf16.mxu0 %v5876_v31  ;;  %v5932_v31 = vpack.c.bf16 %v3088_v13, %v3084_v2  ;;  %v3847_v60 = vld [vmem:[%s11354_s5 + $0x30] sm:$0xff]  ;;  %v3849_v2 = vld [vmem:[%s11354_s5 + $0x40] sm:$0xff]  ;;  %v3850_v13 = vld [vmem:[%s11354_s5 + $0x48] sm:$0xff] }
 0x33f   :  { %5915 = vmatpush1.bf16.msra.mxu1 %v5914_v15  ;;  %v5894_v15 = vpack.c.bf16 %v3007_v7, %v3003_v26  ;;  %v5954_v5 = vpack.c.bf16 %v3848_v61, %v3847_v60  ;;  %v3868_v26 = vld [vmem:[%s11354_s5 + $0xd8] sm:$0xff]  ;;  %v5958_v7 = vpack.c.bf16 %v3850_v13, %v3849_v2  ;;  %v3855_v20 = vld [vmem:[%s11354_s5 + $0x70] sm:$0xff]  ;;  %v3889_v61 = vld [vmem:[%s11354_s5 + $0x180] sm:$0xff] }
 0x340   :  { %5917 = vmatprep.subr.bf16.mxu1 %v5916_v8  ;;  %v5896_v8 = vpack.c.bf16 %v3016_v11, %v3012_v10  ;;  %v3851_v10 = vld [vmem:[%s11354_s5 + $0x50] sm:$0xff]  ;;  %v3852_v11 = vld [vmem:[%s11354_s5 + $0x58] sm:$0xff] }
 0x341   :  { %5879 = vmatpush1.bf16.msra.mxu0 %v5878_v18  ;;  %v5934_v18 = vpack.c.bf16 %v3087_v48, %v3083_v14  ;;  %v3870_v14 = vld [vmem:[%s11354_s5 + $0xe8] sm:$0xff]  ;;  %v5962_v48 = vpack.c.bf16 %v3852_v11, %v3851_v10 }
 0x342   :  { %5881 = vmatprep.subr.bf16.mxu0 %v5880_v23  ;;  %v5936_v23 = vpack.c.bf16 %v3096_v47, %v3092_v19  ;;  %v3853_v19 = vld [vmem:[%s11354_s5 + $0x60] sm:$0xff]  ;;  %v3854_v47 = vld [vmem:[%s11354_s5 + $0x68] sm:$0xff] }
 0x343   :  { %5919 = vmatpush1.bf16.msra.mxu1 %v5918_v30  ;;  %v5898_v30 = vpack.c.bf16 %v3015_v16, %v3011_v17  ;;  %v3871_v17 = vld [vmem:[%s11354_s5 + $0xf0] sm:$0xff]  ;;  %v3872_v16 = vld [vmem:[%s11354_s5 + $0xf8] sm:$0xff] }
 0x344   :  { %5921 = vmatprep.subr.bf16.mxu1 %v5920_v3  ;;  %v3023_v3 = vld [vmem:[%s11352_s3 + $0xff0] sm:$0xff] }
 0x345   :  { %5883 = vmatpush1.bf16.msra.mxu0 %v5882_v37  ;;  %v5902_v36 = vpack.c.bf16 %v3023_v3, %v3019_v33  ;;  %v3100_v37 = vld [vmem:[%s11352_s3 + $0x1258] sm:$0xff] }
 0x346   :  { %5885 = vmatprep.subr.bf16.mxu0 %v5884_v57  ;;  %v3841_v57 = vld [vmem:[%s11354_s5] sm:$0xff] }
 0x347   :  { %5923 = vmatpush1.bf16.msra.mxu1 %v5922_v42  ;;  %v3859_v42 = vld [vmem:[%s11354_s5 + $0x90] sm:$0xff] }
 0x348   :  { %5925 = vmatprep.subr.bf16.mxu1 %v5924_v35  ;;  %v5942_v35 = vpack.c.bf16 %v3842_v40, %v3841_v57  ;;  %v5944_v49 = vpack.c.bf16 %v3860_v41, %v3859_v42  ;;  %v3877_v42 = vld [vmem:[%s11354_s5 + $0x120] sm:$0xff]  ;;  %v3878_v41 = vld [vmem:[%s11354_s5 + $0x128] sm:$0xff] }
 0x349   :  { %5887 = vmatpush1.bf16.msra.mxu0 %v5886_v45  ;;  %v3844_v45 = vld [vmem:[%s11354_s5 + $0x18] sm:$0xff] }
 0x34a   :  { %5889 = vmatprep.subr.bf16.mxu0 %v5888_v54  ;;  %v5946_v54 = vpack.c.bf16 %v3844_v45, %v3843_v44  ;;  %v3881_v45 = vld [vmem:[%s11354_s5 + $0x140] sm:$0xff] }
 0x34b   :  { %5927 = vmatpush1.bf16.msra.mxu1 %v5926_v59  ;;  %v5985_v50 = vpack.c.bf16 %v3882_v46, %v3881_v45  ;;  %v4142_v45 = vld [vmem:[%s11358_s9 + $0x18] sm:$0xff] }
 0x34c   :  { %5929 = vmatprep.subr.bf16.mxu1 %v5928_v63  ;;  %v3865_v63 = vld [vmem:[%s11354_s5 + $0xc0] sm:$0xff] }
 0x34d   :  { %5891 = vmatpush1.bf16.msra.mxu0 %v5890_v6  ;;  %v5956_v6 = vpack.c.bf16 %v3866_v1, %v3865_v63  ;;  %v3890_v63 = vld [vmem:[%s11354_s5 + $0x188] sm:$0xff]  ;;  %v3114_v1 = vrot.slane %v3101_v27, %v1039_v51 }
 0x34e   :  { %5893 = vmatprep.subr.bf16.mxu0 %v5892_v22  ;;  %v3867_v22 = vld [vmem:[%s11354_s5 + $0xd0] sm:$0xff] }
 0x34f   :  { %5931 = vmatpush1.bf16.msra.mxu1 %v5930_v9  ;;  %v5960_v9 = vpack.c.bf16 %v3868_v26, %v3867_v22 }
 0x350   :  { %5933 = vmatprep.subr.bf16.mxu1 %v5932_v31  ;;  %v3869_v31 = vld [vmem:[%s11354_s5 + $0xe0] sm:$0xff] }
 0x351   :  { %5895 = vmatpush1.bf16.msra.mxu0 %v5894_v15  ;;  %v5964_v15 = vpack.c.bf16 %v3870_v14, %v3869_v31  ;;  %v4044_v14 = vld [vmem:[%s11356_s7 + $0x10] sm:$0xff] }
 0x352   :  { %5897 = vmatprep.subr.bf16.mxu0 %v5896_v8  ;;  %v5966_v8 = vpack.c.bf16 %v3854_v47, %v3853_v19  ;;  %v4046_v47 = vld [vmem:[%s11356_s7 + $0x20] sm:$0xff] }
 0x353   :  { %5935 = vmatpush1.bf16.msra.mxu1 %v5934_v18  ;;  %v5968_v18 = vpack.c.bf16 %v3872_v16, %v3871_v17  ;;  %v4048_v16 = vld [vmem:[%s11356_s7 + $0x30] sm:$0xff] }
 0x354   :  { %5937 = vmatprep.subr.bf16.mxu1 %v5936_v23  ;;  %v5970_v23 = vpack.c.bf16 %v3856_v21, %v3855_v20  ;;  %v4050_v21 = vld [vmem:[%s11356_s7 + $0x40] sm:$0xff] }
 0x355   :  { %5899 = vmatpush1.bf16.msra.mxu0 %v5898_v30  ;;  %v3106_v30 = vrot.slane %v3101_v27, %v8962_v62  ;;  %v3875_v62 = vld [vmem:[%s11354_s5 + $0x110] sm:$0xff] }
 0x356   :  { %5901 = vmatprep.subr.bf16.mxu0 %v5900_v32  ;;  %v3110_v32 = vrot.slane %v3101_v27, %v8671_v28  ;;  %v3876_v28 = vld [vmem:[%s11354_s5 + $0x118] sm:$0xff] }
 0x357   :  { %5939 = vmatpush1.bf16.msra.mxu1 %v5938_v34 }
 0x358   :  { %3802 = vmatprep.subr.mxu1 %v3100_v37  ;;  %v3874_v37 = vld [vmem:[%s11354_s5 + $0x108] sm:$0xff] }
 0x359   :  { %5903 = vmatpush1.bf16.msra.mxu0 %v5902_v36  ;;  %v3873_v36 = vld [vmem:[%s11354_s5 + $0x100] sm:$0xff] }
 0x35a   :  { %v5973_v57 = vpack.c.bf16 %v3874_v37, %v3873_v36  ;;  %v4056_v37 = vld [vmem:[%s11356_s7 + $0x70] sm:$0xff] }
 0x35b   :  { %3803 = vmatpush1.msra.mxu1 %v3099_v29  ;;  %v5976_v29 = vpack.c.bf16 %v3876_v28, %v3875_v62  ;;  %v4139_v28 = vld [vmem:[%s11358_s9] sm:$0xff] }
 0x35c   :  { %3760 = vmatmul.mubr.f32.vlgmr.msra.gmra.mrb[6].mxu0 %v2509_v39  ;;  %3831 = vmatmul.mubr.f32.vlgmr.msra.gmra.mrb[6].mxu1 %v2511_v53  ;;  %v3846_v39 = vld [vmem:[%s11354_s5 + $0x28] sm:$0xff]  ;;  %v3864_v53 = vld [vmem:[%s11354_s5 + $0xb8] sm:$0xff] }
 0x35d   :  { %5941 = vmatprep.subr.bf16.mxu1 %v5940_v43  ;;  %v5950_v58 = vpack.c.bf16 %v3846_v39, %v3845_v25  ;;  %v5952_v59 = vpack.c.bf16 %v3864_v53, %v3863_v38  ;;  %v5979_v43 = vpack.c.bf16 %v3878_v41, %v3877_v42  ;;  %v3885_v39 = vld [vmem:[%s11354_s5 + $0x160] sm:$0xff]  ;;  %v3886_v38 = vld [vmem:[%s11354_s5 + $0x168] sm:$0xff] }
 0x35e   :  { %5943 = vmatpush3.bf16.msra.mxu1 %v5942_v35  ;;  %v3879_v35 = vld [vmem:[%s11354_s5 + $0x130] sm:$0xff]  ;;  %v5991_v53 = vpack.c.bf16 %v3886_v38, %v3885_v39  ;;  %v4146_v39 = vld [vmem:[%s11358_s9 + $0x38] sm:$0xff] }
 0x35f   :  { %5945 = vmatprep.subr.bf16.mxu1 %v5944_v49  ;;  %v3880_v49 = vld [vmem:[%s11354_s5 + $0x138] sm:$0xff] }
 0x360   :  { %v5982_v44 = vpack.c.bf16 %v3880_v49, %v3879_v35 }
 0x362   :  { %5947 = vmatpush3.bf16.msra.mxu1 %v5946_v54  ;;  %v3883_v54 = vld [vmem:[%s11354_s5 + $0x150] sm:$0xff] }
 0x363   :  { %5949 = vmatprep.subr.bf16.mxu1 %v5948_v55  ;;  %v3884_v55 = vld [vmem:[%s11354_s5 + $0x158] sm:$0xff] }
 0x364   :  { %v5988_v25 = vpack.c.bf16 %v3884_v55, %v3883_v54  ;;  %v4144_v54 = vld [vmem:[%s11358_s9 + $0x28] sm:$0xff] }
 0x366   :  { %5951 = vmatpush3.bf16.msra.mxu1 %v5950_v58  ;;  %v3887_v58 = vld [vmem:[%s11354_s5 + $0x170] sm:$0xff] }
 0x367   :  { %5953 = vmatprep.subr.bf16.mxu1 %v5952_v59  ;;  %v3888_v59 = vld [vmem:[%s11354_s5 + $0x178] sm:$0xff] }
 0x368   :  { %v5994_v60 = vpack.c.bf16 %v3888_v59, %v3887_v58  ;;  %v4148_v58 = vld [vmem:[%s11358_s9 + $0x48] sm:$0xff] }
 0x36a   :  { %5955 = vmatpush3.bf16.msra.mxu1 %v5954_v5  ;;  %v3118_v5 = vrot.slane %v3101_v27, %v1043_v4  ;;  %v4043_v4 = vld [vmem:[%s11356_s7 + $0x8] sm:$0xff] }
 0x36b   :  { %5957 = vmatprep.subr.bf16.mxu1 %v5956_v6  ;;  %v5997_v6 = vpack.c.bf16 %v3890_v63, %v3889_v61 }
 0x36e   :  { %5959 = vmatpush3.bf16.msra.mxu1 %v5958_v7 }
 0x36f   :  { %5961 = vmatprep.subr.bf16.mxu1 %v5960_v9 }
 0x372   :  { %5963 = vmatpush3.bf16.msra.mxu1 %v5962_v48  ;;  %v6000_v48 = vpack.c.bf16 %v4043_v4, %v4042_v12 }
 0x373   :  { %5965 = vmatprep.subr.bf16.mxu1 %v5964_v15  ;;  %v4045_v15 = vld [vmem:[%s11356_s7 + $0x18] sm:$0xff] }
 0x374   :  { %v6003_v19 = vpack.c.bf16 %v4045_v15, %v4044_v14 }
 0x376   :  { %5967 = vmatpush3.bf16.msra.mxu1 %v5966_v8  ;;  %v4047_v8 = vld [vmem:[%s11356_s7 + $0x28] sm:$0xff] }
 0x377   :  { %5969 = vmatprep.subr.bf16.mxu1 %v5968_v18  ;;  %v6006_v17 = vpack.c.bf16 %v4047_v8, %v4046_v47  ;;  %v4049_v18 = vld [vmem:[%s11356_s7 + $0x38] sm:$0xff] }
 0x378   :  { %v6009_v20 = vpack.c.bf16 %v4049_v18, %v4048_v16 }
 0x37a   :  { %5971 = vmatpush3.bf16.msra.mxu1 %v5970_v23  ;;  %v4051_v23 = vld [vmem:[%s11356_s7 + $0x48] sm:$0xff] }
 0x37b   :  { %5972 = vmatprep.subr.bf16.mxu1 %v6114_v52  ;;  %v6012_v27 = vpack.c.bf16 %v4051_v23, %v4050_v21 }
 0x409   :  { %v3477_v33 = vpop.f32.mrb[4].mxu1 }
 0x40a   :  { %v6045_v3 = vadd.f32 %v3477_v33, %v3106_v30  ;;  %v3479_v34 = vpop.f32.mrb[5].mxu1  ;;  %v4052_v30 = vld [vmem:[%s11356_s7 + $0x50] sm:$0xff] }
 0x40b   :  { %v6046_v56 = vadd.f32 %v3479_v34, %v3110_v32  ;;  %v4053_v32 = vld [vmem:[%s11356_s7 + $0x58] sm:$0xff]  ;;  %v4055_v34 = vld [vmem:[%s11356_s7 + $0x68] sm:$0xff] }
 0x40c   :  { %v3837_v40 = vmax.f32 %v6045_v3, 0.0  ;;  %v6015_v33 = vpack.c.bf16 %v4053_v32, %v4052_v30  ;;  %v4054_v3 = vld [vmem:[%s11356_s7 + $0x60] sm:$0xff] }
 0x40d   :  { %v3838_v0 = vmax.f32 %v6046_v56, 0.0  ;;  %v6018_v36 = vpack.c.bf16 %v4055_v34, %v4054_v3 }
 0x40f   :  { %3965 = vmatprep.mubr.f32.mxu1 %v3838_v0 }
 0x410   :  { %3966 = vmatmul.mubr.f32.vlgmr.msra.gmra.mrb[8].mxu1 %v3837_v40  ;;  %v4248_v40 = vld [vmem:[%s11357_s6] ss:$0 sm:$0xff] }
 0x411   :  { %5974 = vmatpush1.bf16.msra.mxu1 %v5973_v57 }
 0x412   :  { %5975 = vmatprep.subr.bf16.mxu1 %v6114_v52 }
 0x415   :  { %5977 = vmatpush1.bf16.msra.mxu1 %v5976_v29  ;;  %v4140_v29 = vld [vmem:[%s11358_s9 + $0x8] sm:$0xff] }
 0x416   :  { %5978 = vmatprep.subr.bf16.mxu1 %v6114_v52  ;;  %v6021_v35 = vpack.c.bf16 %v4140_v29, %v4139_v28 }
 0x419   :  { %5980 = vmatpush1.bf16.msra.mxu1 %v5979_v43 }
 0x41a   :  { %5981 = vmatprep.subr.bf16.mxu1 %v6114_v52 }
 0x41d   :  { %5983 = vmatpush1.bf16.msra.mxu1 %v5982_v44  ;;  %v4141_v44 = vld [vmem:[%s11358_s9 + $0x10] sm:$0xff] }
 0x41e   :  { %5984 = vmatprep.subr.bf16.mxu1 %v6114_v52  ;;  %v6024_v46 = vpack.c.bf16 %v4142_v45, %v4141_v44 }
 0x421   :  { %5986 = vmatpush1.bf16.msra.mxu1 %v5985_v50  ;;  %v4143_v50 = vld [vmem:[%s11358_s9 + $0x20] sm:$0xff] }
 0x422   :  { %5987 = vmatprep.subr.bf16.mxu1 %v6114_v52  ;;  %v6027_v55 = vpack.c.bf16 %v4144_v54, %v4143_v50 }
 0x425   :  { %5989 = vmatpush1.bf16.msra.mxu1 %v5988_v25  ;;  %v4145_v25 = vld [vmem:[%s11358_s9 + $0x30] sm:$0xff] }
 0x426   :  { %5990 = vmatprep.subr.bf16.mxu1 %v6114_v52  ;;  %v6030_v38 = vpack.c.bf16 %v4146_v39, %v4145_v25 }
 0x429   :  { %5992 = vmatpush1.bf16.msra.mxu1 %v5991_v53  ;;  %v4147_v53 = vld [vmem:[%s11358_s9 + $0x40] sm:$0xff] }
 0x42a   :  { %5993 = vmatprep.subr.bf16.mxu1 %v6114_v52  ;;  %v6033_v59 = vpack.c.bf16 %v4148_v58, %v4147_v53 }
 0x42d   :  { %5995 = vmatpush1.bf16.msra.mxu1 %v5994_v60  ;;  %v4149_v60 = vld [vmem:[%s11358_s9 + $0x50] sm:$0xf] }
 0x42e   :  { %5996 = vmatprep.subr.bf16.mxu1 %v6114_v52 }
 0x42f   :  { %v3761_v2 = vpop.f32.mrb[6].mxu0  ;;  %v3832_v13 = vpop.f32.mrb[6].mxu1 }
 0x430   :  { %v6047_v22 = vadd.f32 %v3761_v2, %v3114_v1  ;;  %v3763_v26 = vpop.f32.mrb[7].mxu0  ;;  %v3834_v7 = vpop.f32.mrb[7].mxu1 }
 0x431   :  { %v6049_v9 = vadd.f32 %v3763_v26, %v3118_v5  ;;  %5998 = vmatpush1.bf16.msra.mxu1 %v5997_v6 }
 0x432   :  { %v6048_v10 = vadd.f32 %v6047_v22, %v3832_v13  ;;  %5999 = vmatprep.subr.bf16.mxu1 %v6114_v52 }
 0x433   :  { %v6050_v11 = vadd.f32 %v6049_v9, %v3834_v7 }
 0x434   :  { %v3839_v51 = vmax.f32 %v6048_v10, 0.0 }
 0x435   :  { %v3840_v31 = vmax.f32 %v6050_v11, 0.0 }
 0x437   :  { %4249 = vmatprep.mubr.msk.f32.mxu1 %vm1079_vm0, %v3840_v31 }
 0x438   :  { %4036 = vmatmul.mubr.f32.vlgmr.msra.gmra.mrb[10].mxu1 %v3839_v51 }
 0x439   :  { %6001 = vmatpush3.bf16.msra.mxu1 %v6000_v48  ;;  %4348 = vmatprep.mubr.msk.f32.mxu1 %vm6115_vm2, %v6113_v24 }
 0x43a   :  { %6002 = vmatprep.subr.bf16.mxu1 %v6114_v52 }
 0x43d   :  { %6004 = vmatpush3.bf16.msra.mxu1 %v6003_v19 }
 0x43e   :  { %6005 = vmatprep.subr.bf16.mxu1 %v6114_v52 }
 0x441   :  { %6007 = vmatpush3.bf16.msra.mxu1 %v6006_v17 }
 0x442   :  { %6008 = vmatprep.subr.bf16.mxu1 %v6114_v52 }
 0x445   :  { %6010 = vmatpush3.bf16.msra.mxu1 %v6009_v20 }
 0x446   :  { %6011 = vmatprep.subr.bf16.mxu1 %v6114_v52 }
 0x449   :  { %6013 = vmatpush3.bf16.msra.mxu1 %v6012_v27 }
 0x44a   :  { %6014 = vmatprep.subr.bf16.mxu1 %v6114_v52 }
 0x44d   :  { %6016 = vmatpush3.bf16.msra.mxu1 %v6015_v33 }
 0x44e   :  { %6017 = vmatprep.subr.bf16.mxu1 %v6114_v52 }
 0x451   :  { %6019 = vmatpush3.bf16.msra.mxu1 %v6018_v36 }
 0x452   :  { %4346 = vmatprep.subr.mxu1 %v6113_v24 }
 0x455   :  { %4347 = vmatpush3.msra.mxu1 %v4056_v37 }
 0x456   :  { %6020 = vmatprep.subr.bf16.mxu1 %v6114_v52 }
 0x4e3   :  { %v4287_v56 = vpop.f32.mrb[8].mxu1 }
 0x4e4   :  { %v4288_v0 = vpop.f32.mrb[9].mxu1 }
 0x4e5   :  { %v4289_v57 = vadd.f32 %v4288_v0, %v4287_v56 }
 0x4e7   :  { %v3968_v62 = vadd.f32 %v4289_v57, %v4248_v40 }
 0x50b   :  { %v4037_v42 = vpop.f32.mrb[10].mxu1 }
 0x50c   :  { %v4038_v41 = vadd.f32 %v4037_v42, %v3968_v62  ;;  %v4039_v43 = vpop.f32.mrb[11].mxu1 }
 0x50e   :  { %v4041_v49 = vmax.f32 %v4038_v41, 0.0 }
 0x510   :  { %4349 = vmatmul.mubr.msk.f32.vlgmr.msra.gmra.mrb[12].mxu1 %vm4064_vm3, %v4041_v49 }
 0x511   :  { %6022 = vmatpush3.bf16.msra.mxu1 %v6021_v35  ;;  %4373 = vmatprep.mubr.msk.f32.mxu1 %vm6115_vm2, %v6113_v24 }
 0x512   :  { %6023 = vmatprep.subr.bf16.mxu1 %v6114_v52 }
 0x515   :  { %6025 = vmatpush3.bf16.msra.mxu1 %v6024_v46 }
 0x516   :  { %6026 = vmatprep.subr.bf16.mxu1 %v6114_v52 }
 0x519   :  { %6028 = vmatpush3.bf16.msra.mxu1 %v6027_v55 }
 0x51a   :  { %6029 = vmatprep.subr.bf16.mxu1 %v6114_v52 }
 0x51d   :  { %6031 = vmatpush3.bf16.msra.mxu1 %v6030_v38 }
 0x51e   :  { %6032 = vmatprep.subr.bf16.mxu1 %v6114_v52  ;;  %v4250_v52 = vld [vmem:[%s11359_s8] ss:$0 sm:$0xff] }
 0x521   :  { %6034 = vmatpush3.bf16.msra.mxu1 %v6033_v59 }
 0x522   :  { %4371 = vmatprep.subr.mxu1 %v6113_v24  ;;  %v4252_v24 = vld [vmem:[%s11360_s10] ss:$0 sm:$0xff] }
 0x525   :  { %4372 = vmatpush3.msk.msra.mxu1 %vm4161_vm4, %v4149_v60 }
 0x5e3   :  { %v4134_v61 = vpop.f32.mrb[12].mxu1 }
 0x5e4   :  { %v4135_v63 = vadd.f32 %v4250_v52, %v4134_v61  ;;  %v4350_v1 = vpop.f32.mrb[13].mxu1 }
 0x5e6   :  { %v4138_v5 = vmax.f32 %v4135_v63, 0.0 }
 0x5e8   :  { %4374 = vmatmul.mubr.msk.f32.vlgmr.msra.gmra.mrb[14].mxu1 %vm4157_vm5, %v4138_v5 }
 0x6bb   :  { %v4231_v6 = vpop.f32.mrb[14].mxu1 }
 0x6bc   :  { %v4232_v2 = vadd.f32 %v4252_v24, %v4231_v6  ;;  %v4375_v13 = vpop.f32.mrb[15].mxu1 }
 0x6be   :  { %4236 = vst.msk [vmem:[%s11361_s11] sm:$0xff] %vm4235_vm6, %v4232_v2 }

</bundles_post_ra>
